<compile_context>
chip_gen: v7x
topology: tpu7x:2x2x1
jax: 0.10.0
libtpu: 0.0.40
codegen_flags: <defaults>
</compile_context>

<pallas_src>
import functools

import jax
import jax.numpy as jnp
from jax import lax
from jax.experimental import pallas as pl
from jax.experimental.pallas import tpu as pltpu

# ---- static config (mirrors opt.* / img_shape of the PyTorch script) -----------------
N_CLASSES = 10
LATENT_DIM = 107            # n_classes + latent_dim = 117 -> Flatten() yields 370 feats
CHANNELS = 1
IMG_SIZE = 16
IMG_SHAPE = (1, CHANNELS, IMG_SIZE, IMG_SIZE)     # prod = 256
BN_EPS = 0.8                # nn.BatchNorm1d(out_feat, 0.8): 2nd positional arg is eps
FLAT_DIM = 370              # 10 * 37 * 1 * 1 after the conv/maxpool prelude
K_PAD = 384                 # zero-pad contraction dim 370 -> 384 (3*128, lane aligned)
H1, H2 = 512, 1024
OUT_DIM = CHANNELS * IMG_SIZE * IMG_SIZE          # 256
VEC_DIM = H1 + H1 + H2 + H2 + OUT_DIM             # 3328 packed per-feature vectors

FUSED_MAX_ROWS = 1024       # largest padded batch kept fully VMEM-resident (fused path)
BATCH_TILE = 512            # gridded-path batch tile (multiple of 128 and 256 MXU rows)
VMEM_LIMIT = 32 * 1024 * 1024   # > v5e's 16 MiB scoped default, <= v7x physical VMEM


def _round_up(n, m):
    return ((n + m - 1) // m) * m


def _leaky(x, slope):
    return jnp.where(x >= 0, x, slope * x)


# =============================== fused (small-batch) path =============================
def _mlp_fused_kernel(b_real, x_ref, w1_ref, w2_ref, w3_ref, vec_ref, out_ref):
    """Whole (row-padded) batch resident in VMEM; exact whole-batch train-mode BN
    (padded rows masked out of the statistics); BN folded into one affine per block."""
    bp = x_ref.shape[0]
    mask = lax.broadcasted_iota(jnp.int32, (bp, 1), 0) < b_real

    def bn_affine(h, g, bt):
        hm = jnp.where(mask, h, 0.0)
        mu = jnp.sum(hm, axis=0, keepdims=True) / b_real
        ex2 = jnp.sum(hm * hm, axis=0, keepdims=True) / b_real
        scale = g * lax.rsqrt(ex2 - mu * mu + BN_EPS)          # biased var, eps = 0.8
        return h * scale + (bt - mu * scale)

    vec = vec_ref[...]                                         # (1, 3328) packed vectors
    g1, bt1 = vec[:, :H1], vec[:, H1:2 * H1]
    g2, bt2 = vec[:, 2 * H1:2 * H1 + H2], vec[:, 2 * H1 + H2:2 * H1 + 2 * H2]
    b3 = vec[:, 2 * H1 + 2 * H2:]

    h = jnp.dot(x_ref[...].astype(jnp.bfloat16), w1_ref[...],
                preferred_element_type=jnp.float32)
    h = _leaky(bn_affine(h, g1, bt1), 0.2)
    h = jnp.dot(h.astype(jnp.bfloat16), w2_ref[...], preferred_element_type=jnp.float32)
    h = _leaky(bn_affine(h, g2, bt2), 0.2)
    h = jnp.dot(h.astype(jnp.bfloat16), w3_ref[...], preferred_element_type=jnp.float32)
    out_ref[...] = jnp.tanh(h + b3)


def _mlp_fused(x, p, b_real):
    bp = x.shape[0]
    vmem = pl.BlockSpec(memory_space=pltpu.MemorySpace.VMEM)
    wbytes = (K_PAD * H1 + H1 * H2 + H2 * OUT_DIM) * 2
    flops = 2 * bp * (K_PAD * H1 + H1 * H2 + H2 * OUT_DIM)
    return pl.pallas_call(
        functools.partial(_mlp_fused_kernel, b_real),
        out_shape=jax.ShapeDtypeStruct((bp, OUT_DIM), jnp.float32),
        in_specs=[vmem] * 5,
        out_specs=vmem,
        compiler_params=pltpu.CompilerParams(vmem_limit_bytes=VMEM_LIMIT),
        cost_estimate=pl.CostEstimate(
            flops=flops, transcendentals=bp * OUT_DIM,
            bytes_accessed=bp * K_PAD * 4 + wbytes + VEC_DIM * 4 + bp * OUT_DIM * 4),
    )(x, p['w1'], p['w2'], p['w3'], p['bnvec'])


# ============================= gridded (large-batch) path =============================
def _stats_into(s_ref, ss_ref, h, b_real, tb):
    """Per-tile partial sums / sums-of-squares over the REAL rows only."""
    row = pl.program_id(0) * tb + lax.broadcasted_iota(jnp.int32, (tb, 1), 0)
    hm = jnp.where(row < b_real, h, 0.0)
    s_ref[...] = jnp.sum(hm, axis=0, keepdims=True)[None]
    ss_ref[...] = jnp.sum(hm * hm, axis=0, keepdims=True)[None]


def _gk_matmul_stats(b_real, x_ref, w_ref, h_ref, s_ref, ss_ref):
    h = jnp.dot(x_ref[...].astype(jnp.bfloat16), w_ref[...],
                preferred_element_type=jnp.float32)
    h_ref[...] = h
    _stats_into(s_ref, ss_ref, h, b_real, x_ref.shape[0])


def _gk_affine_matmul_stats(b_real, x_ref, sc_ref, sh_ref, w_ref, h_ref, s_ref, ss_ref):
    a = _leaky(x_ref[...] * sc_ref[...] + sh_ref[...], 0.2)
    h = jnp.dot(a.astype(jnp.bfloat16), w_ref[...], preferred_element_type=jnp.float32)
    h_ref[...] = h
    _stats_into(s_ref, ss_ref, h, b_real, x_ref.shape[0])


def _gk_affine_matmul_tanh(x_ref, sc_ref, sh_ref, w_ref, b_ref, o_ref):
    a = _leaky(x_ref[...] * sc_ref[...] + sh_ref[...], 0.2)
    h = jnp.dot(a.astype(jnp.bfloat16), w_ref[...], preferred_element_type=jnp.float32)
    o_ref[...] = jnp.tanh(h + b_ref[...])


def _gridded_block(x, w, b_real, tb, pre_affine):
    """Batch-gridded block: [optional BN-affine + LeakyReLU(0.2)] -> matmul + BN sums."""
    bp, K = x.shape
    N = w.shape[1]
    nt = bp // tb
    x_spec = pl.BlockSpec((tb, K), lambda i: (i, 0))
    w_spec = pl.BlockSpec((K, N), lambda i: (0, 0))        # grid-resident: DMA'd once
    vec_spec = pl.BlockSpec((1, K), lambda i: (0, 0))
    if pre_affine is None:
        kernel = functools.partial(_gk_matmul_stats, b_real)
        operands, in_specs = (x, w), (x_spec, w_spec)
    else:
        sc, sh = pre_affine
        kernel = functools.partial(_gk_affine_matmul_stats, b_real)
        operands, in_specs = (x, sc, sh, w), (x_spec, vec_spec, vec_spec, w_spec)
    return pl.pallas_call(
        kernel,
        grid=(nt,),
        in_specs=in_specs,
        out_specs=(pl.BlockSpec((tb, N), lambda i: (i, 0)),
                   pl.BlockSpec((1, 1, N), lambda i: (i, 0, 0)),
                   pl.BlockSpec((1, 1, N), lambda i: (i, 0, 0))),
        out_shape=(jax.ShapeDtypeStruct((bp, N), jnp.float32),
                   jax.ShapeDtypeStruct((nt, 1, N), jnp.float32),
                   jax.ShapeDtypeStruct((nt, 1, N), jnp.float32)),
        compiler_params=pltpu.CompilerParams(
            dimension_semantics=("parallel",), vmem_limit_bytes=VMEM_LIMIT),
        cost_estimate=pl.CostEstimate(
            flops=2 * bp * K * N, transcendentals=0,
            bytes_accessed=bp * K * 4 + K * N * 2 + bp * N * 4),
    )(*operands)


def _gridded_final(h, sc, sh, w, b, tb):
    bp, K = h.shape
    N = w.shape[1]
    nt = bp // tb
    return pl.pallas_call(
        _gk_affine_matmul_tanh,
        grid=(nt,),
        in_specs=(pl.BlockSpec((tb, K), lambda i: (i, 0)),
                  pl.BlockSpec((1, K), lambda i: (0, 0)),
                  pl.BlockSpec((1, K), lambda i: (0, 0)),
                  pl.BlockSpec((K, N), lambda i: (0, 0)),
                  pl.BlockSpec((1, N), lambda i: (0, 0))),
        out_specs=pl.BlockSpec((tb, N), lambda i: (i, 0)),
        out_shape=jax.ShapeDtypeStruct((bp, N), jnp.float32),
        compiler_params=pltpu.CompilerParams(
            dimension_semantics=("parallel",), vmem_limit_bytes=VMEM_LIMIT),
        cost_estimate=pl.CostEstimate(
            flops=2 * bp * K * N, transcendentals=bp * N,
            bytes_accessed=bp * K * 4 + K * N * 2 + bp * N * 4),
    )(h, sc, sh, w, b)


def _bn_affine_from_stats(s, ss, g, bt, b_real):
    """Reduce per-tile partial sums to exact whole-batch train-mode BN affine params."""
    mu = jnp.sum(s, axis=0) / b_real            # (1, N)
    ex2 = jnp.sum(ss, axis=0) / b_real
    scale = g * lax.rsqrt(ex2 - mu * mu + BN_EPS)
    shift = bt - mu * scale
    return scale, shift


def _mlp_gridded(x, p, b_real, tb=BATCH_TILE):
    h1, s1, ss1 = _gridded_block(x, p['w1'], b_real, tb, pre_affine=None)
    sc1, sh1 = _bn_affine_from_stats(s1, ss1, p['g1'], p['bt1'], b_real)
    h2, s2, ss2 = _gridded_block(h1, p['w2'], b_real, tb, pre_affine=(sc1, sh1))
    sc2, sh2 = _bn_affine_from_stats(s2, ss2, p['g2'], p['bt2'], b_real)
    return _gridded_final(h2, sc2, sh2, p['w3'], p['b3'], tb)


# --------------------- plain-JAX glue: tiny ConvTranspose3d prelude -------------------
def conv_transpose3d(x, wk, b, pad):
    """Exact nn.ConvTranspose3d (stride=1, dilation=1).  x: (N,Cin,D,H,W);
       wk: kernel ALREADY spatially flipped and transposed to OIDHW."""
    kD, kH, kW = wk.shape[2:]
    pads = ((kD - 1 - pad[0],) * 2, (kH - 1 - pad[1],) * 2, (kW - 1 - pad[2],) * 2)
    y = lax.conv_general_dilated(x, wk, window_strides=(1, 1, 1), padding=pads,
                                 dimension_numbers=('NCDHW', 'OIDHW', 'NCDHW'))
    return y + b[None, :, None, None, None]


def _flip_ct(w):
    return jnp.transpose(w[:, :, ::-1, ::-1, ::-1], (1, 0, 2, 3, 4))


def generator_forward(params, noise, labels, use_grid=None):
    p = params
    B = noise.shape[0]
    emb = p['emb'][labels]                                  # (B, n_classes)
    gen = jnp.concatenate([emb, noise], axis=-1)            # (B, 117)
    x = gen[:, None, :, None, None]                         # (B,1,117,1,1)  NCDHW

    # Tiny 3-D conv-transpose / maxpool prelude in plain JAX (negligible work).
    x = _leaky(conv_transpose3d(x, p['ct1_wk'], p['ct1_b'], (1, 0, 0)), 0.01)  # (B,10,116,2,2)
    x = _leaky(conv_transpose3d(x, p['ct2_wk'], p['ct2_b'], (1, 0, 0)), 0.01)  # (B,20,115,3,3)
    x = lax.reduce_window(x, -jnp.inf, lax.max,
                          (1, 1, 3, 3, 3), (1, 1, 3, 3, 3), 'VALID')           # (B,20,38,1,1)
    # NOTE: ct3 cannot be folded into w1 (a LeakyReLU sits between them).
    x = _leaky(conv_transpose3d(x, p['ct3_wk'], p['ct3_b'], (1, 0, 0)), 0.01)  # (B,10,37,1,1)
    x = x.reshape(B, -1)                                                       # (B, 370)

    # Lane-aligned contraction: zero-pad 370 -> 384 (fuses with the prelude epilogue;
    # w1 is pre-padded with matching zero rows).  bf16 downcast happens inside kernels.
    x = jnp.pad(x, ((0, 0), (0, K_PAD - FLAT_DIM)))                            # (B, 384)

    if use_grid is None:
        use_grid = _round_up(B, 8) > FUSED_MAX_ROWS
    bp = _round_up(B, BATCH_TILE) if use_grid else _round_up(B, 8)
    x = jnp.pad(x, ((0, bp - B), (0, 0)))        # pad batch rows (masked out of BN stats)

    # TODO(synk): hide the ~2 MB weight DMA behind the conv prelude with a cross-call
    # prefetch (side pallas_call: pl.ANY weights -> VMEM refs + SEMAPHORE output).
    img = _mlp_gridded(x, p, B) if use_grid else _mlp_fused(x, p, B)            # (bp, 256)
    return img[:B].reshape(B, *IMG_SHAPE)                                       # (B,1,1,16,16)


# ------------------------------ pure-JAX f32 reference --------------------------------
def generator_forward_ref(raw, noise, labels):
    B = noise.shape[0]
    emb = raw['emb'][labels]
    x = jnp.concatenate([emb, noise], axis=-1)[:, None, :, None, None]
    x = _leaky(conv_transpose3d(x, _flip_ct(raw['ct1_w']), raw['ct1_b'], (1, 0, 0)), 0.01)
    x = _leaky(conv_transpose3d(x, _flip_ct(raw['ct2_w']), raw['ct2_b'], (1, 0, 0)), 0.01)
    x = lax.reduce_window(x, -jnp.inf, lax.max, (1, 1, 3, 3, 3), (1, 1, 3, 3, 3), 'VALID')
    x = _leaky(conv_transpose3d(x, _flip_ct(raw['ct3_w']), raw['ct3_b'], (1, 0, 0)), 0.01)
    h = x.reshape(B, -1)

    def block(h, w, b, g, bt):
        h = jnp.dot(h, w, precision=lax.Precision.HIGHEST) + b
        mu = jnp.mean(h, axis=0, keepdims=True)
        var = jnp.mean(jnp.square(h - mu), axis=0, keepdims=True)
        return _leaky((h - mu) * lax.rsqrt(var + BN_EPS) * g + bt, 0.2)

    h = block(h, raw['w1'], raw['b1'], raw['g1'], raw['bt1'])
    h = block(h, raw['w2'], raw['b2'], raw['g2'], raw['bt2'])
    img = jnp.tanh(jnp.dot(h, raw['w3'], precision=lax.Precision.HIGHEST) + raw['b3'])
    return img.reshape(B, *IMG_SHAPE)


# ------------------------------ deterministic params ----------------------------------
def init_params(key):
    """Raw parameters, mirroring the PyTorch module's tensors."""
    ks = jax.random.split(key, 17)
    nrm = lambda k, shape, s: s * jax.random.normal(k, shape, jnp.float32)
    return dict(
        emb=nrm(ks[0], (N_CLASSES, N_CLASSES), 1.0),
        ct1_w=nrm(ks[1], (1, 10, 2, 2, 2), 0.2),   ct1_b=nrm(ks[2], (10,), 0.1),
        ct2_w=nrm(ks[3], (10, 20, 2, 2, 2), 0.2),  ct2_b=nrm(ks[4], (20,), 0.1),
        ct3_w=nrm(ks[5], (20, 10, 2, 1, 1), 0.2),  ct3_b=nrm(ks[6], (10,), 0.1),
        w1=nrm(ks[7], (FLAT_DIM, H1), 0.05),       b1=nrm(ks[8], (1, H1), 0.01),
        g1=1.0 + nrm(ks[9], (1, H1), 0.1),         bt1=nrm(ks[10], (1, H1), 0.01),
        w2=nrm(ks[11], (H1, H2), 0.05),            b2=nrm(ks[12], (1, H2), 0.01),
        g2=1.0 + nrm(ks[13], (1, H2), 0.1),        bt2=nrm(ks[14], (1, H2), 0.01),
        w3=nrm(ks[15], (H2, OUT_DIM), 0.05),       b3=nrm(ks[16], (1, OUT_DIM), 0.01),
    )


def prepare_params(raw):
    """One-time inference-ready preprocessing (hoisted out of the forward pass):
       - flip + transpose the ConvTranspose3d kernels to OIDHW,
       - zero-pad w1's contraction dim 370 -> 384 and downcast w1/w2/w3 to bf16,
       - drop b1/b2 (exactly cancelled by the following BatchNorm's mean subtraction),
       - pack g1/bt1/g2/bt2/b3 into one (1, 3328) array (5 input DMAs instead of 9)."""
    w1_pad = jnp.pad(raw['w1'], ((0, K_PAD - FLAT_DIM), (0, 0)))
    bnvec = jnp.concatenate([raw['g1'], raw['bt1'], raw['g2'], raw['bt2'], raw['b3']],
                            axis=1)
    return dict(
        emb=raw['emb'],
        ct1_wk=_flip_ct(raw['ct1_w']), ct1_b=raw['ct1_b'],
        ct2_wk=_flip_ct(raw['ct2_w']), ct2_b=raw['ct2_b'],
        ct3_wk=_flip_ct(raw['ct3_w']), ct3_b=raw['ct3_b'],
        w1=w1_pad.astype(jnp.bfloat16),
        w2=raw['w2'].astype(jnp.bfloat16),
        w3=raw['w3'].astype(jnp.bfloat16),
        g1=raw['g1'], bt1=raw['bt1'], g2=raw['g2'], bt2=raw['bt2'], b3=raw['b3'],
        bnvec=bnvec,
    )


if __name__ == "__main__":
    key = jax.random.PRNGKey(0)
    pkey, nkey, lkey, nkey2, lkey2 = jax.random.split(key, 5)
    raw = init_params(pkey)
    params = prepare_params(raw)

    fwd = jax.jit(generator_forward, static_argnames=("use_grid",))
    ref = jax.jit(generator_forward_ref)

    # Small-batch path (B=2): single fused VMEM-resident call, exact whole-batch BN.
    B = 2
    noise = jax.random.normal(nkey, (B, LATENT_DIM), jnp.float32)    # (2, 107)
    labels = jax.random.randint(lkey, (B,), 0, N_CLASSES)            # (2,)
    img = fwd(params, noise, labels, use_grid=None)
    jax.block_until_ready(img)
    assert img.shape == (B, *IMG_SHAPE), img.shape
    assert bool(jnp.all(jnp.isfinite(img)))
    err = float(jnp.max(jnp.abs(img - ref(raw, noise, labels))))
    assert err < 5e-2, f"fused path mismatch vs f32 reference: {err}"

    # Batched path (B=600): 3-pass gridded kernels, batch tiles in parallel, masked
    # partial BN stats reduced in JAX glue (last tile has 88 real + 424 padded rows).
    B2 = 600
    noise2 = jax.random.normal(nkey2, (B2, LATENT_DIM), jnp.float32)
    labels2 = jax.random.randint(lkey2, (B2,), 0, N_CLASSES)
    img2 = fwd(params, noise2, labels2, use_grid=True)
    jax.block_until_ready(img2)
    assert img2.shape == (B2, *IMG_SHAPE), img2.shape
    assert bool(jnp.all(jnp.isfinite(img2)))
    err2 = float(jnp.max(jnp.abs(img2 - ref(raw, noise2, labels2))))
    assert err2 < 5e-2, f"gridded path mismatch vs f32 reference: {err2}"

    print("KERNEL_OK")
</pallas_src>

<mosaic_0001>
module attributes {stable_mosaic.version = 11 : i64} {
  func.func @_mlp_fused_kernel(%arg0: memref<8x384xf32, #tpu.memory_space<vmem>>, %arg1: memref<384x512xbf16, #tpu.memory_space<vmem>>, %arg2: memref<512x1024xbf16, #tpu.memory_space<vmem>>, %arg3: memref<1024x256xbf16, #tpu.memory_space<vmem>>, %arg4: memref<1x3328xf32, #tpu.memory_space<vmem>>, %arg5: memref<8x256xf32, #tpu.memory_space<vmem>>) attributes {dimension_semantics = [], scalar_prefetch = 0 : i64, scratch_operands = 0 : i64, tpu.core_type = #tpu.core_type<tc>} {
    %0 = tpu.iota {dimensions = array<i32: 0>} : vector<8x1xi32>
    %c2_i32 = arith.constant 2 : i32
    %1 = vector.broadcast %c2_i32 : i32 to vector<8x1xi32>
    %2 = arith.cmpi slt, %0, %1 : vector<8x1xi32>
    %c0 = arith.constant 0 : index
    %c0_0 = arith.constant 0 : index
    %3 = vector.load %arg4[%c0, %c0_0] : memref<1x3328xf32, #tpu.memory_space<vmem>>, vector<1x3328xf32>
    %4 = vector.extract_strided_slice %3 {offsets = [0, 0], sizes = [1, 512], strides = [1, 1]} : vector<1x3328xf32> to vector<1x512xf32>
    %5 = vector.extract_strided_slice %3 {offsets = [0, 512], sizes = [1, 512], strides = [1, 1]} : vector<1x3328xf32> to vector<1x512xf32>
    %6 = vector.extract_strided_slice %3 {offsets = [0, 1024], sizes = [1, 1024], strides = [1, 1]} : vector<1x3328xf32> to vector<1x1024xf32>
    %7 = vector.extract_strided_slice %3 {offsets = [0, 2048], sizes = [1, 1024], strides = [1, 1]} : vector<1x3328xf32> to vector<1x1024xf32>
    %8 = vector.extract_strided_slice %3 {offsets = [0, 3072], sizes = [1, 256], strides = [1, 1]} : vector<1x3328xf32> to vector<1x256xf32>
    %c0_1 = arith.constant 0 : index
    %c0_2 = arith.constant 0 : index
    %9 = vector.load %arg0[%c0_1, %c0_2] : memref<8x384xf32, #tpu.memory_space<vmem>>, vector<8x384xf32>
    %10 = arith.truncf %9 : vector<8x384xf32> to vector<8x384xbf16>
    %c0_3 = arith.constant 0 : index
    %c0_4 = arith.constant 0 : index
    %11 = vector.load %arg1[%c0_3, %c0_4] : memref<384x512xbf16, #tpu.memory_space<vmem>>, vector<384x512xbf16>
    %cst = arith.constant dense<0.000000e+00> : vector<8x512xf32>
    %12 = tpu.matmul %10, %11, %cst {dimension_numbers = #tpu.dot_dimension_numbers<[1], [0], [0], [1], [0, 0, 1, 1], [], []>} : vector<8x384xbf16>, vector<384x512xbf16>, vector<8x512xf32> -> vector<8x512xf32>
    %cst_5 = arith.constant 0.000000e+00 : f32
    %13 = vector.shape_cast %2 : vector<8x1xi1> to vector<8x1xi1>
    %14 = vector.broadcast %13 : vector<8x1xi1> to vector<8x512xi1>
    %15 = vector.broadcast %cst_5 : f32 to vector<8x512xf32>
    %16 = arith.select %14, %12, %15 : vector<8x512xi1>, vector<8x512xf32>
    %cst_6 = arith.constant dense<0.000000e+00> : vector<512xf32>
    %17 = vector.multi_reduction <add>, %16, %cst_6 [0] : vector<8x512xf32> to vector<512xf32>
    %18 = vector.shape_cast %17 : vector<512xf32> to vector<1x512xf32>
    %cst_7 = arith.constant 2.000000e+00 : f32
    %19 = vector.broadcast %cst_7 : f32 to vector<1x512xf32>
    %20 = arith.divf %18, %19 : vector<1x512xf32>
    %21 = arith.mulf %16, %16 : vector<8x512xf32>
    %cst_8 = arith.constant dense<0.000000e+00> : vector<512xf32>
    %22 = vector.multi_reduction <add>, %21, %cst_8 [0] : vector<8x512xf32> to vector<512xf32>
    %23 = vector.shape_cast %22 : vector<512xf32> to vector<1x512xf32>
    %cst_9 = arith.constant 2.000000e+00 : f32
    %24 = vector.broadcast %cst_9 : f32 to vector<1x512xf32>
    %25 = arith.divf %23, %24 : vector<1x512xf32>
    %26 = arith.mulf %20, %20 : vector<1x512xf32>
    %27 = arith.subf %25, %26 : vector<1x512xf32>
    %cst_10 = arith.constant 8.000000e-01 : f32
    %28 = vector.broadcast %cst_10 : f32 to vector<1x512xf32>
    %29 = arith.addf %27, %28 : vector<1x512xf32>
    %30 = math.rsqrt %29 : vector<1x512xf32>
    %31 = arith.mulf %4, %30 : vector<1x512xf32>
    %32 = vector.broadcast %31 : vector<1x512xf32> to vector<8x512xf32>
    %33 = arith.mulf %12, %32 : vector<8x512xf32>
    %34 = arith.mulf %20, %31 : vector<1x512xf32>
    %35 = arith.subf %5, %34 : vector<1x512xf32>
    %36 = vector.broadcast %35 : vector<1x512xf32> to vector<8x512xf32>
    %37 = arith.addf %33, %36 : vector<8x512xf32>
    %cst_11 = arith.constant 0.000000e+00 : f32
    %38 = vector.broadcast %cst_11 : f32 to vector<8x512xf32>
    %39 = arith.cmpf oge, %37, %38 : vector<8x512xf32>
    %cst_12 = arith.constant 2.000000e-01 : f32
    %40 = vector.broadcast %cst_12 : f32 to vector<8x512xf32>
    %41 = arith.mulf %40, %37 : vector<8x512xf32>
    %42 = arith.select %39, %37, %41 : vector<8x512xi1>, vector<8x512xf32>
    %43 = arith.truncf %42 : vector<8x512xf32> to vector<8x512xbf16>
    %c0_13 = arith.constant 0 : index
    %c0_14 = arith.constant 0 : index
    %44 = vector.load %arg2[%c0_13, %c0_14] : memref<512x1024xbf16, #tpu.memory_space<vmem>>, vector<512x1024xbf16>
    %cst_15 = arith.constant dense<0.000000e+00> : vector<8x1024xf32>
    %45 = tpu.matmul %43, %44, %cst_15 {dimension_numbers = #tpu.dot_dimension_numbers<[1], [0], [0], [1], [0, 0, 1, 1], [], []>} : vector<8x512xbf16>, vector<512x1024xbf16>, vector<8x1024xf32> -> vector<8x1024xf32>
    %cst_16 = arith.constant 0.000000e+00 : f32
    %46 = vector.shape_cast %2 : vector<8x1xi1> to vector<8x1xi1>
    %47 = vector.broadcast %46 : vector<8x1xi1> to vector<8x1024xi1>
    %48 = vector.broadcast %cst_16 : f32 to vector<8x1024xf32>
    %49 = arith.select %47, %45, %48 : vector<8x1024xi1>, vector<8x1024xf32>
    %cst_17 = arith.constant dense<0.000000e+00> : vector<1024xf32>
    %50 = vector.multi_reduction <add>, %49, %cst_17 [0] : vector<8x1024xf32> to vector<1024xf32>
    %51 = vector.shape_cast %50 : vector<1024xf32> to vector<1x1024xf32>
    %cst_18 = arith.constant 2.000000e+00 : f32
    %52 = vector.broadcast %cst_18 : f32 to vector<1x1024xf32>
    %53 = arith.divf %51, %52 : vector<1x1024xf32>
    %54 = arith.mulf %49, %49 : vector<8x1024xf32>
    %cst_19 = arith.constant dense<0.000000e+00> : vector<1024xf32>
    %55 = vector.multi_reduction <add>, %54, %cst_19 [0] : vector<8x1024xf32> to vector<1024xf32>
    %56 = vector.shape_cast %55 : vector<1024xf32> to vector<1x1024xf32>
    %cst_20 = arith.constant 2.000000e+00 : f32
    %57 = vector.broadcast %cst_20 : f32 to vector<1x1024xf32>
    %58 = arith.divf %56, %57 : vector<1x1024xf32>
    %59 = arith.mulf %53, %53 : vector<1x1024xf32>
    %60 = arith.subf %58, %59 : vector<1x1024xf32>
    %cst_21 = arith.constant 8.000000e-01 : f32
    %61 = vector.broadcast %cst_21 : f32 to vector<1x1024xf32>
    %62 = arith.addf %60, %61 : vector<1x1024xf32>
    %63 = math.rsqrt %62 : vector<1x1024xf32>
    %64 = arith.mulf %6, %63 : vector<1x1024xf32>
    %65 = vector.broadcast %64 : vector<1x1024xf32> to vector<8x1024xf32>
    %66 = arith.mulf %45, %65 : vector<8x1024xf32>
    %67 = arith.mulf %53, %64 : vector<1x1024xf32>
    %68 = arith.subf %7, %67 : vector<1x1024xf32>
    %69 = vector.broadcast %68 : vector<1x1024xf32> to vector<8x1024xf32>
    %70 = arith.addf %66, %69 : vector<8x1024xf32>
    %cst_22 = arith.constant 0.000000e+00 : f32
    %71 = vector.broadcast %cst_22 : f32 to vector<8x1024xf32>
    %72 = arith.cmpf oge, %70, %71 : vector<8x1024xf32>
    %cst_23 = arith.constant 2.000000e-01 : f32
    %73 = vector.broadcast %cst_23 : f32 to vector<8x1024xf32>
    %74 = arith.mulf %73, %70 : vector<8x1024xf32>
    %75 = arith.select %72, %70, %74 : vector<8x1024xi1>, vector<8x1024xf32>
    %76 = arith.truncf %75 : vector<8x1024xf32> to vector<8x1024xbf16>
    %c0_24 = arith.constant 0 : index
    %c0_25 = arith.constant 0 : index
    %77 = vector.load %arg3[%c0_24, %c0_25] : memref<1024x256xbf16, #tpu.memory_space<vmem>>, vector<1024x256xbf16>
    %cst_26 = arith.constant dense<0.000000e+00> : vector<8x256xf32>
    %78 = tpu.matmul %76, %77, %cst_26 {dimension_numbers = #tpu.dot_dimension_numbers<[1], [0], [0], [1], [0, 0, 1, 1], [], []>} : vector<8x1024xbf16>, vector<1024x256xbf16>, vector<8x256xf32> -> vector<8x256xf32>
    %79 = vector.broadcast %8 : vector<1x256xf32> to vector<8x256xf32>
    %80 = arith.addf %78, %79 : vector<8x256xf32>
    %81 = math.tanh %80 : vector<8x256xf32>
    %c0_27 = arith.constant 0 : index
    %c0_28 = arith.constant 0 : index
    %82 = vector.load %arg5[%c0_27, %c0_28] : memref<8x256xf32, #tpu.memory_space<vmem>>, vector<8x256xf32>
    tpu.vector_store %arg5[%c0_27, %c0_28], %81 {strides = array<i32>} : memref<8x256xf32, #tpu.memory_space<vmem>>, vector<8x256xf32>,
    return
  }
}

</mosaic_0001>

<bundles_post_ra>
// kernel: generator_forward.1
= control target key start
LH: loop header
LB: loop body
LE: loop exit
PB: predicated region body
PF: predicated region fallthrough
CT: control target
= control target key end

     0   :  { %v5101_v1 = vmov 0   ;;  %s6887_s1 = inlined_call_operand.vmem [shape: bf16[384,512], index: 1, kind: input, shape index: {}]   ;;  %s6888_s0 = inlined_call_operand.vmem [shape: f32[8,384], index: 0, kind: input, shape index: {}]   ;;  %s6889_s2 = inlined_call_operand.vmem [shape: bf16[512,1024], index: 2, kind: input, shape index: {}]   ;;  %s6890_s4 = inlined_call_operand.vmem [shape: f32[1,3328], index: 4, kind: input, shape index: {}]   ;;  %s6891_s3 = inlined_call_operand.vmem [shape: bf16[1024,256], index: 3, kind: input, shape index: {}]   ;;  %s6892_s5 = inlined_call_operand.vmem [shape: f32[8,256], index: 5, kind: output, shape index: {}]  }
   0x1   :  { %v4737_v0 = vld [vmem:[%s6887_s1 + $0x4] ss:$16 sps:$4 sm:$0xff]   ;;  %683 = vmatprep.mubr.bf16.mxu0 %v5101_v1  ;;  %v4739_v2 = vld [vmem:[%s6887_s1] ss:$16 sps:$4 sm:$0xff]   ;;  %v29_v33 = vld [vmem:[%s6888_s0 + $0x8] sm:$0xff] }
   0x2   :  { %610 = vmatprep.subr.bf16.mxu1 %v4737_v0  ;;  %v4740_v3 = vld [vmem:[%s6887_s1 + $0x24] ss:$16 sps:$4 sm:$0xff]   ;;  %v4742_v4 = vld [vmem:[%s6887_s1 + $0x20] ss:$16 sps:$4 sm:$0xff]   ;;  %v32_v34 = vpack.c.bf16 %v29_v33, %v29_v33  ;;  %v4811_v54 = vld [vmem:[%s6887_s1 + $0xc] ss:$16 sps:$4 sm:$0xff]  }
   0x3   :  { %611 = vmatpush1.bf16.msra.mxu1 %v4739_v2  ;;  %v4743_v5 = vld [vmem:[%s6887_s1 + $0x44] ss:$16 sps:$4 sm:$0xff]   ;;  %v4745_v6 = vld [vmem:[%s6887_s1 + $0x40] ss:$16 sps:$4 sm:$0xff]   ;;  %v4809_v56 = vld [vmem:[%s6887_s1 + $0x8] ss:$16 sps:$4 sm:$0xff]  }
   0x4   :  { %612 = vmatprep.subr.bf16.mxu1 %v4740_v3  ;;  %v4746_v7 = vld [vmem:[%s6887_s1 + $0x64] ss:$16 sps:$4 sm:$0xff]   ;;  %v4748_v8 = vld [vmem:[%s6887_s1 + $0x60] ss:$16 sps:$4 sm:$0xff]   ;;  %642 = vmatprep.mubr.bf16.mxu1 %v32_v34  ;;  %v4814_v57 = vld [vmem:[%s6887_s1 + $0x2c] ss:$16 sps:$4 sm:$0xff]  }
   0x5   :  { %v4749_v9 = vld [vmem:[%s6887_s1 + $0x84] ss:$16 sps:$4 sm:$0xff]   ;;  %v4766_v11 = vld [vmem:[%s6887_s1 + $0x200] ss:$16 sps:$4 sm:$0xff]   ;;  %v4812_v58 = vld [vmem:[%s6887_s1 + $0x28] ss:$16 sps:$4 sm:$0xff]  }
   0x6   :  { %v4763_v10 = vld [vmem:[%s6887_s1 + $0x204] ss:$16 sps:$4 sm:$0xff]   ;;  %v4751_v12 = vld [vmem:[%s6887_s1 + $0x80] ss:$16 sps:$4 sm:$0xff]   ;;  %v4817_v59 = vld [vmem:[%s6887_s1 + $0x4c] ss:$16 sps:$4 sm:$0xff]  }
   0x7   :  { %613 = vmatpush1.bf16.msra.mxu1 %v4742_v4  ;;  %651 = vmatprep.subr.bf16.mxu0 %v4763_v10  ;;  %v4769_v13 = vld [vmem:[%s6887_s1 + $0x224] ss:$16 sps:$4 sm:$0xff]   ;;  %v4772_v14 = vld [vmem:[%s6887_s1 + $0x220] ss:$16 sps:$4 sm:$0xff]   ;;  %v4815_v60 = vld [vmem:[%s6887_s1 + $0x48] ss:$16 sps:$4 sm:$0xff]  }
   0x8   :  { %614 = vmatprep.subr.bf16.mxu1 %v4743_v5  ;;  %652 = vmatpush1.bf16.msra.mxu0 %v4766_v11  ;;  %v4752_v15 = vld [vmem:[%s6887_s1 + $0xa4] ss:$16 sps:$4 sm:$0xff]   ;;  %v4754_v17 = vld [vmem:[%s6887_s1 + $0xa0] ss:$16 sps:$4 sm:$0xff]   ;;  %v4820_v61 = vld [vmem:[%s6887_s1 + $0x6c] ss:$16 sps:$4 sm:$0xff]  }
   0x9   :  { %653 = vmatprep.subr.bf16.mxu0 %v4769_v13  ;;  %v4775_v16 = vld [vmem:[%s6887_s1 + $0x244] ss:$16 sps:$4 sm:$0xff]   ;;  %v4778_v18 = vld [vmem:[%s6887_s1 + $0x240] ss:$16 sps:$4 sm:$0xff]   ;;  %v4818_v62 = vld [vmem:[%s6887_s1 + $0x68] ss:$16 sps:$4 sm:$0xff]  }
   0xa   :  { %v4755_v19 = vld [vmem:[%s6887_s1 + $0xc4] ss:$16 sps:$4 sm:$0xff]   ;;  %v4757_v21 = vld [vmem:[%s6887_s1 + $0xc0] ss:$16 sps:$4 sm:$0xff]   ;;  %v4823_v63 = vld [vmem:[%s6887_s1 + $0x8c] ss:$16 sps:$4 sm:$0xff]  }
   0xb   :  { %615 = vmatpush1.bf16.msra.mxu1 %v4745_v6  ;;  %v4781_v20 = vld [vmem:[%s6887_s1 + $0x264] ss:$16 sps:$4 sm:$0xff]   ;;  %v4784_v23 = vld [vmem:[%s6887_s1 + $0x260] ss:$16 sps:$4 sm:$0xff]   ;;  %v4821_v0 = vld [vmem:[%s6887_s1 + $0x88] ss:$16 sps:$4 sm:$0xff]  }
   0xc   :  { %616 = vmatprep.subr.bf16.mxu1 %v4746_v7  ;;  %654 = vmatpush1.bf16.msra.mxu0 %v4772_v14  ;;  %v4758_v22 = vld [vmem:[%s6887_s1 + $0xe4] ss:$16 sps:$4 sm:$0xff]   ;;  %v4760_v25 = vld [vmem:[%s6887_s1 + $0xe0] ss:$16 sps:$4 sm:$0xff]   ;;  %v4826_v2 = vld [vmem:[%s6887_s1 + $0xac] ss:$16 sps:$4 sm:$0xff]  }
   0xd   :  { %655 = vmatprep.subr.bf16.mxu0 %v4775_v16  ;;  %v4787_v24 = vld [vmem:[%s6887_s1 + $0x284] ss:$16 sps:$4 sm:$0xff]   ;;  %v4790_v26 = vld [vmem:[%s6887_s1 + $0x280] ss:$16 sps:$4 sm:$0xff]   ;;  %v4824_v3 = vld [vmem:[%s6887_s1 + $0xa8] ss:$16 sps:$4 sm:$0xff]  }
   0xe   :  { %v4761_v27 = vld [vmem:[%s6887_s1 + $0x104] ss:$16 sps:$4 sm:$0xff]   ;;  %v4765_v29 = vld [vmem:[%s6887_s1 + $0x100] ss:$16 sps:$4 sm:$0xff]   ;;  %v4829_v4 = vld [vmem:[%s6887_s1 + $0xcc] ss:$16 sps:$4 sm:$0xff]  }
   0xf   :  { %617 = vmatpush1.bf16.msra.mxu1 %v4748_v8  ;;  %v4793_v28 = vld [vmem:[%s6887_s1 + $0x2a4] ss:$16 sps:$4 sm:$0xff]   ;;  %v4796_v30 = vld [vmem:[%s6887_s1 + $0x2a0] ss:$16 sps:$4 sm:$0xff]   ;;  %v4827_v5 = vld [vmem:[%s6887_s1 + $0xc8] ss:$16 sps:$4 sm:$0xff]  }
  0x10   :  { %618 = vmatprep.subr.bf16.mxu1 %v4749_v9  ;;  %656 = vmatpush1.bf16.msra.mxu0 %v4778_v18  ;;  %v4767_v31 = vld [vmem:[%s6887_s1 + $0x124] ss:$16 sps:$4 sm:$0xff]   ;;  %v4771_v35 = vld [vmem:[%s6887_s1 + $0x120] ss:$16 sps:$4 sm:$0xff]   ;;  %v4832_v6 = vld [vmem:[%s6887_s1 + $0xec] ss:$16 sps:$4 sm:$0xff]  }
  0x11   :  { %657 = vmatprep.subr.bf16.mxu0 %v4781_v20  ;;  %v4799_v32 = vld [vmem:[%s6887_s1 + $0x2c4] ss:$16 sps:$4 sm:$0xff]   ;;  %v4802_v36 = vld [vmem:[%s6887_s1 + $0x2c0] ss:$16 sps:$4 sm:$0xff]   ;;  %v4830_v7 = vld [vmem:[%s6887_s1 + $0xe8] ss:$16 sps:$4 sm:$0xff]  }
  0x12   :  { %v4773_v37 = vld [vmem:[%s6887_s1 + $0x144] ss:$16 sps:$4 sm:$0xff]   ;;  %v4777_v39 = vld [vmem:[%s6887_s1 + $0x140] ss:$16 sps:$4 sm:$0xff]   ;;  %v4835_v8 = vld [vmem:[%s6887_s1 + $0x10c] ss:$16 sps:$4 sm:$0xff]  }
  0x13   :  { %619 = vmatpush1.bf16.msra.mxu1 %v4751_v12  ;;  %v4805_v38 = vld [vmem:[%s6887_s1 + $0x2e4] ss:$16 sps:$4 sm:$0xff]   ;;  %v4808_v40 = vld [vmem:[%s6887_s1 + $0x2e0] ss:$16 sps:$4 sm:$0xff]   ;;  %v4833_v9 = vld [vmem:[%s6887_s1 + $0x108] ss:$16 sps:$4 sm:$0xff]  }
  0x14   :  { %620 = vmatprep.subr.bf16.mxu1 %v4752_v15  ;;  %658 = vmatpush1.bf16.msra.mxu0 %v4784_v23  ;;  %v30_v41 = vld [vmem:[%s6888_s0 + $0x10] sm:$0xff]  ;;  %v28_v53 = vld [vmem:[%s6888_s0] sm:$0xff]  ;;  %v4838_v10 = vld [vmem:[%s6887_s1 + $0x12c] ss:$16 sps:$4 sm:$0xff]  }
  0x15   :  { %659 = vmatprep.subr.bf16.mxu0 %v4787_v24  ;;  %v4779_v42 = vld [vmem:[%s6887_s1 + $0x164] ss:$16 sps:$4 sm:$0xff]   ;;  %v5257_v43 = vpack.c.bf16 %v30_v41, %v30_v41  ;;  %v4783_v44 = vld [vmem:[%s6887_s1 + $0x160] ss:$16 sps:$4 sm:$0xff]   ;;  %v5293_v55 = vpack.c.bf16 %v28_v53, %v28_v53  ;;  %v4836_v11 = vld [vmem:[%s6887_s1 + $0x128] ss:$16 sps:$4 sm:$0xff]  }
  0x16   :  { %v4785_v45 = vld [vmem:[%s6887_s1 + $0x184] ss:$16 sps:$4 sm:$0xff]   ;;  %v4789_v46 = vld [vmem:[%s6887_s1 + $0x180] ss:$16 sps:$4 sm:$0xff]   ;;  %v4841_v12 = vld [vmem:[%s6887_s1 + $0x14c] ss:$16 sps:$4 sm:$0xff]  }
  0x17   :  { %621 = vmatpush1.bf16.msra.mxu1 %v4754_v17  ;;  %v4791_v47 = vld [vmem:[%s6887_s1 + $0x1a4] ss:$16 sps:$4 sm:$0xff]   ;;  %v4795_v48 = vld [vmem:[%s6887_s1 + $0x1a0] ss:$16 sps:$4 sm:$0xff]   ;;  %v4839_v13 = vld [vmem:[%s6887_s1 + $0x148] ss:$16 sps:$4 sm:$0xff]  }
  0x18   :  { %622 = vmatprep.subr.bf16.mxu1 %v4755_v19  ;;  %660 = vmatpush1.bf16.msra.mxu0 %v4790_v26  ;;  %v4797_v49 = vld [vmem:[%s6887_s1 + $0x1c4] ss:$16 sps:$4 sm:$0xff]   ;;  %v4801_v50 = vld [vmem:[%s6887_s1 + $0x1c0] ss:$16 sps:$4 sm:$0xff]   ;;  %v4844_v14 = vld [vmem:[%s6887_s1 + $0x16c] ss:$16 sps:$4 sm:$0xff]  }
  0x19   :  { %661 = vmatprep.subr.bf16.mxu0 %v4793_v28  ;;  %v4803_v51 = vld [vmem:[%s6887_s1 + $0x1e4] ss:$16 sps:$4 sm:$0xff]   ;;  %v4807_v52 = vld [vmem:[%s6887_s1 + $0x1e0] ss:$16 sps:$4 sm:$0xff]   ;;  %v4842_v15 = vld [vmem:[%s6887_s1 + $0x168] ss:$16 sps:$4 sm:$0xff]  }
  0x1a   :  { %v4847_v16 = vld [vmem:[%s6887_s1 + $0x18c] ss:$16 sps:$4 sm:$0xff]   ;;  %v4845_v17 = vld [vmem:[%s6887_s1 + $0x188] ss:$16 sps:$4 sm:$0xff]   ;;  %v1118_v41 = vld [vmem:[%s6889_s2 + $0x400] sm:$0xff] }
  0x1b   :  { %623 = vmatpush1.bf16.msra.mxu1 %v4757_v21  ;;  %v4850_v18 = vld [vmem:[%s6887_s1 + $0x1ac] ss:$16 sps:$4 sm:$0xff]   ;;  %v4848_v19 = vld [vmem:[%s6887_s1 + $0x1a8] ss:$16 sps:$4 sm:$0xff]  }
  0x1c   :  { %624 = vmatprep.subr.bf16.mxu1 %v4758_v22  ;;  %662 = vmatpush1.bf16.msra.mxu0 %v4796_v30  ;;  %v4853_v20 = vld [vmem:[%s6887_s1 + $0x1cc] ss:$16 sps:$4 sm:$0xff]   ;;  %v4851_v21 = vld [vmem:[%s6887_s1 + $0x1c8] ss:$16 sps:$4 sm:$0xff]  }
  0x1d   :  { %663 = vmatprep.subr.bf16.mxu0 %v4799_v32  ;;  %v4856_v22 = vld [vmem:[%s6887_s1 + $0x1ec] ss:$16 sps:$4 sm:$0xff]   ;;  %v4854_v23 = vld [vmem:[%s6887_s1 + $0x1e8] ss:$16 sps:$4 sm:$0xff]  }
  0x1e   :  { %v4859_v24 = vld [vmem:[%s6887_s1 + $0x20c] ss:$16 sps:$4 sm:$0xff]   ;;  %v4869_v32 = vld [vmem:[%s6887_s1 + $0x288] ss:$16 sps:$4 sm:$0xff]  }
  0x1f   :  { %625 = vmatpush1.bf16.msra.mxu1 %v4760_v25  ;;  %v4857_v25 = vld [vmem:[%s6887_s1 + $0x208] ss:$16 sps:$4 sm:$0xff]   ;;  %v4862_v26 = vld [vmem:[%s6887_s1 + $0x22c] ss:$16 sps:$4 sm:$0xff]  }
  0x20   :  { %626 = vmatprep.subr.bf16.mxu1 %v4761_v27  ;;  %664 = vmatpush1.bf16.msra.mxu0 %v4802_v36  ;;  %v4860_v27 = vld [vmem:[%s6887_s1 + $0x228] ss:$16 sps:$4 sm:$0xff]   ;;  %v4865_v28 = vld [vmem:[%s6887_s1 + $0x24c] ss:$16 sps:$4 sm:$0xff]  }
  0x21   :  { %665 = vmatprep.subr.bf16.mxu0 %v4805_v38  ;;  %v4868_v30 = vld [vmem:[%s6887_s1 + $0x26c] ss:$16 sps:$4 sm:$0xff]   ;;  %v4875_v36 = vld [vmem:[%s6887_s1 + $0x2c8] ss:$16 sps:$4 sm:$0xff]  }
  0x22   :  { %v4874_v33 = vld [vmem:[%s6887_s1 + $0x2ac] ss:$16 sps:$4 sm:$0xff]   ;;  %v4878_v38 = vld [vmem:[%s6887_s1 + $0x2e8] ss:$16 sps:$4 sm:$0xff]  }
  0x23   :  { %627 = vmatpush1.bf16.msra.mxu1 %v4765_v29  ;;  %v4863_v29 = vld [vmem:[%s6887_s1 + $0x248] ss:$16 sps:$4 sm:$0xff]  }
  0x24   :  { %628 = vmatprep.subr.bf16.mxu1 %v4767_v31  ;;  %666 = vmatpush1.bf16.msra.mxu0 %v4808_v40  ;;  %v4871_v31 = vld [vmem:[%s6887_s1 + $0x28c] ss:$16 sps:$4 sm:$0xff]   ;;  %v994_v40 = vld [vmem:[%s6889_s2 + $0x20] sm:$0xff] }
  0x27   :  { %629 = vmatpush1.bf16.msra.mxu1 %v4771_v35  ;;  %684 = vmatmul.mubr.bf16.vlgmr.msra.gmra.mrb[0].mxu0 %v5257_v43  ;;  %v4877_v35 = vld [vmem:[%s6887_s1 + $0x2cc] ss:$16 sps:$4 sm:$0xff]  }
  0x28   :  { %630 = vmatprep.subr.bf16.mxu1 %v4773_v37  ;;  %v4880_v37 = vld [vmem:[%s6887_s1 + $0x2ec] ss:$16 sps:$4 sm:$0xff]  }
  0x2b   :  { %631 = vmatpush1.bf16.msra.mxu1 %v4777_v39  ;;  %v990_v39 = vld [vmem:[%s6889_s2] sm:$0xff] }
  0x2c   :  { %632 = vmatprep.subr.bf16.mxu1 %v4779_v42  ;;  %v4318_v42 = vcombine.high %v990_v39, %v994_v40 }
  0x2f   :  { %633 = vmatpush1.bf16.msra.mxu1 %v4783_v44  ;;  %v1122_v44 = vld [vmem:[%s6889_s2 + $0x420] sm:$0xff] }
  0x30   :  { %634 = vmatprep.subr.bf16.mxu1 %v4785_v45  ;;  %v4317_v45 = vcombine.low %v990_v39, %v994_v40  ;;  %v1174_v39 = vld [vmem:[%s6889_s2 + $0x5c0] sm:$0xff] }
  0x33   :  { %635 = vmatpush1.bf16.msra.mxu1 %v4789_v46  ;;  %v4445_v46 = vcombine.low %v1118_v41, %v1122_v44 }
  0x34   :  { %636 = vmatprep.subr.bf16.mxu1 %v4791_v47  ;;  %v998_v47 = vld [vmem:[%s6889_s2 + $0x40] sm:$0xff] }
  0x37   :  { %637 = vmatpush1.bf16.msra.mxu1 %v4795_v48  ;;  %v1002_v48 = vld [vmem:[%s6889_s2 + $0x60] sm:$0xff] }
  0x38   :  { %638 = vmatprep.subr.bf16.mxu1 %v4797_v49  ;;  %v1126_v49 = vld [vmem:[%s6889_s2 + $0x440] sm:$0xff] }
  0x3b   :  { %639 = vmatpush1.bf16.msra.mxu1 %v4801_v50  ;;  %v4326_v50 = vcombine.high %v998_v47, %v1002_v48 }
  0x3c   :  { %640 = vmatprep.subr.bf16.mxu1 %v4803_v51  ;;  %v1130_v51 = vld [vmem:[%s6889_s2 + $0x460] sm:$0xff] }
  0x3d   :  { %v4453_v53 = vcombine.low %v1126_v49, %v1130_v51 }
  0x3f   :  { %641 = vmatpush1.bf16.msra.mxu1 %v4807_v52  ;;  %v4325_v52 = vcombine.low %v998_v47, %v1002_v48  ;;  %v1054_v48 = vld [vmem:[%s6889_s2 + $0x200] sm:$0xff] }
  0x40   :  { %692 = vmatprep.subr.bf16.mxu1 %v4811_v54  ;;  %v4454_v54 = vcombine.high %v1126_v49, %v1130_v51  ;;  %v1058_v49 = vld [vmem:[%s6889_s2 + $0x220] sm:$0xff] }
  0x42   :  { %643 = vmatmul.mubr.bf16.vlgmr.msra.gmra.mrb[0].mxu1 %v5293_v55 }
  0x43   :  { %693 = vmatpush1.bf16.msra.mxu1 %v4809_v56  ;;  %724 = vmatprep.mubr.bf16.mxu1 %v32_v34  ;;  %v4872_v34 = vld [vmem:[%s6887_s1 + $0x2a8] ss:$16 sps:$4 sm:$0xff]   ;;  %v1010_v56 = vld [vmem:[%s6889_s2 + $0xa0] sm:$0xff] }
  0x44   :  { %694 = vmatprep.subr.bf16.mxu1 %v4814_v57  ;;  %v1134_v57 = vld [vmem:[%s6889_s2 + $0x480] sm:$0xff] }
  0x47   :  { %695 = vmatpush1.bf16.msra.mxu1 %v4812_v58 }
  0x48   :  { %696 = vmatprep.subr.bf16.mxu1 %v4817_v59  ;;  %v1138_v59 = vld [vmem:[%s6889_s2 + $0x4a0] sm:$0xff] }
  0x4b   :  { %697 = vmatpush1.bf16.msra.mxu1 %v4815_v60 }
  0x4c   :  { %698 = vmatprep.subr.bf16.mxu1 %v4820_v61  ;;  %v4461_v61 = vcombine.low %v1134_v57, %v1138_v59 }
  0x4f   :  { %699 = vmatpush1.bf16.msra.mxu1 %v4818_v62  ;;  %v4462_v62 = vcombine.high %v1134_v57, %v1138_v59  ;;  %v4381_v57 = vcombine.low %v1054_v48, %v1058_v49 }
  0x50   :  { %700 = vmatprep.subr.bf16.mxu1 %v4823_v63 }
  0x53   :  { %701 = vmatpush1.bf16.msra.mxu1 %v4821_v0 }
  0x54   :  { %702 = vmatprep.subr.bf16.mxu1 %v4826_v2  ;;  %v1014_v2 = vld [vmem:[%s6889_s2 + $0xc0] sm:$0xff] }
  0x57   :  { %703 = vmatpush1.bf16.msra.mxu1 %v4824_v3  ;;  %v1018_v3 = vld [vmem:[%s6889_s2 + $0xe0] sm:$0xff] }
  0x58   :  { %704 = vmatprep.subr.bf16.mxu1 %v4829_v4  ;;  %v1142_v4 = vld [vmem:[%s6889_s2 + $0x4c0] sm:$0xff] }
  0x5b   :  { %705 = vmatpush1.bf16.msra.mxu1 %v4827_v5 }
  0x5c   :  { %706 = vmatprep.subr.bf16.mxu1 %v4832_v6  ;;  %v4342_v6 = vcombine.high %v1014_v2, %v1018_v3 }
  0x5f   :  { %707 = vmatpush1.bf16.msra.mxu1 %v4830_v7  ;;  %v1146_v7 = vld [vmem:[%s6889_s2 + $0x4e0] sm:$0xff] }
  0x60   :  { %708 = vmatprep.subr.bf16.mxu1 %v4835_v8 }
  0x63   :  { %709 = vmatpush1.bf16.msra.mxu1 %v4833_v9  ;;  %v4341_v9 = vcombine.low %v1014_v2, %v1018_v3  ;;  %v1062_v2 = vld [vmem:[%s6889_s2 + $0x240] sm:$0xff] }
  0x64   :  { %710 = vmatprep.subr.bf16.mxu1 %v4838_v10  ;;  %v4469_v10 = vcombine.low %v1142_v4, %v1146_v7  ;;  %v1066_v3 = vld [vmem:[%s6889_s2 + $0x260] sm:$0xff] }
  0x67   :  { %711 = vmatpush1.bf16.msra.mxu1 %v4836_v11  ;;  %v4470_v11 = vcombine.high %v1142_v4, %v1146_v7  ;;  %v1190_v4 = vld [vmem:[%s6889_s2 + $0x640] sm:$0xff]  ;;  %v4390_v7 = vcombine.high %v1062_v2, %v1066_v3 }
  0x68   :  { %712 = vmatprep.subr.bf16.mxu1 %v4841_v12  ;;  %v1022_v12 = vld [vmem:[%s6889_s2 + $0x100] sm:$0xff] }
  0x6b   :  { %713 = vmatpush1.bf16.msra.mxu1 %v4839_v13  ;;  %v1026_v13 = vld [vmem:[%s6889_s2 + $0x120] sm:$0xff] }
  0x6c   :  { %714 = vmatprep.subr.bf16.mxu1 %v4844_v14  ;;  %v1150_v14 = vld [vmem:[%s6889_s2 + $0x500] sm:$0xff] }
  0x6f   :  { %715 = vmatpush1.bf16.msra.mxu1 %v4842_v15  ;;  %v4350_v15 = vcombine.high %v1022_v12, %v1026_v13 }
  0x70   :  { %716 = vmatprep.subr.bf16.mxu1 %v4847_v16  ;;  %v1154_v16 = vld [vmem:[%s6889_s2 + $0x520] sm:$0xff] }
  0x73   :  { %717 = vmatpush1.bf16.msra.mxu1 %v4845_v17  ;;  %v4349_v17 = vcombine.low %v1022_v12, %v1026_v13 }
  0x74   :  { %718 = vmatprep.subr.bf16.mxu1 %v4850_v18  ;;  %v4477_v18 = vcombine.low %v1150_v14, %v1154_v16 }
  0x77   :  { %719 = vmatpush1.bf16.msra.mxu1 %v4848_v19  ;;  %v4478_v19 = vcombine.high %v1150_v14, %v1154_v16 }
  0x78   :  { %720 = vmatprep.subr.bf16.mxu1 %v4853_v20  ;;  %v1030_v20 = vld [vmem:[%s6889_s2 + $0x140] sm:$0xff] }
  0x7b   :  { %721 = vmatpush1.bf16.msra.mxu1 %v4851_v21  ;;  %v1034_v21 = vld [vmem:[%s6889_s2 + $0x160] sm:$0xff] }
  0x7c   :  { %722 = vmatprep.subr.bf16.mxu1 %v4856_v22  ;;  %v1158_v22 = vld [vmem:[%s6889_s2 + $0x540] sm:$0xff] }
  0x7f   :  { %723 = vmatpush1.bf16.msra.mxu1 %v4854_v23  ;;  %v4358_v23 = vcombine.high %v1030_v20, %v1034_v21 }
  0x80   :  { %733 = vmatprep.subr.bf16.mxu1 %v4859_v24  ;;  %v1162_v24 = vld [vmem:[%s6889_s2 + $0x560] sm:$0xff] }
  0x82   :  { %725 = vmatmul.mubr.bf16.vlgmr.msra.gmra.mrb[4].mxu1 %v5293_v55  ;;  %v1006_v55 = vld [vmem:[%s6889_s2 + $0x80] sm:$0xff] }
  0x83   :  { %734 = vmatpush1.bf16.msra.mxu1 %v4857_v25  ;;  %765 = vmatprep.mubr.bf16.mxu1 %v5101_v1  ;;  %v4866_v1 = vld [vmem:[%s6887_s1 + $0x268] ss:$16 sps:$4 sm:$0xff]   ;;  %v4334_v58 = vcombine.high %v1006_v55, %v1010_v56  ;;  %v4333_v60 = vcombine.low %v1006_v55, %v1010_v56  ;;  %v4357_v25 = vcombine.low %v1030_v20, %v1034_v21 }
  0x84   :  { %735 = vmatprep.subr.bf16.mxu1 %v4862_v26  ;;  %v4485_v26 = vcombine.low %v1158_v22, %v1162_v24 }
  0x87   :  { %736 = vmatpush1.bf16.msra.mxu1 %v4860_v27  ;;  %v4486_v27 = vcombine.high %v1158_v22, %v1162_v24  ;;  %v1198_v22 = vld [vmem:[%s6889_s2 + $0x680] sm:$0xff] }
  0x88   :  { %737 = vmatprep.subr.bf16.mxu1 %v4865_v28  ;;  %v21_v28 = vlaneseq }
  0x8b   :  { %738 = vmatpush1.bf16.msra.mxu1 %v4863_v29  ;;  %v1038_v29 = vld [vmem:[%s6889_s2 + $0x180] sm:$0xff] }
  0x8c   :  { %739 = vmatprep.subr.bf16.mxu1 %v4868_v30  ;;  %v1042_v30 = vld [vmem:[%s6889_s2 + $0x1a0] sm:$0xff] }
  0x8f   :  { %740 = vmatpush1.bf16.msra.mxu1 %v4866_v1  ;;  %v1166_v1 = vld [vmem:[%s6889_s2 + $0x580] sm:$0xff] }
  0x90   :  { %741 = vmatprep.subr.bf16.mxu1 %v4871_v31  ;;  %v4366_v31 = vcombine.high %v1038_v29, %v1042_v30 }
  0x93   :  { %742 = vmatpush1.bf16.msra.mxu1 %v4869_v32  ;;  %v1170_v32 = vld [vmem:[%s6889_s2 + $0x5a0] sm:$0xff] }
  0x94   :  { %743 = vmatprep.subr.bf16.mxu1 %v4874_v33  ;;  %v4365_v33 = vcombine.low %v1038_v29, %v1042_v30 }
  0x97   :  { %744 = vmatpush1.bf16.msra.mxu1 %v4872_v34  ;;  %v4493_v34 = vcombine.low %v1166_v1, %v1170_v32 }
  0x98   :  { %745 = vmatprep.subr.bf16.mxu1 %v4877_v35  ;;  %v4494_v35 = vcombine.high %v1166_v1, %v1170_v32 }
  0x9b   :  { %746 = vmatpush1.bf16.msra.mxu1 %v4875_v36  ;;  %v5528_v36 = vshrl.u32 %v21_v28, 7 }
  0x9c   :  { %747 = vmatprep.subr.bf16.mxu1 %v4880_v37  ;;  %v1046_v37 = vld [vmem:[%s6889_s2 + $0x1c0] sm:$0xff] }
  0x9d   :  { %vm23_vm0 = vcmp.lt.s32.totalorder %v5528_v36, 2 }
  0x9f   :  { %748 = vmatpush1.bf16.msra.mxu1 %v4878_v38  ;;  %v1050_v38 = vld [vmem:[%s6889_s2 + $0x1e0] sm:$0xff] }
  0xa0   :  { %2526 = vmatprep.subr.bf16.mxu1 %v4318_v42  ;;  %v4374_v40 = vcombine.high %v1046_v37, %v1050_v38  ;;  %v4373_v42 = vcombine.low %v1046_v37, %v1050_v38 }
  0xa2   :  { %766 = vmatmul.mubr.bf16.vlgmr.msra.gmra.mrb[4].mxu1 %v5257_v43  ;;  %v4446_v43 = vcombine.high %v1118_v41, %v1122_v44  ;;  %v1178_v41 = vld [vmem:[%s6889_s2 + $0x5e0] sm:$0xff] }
  0xa3   :  { %2527 = vmatpush1.bf16.msra.mxu1 %v4317_v45  ;;  %v4501_v44 = vcombine.low %v1174_v39, %v1178_v41  ;;  %v4502_v45 = vcombine.high %v1174_v39, %v1178_v41 }
  0xa4   :  { %2567 = vmatprep.subr.bf16.mxu0 %v4446_v43  ;;  %2528 = vmatprep.subr.bf16.mxu1 %v4326_v50  ;;  %v1182_v50 = vld [vmem:[%s6889_s2 + $0x600] sm:$0xff] }
  0xa5   :  { %2568 = vmatpush1.bf16.msra.mxu0 %v4445_v46 }
  0xa6   :  { %2569 = vmatprep.subr.bf16.mxu0 %v4454_v54  ;;  %v1186_v54 = vld [vmem:[%s6889_s2 + $0x620] sm:$0xff] }
  0xa7   :  { %2529 = vmatpush1.bf16.msra.mxu1 %v4325_v52  ;;  %v4510_v59 = vcombine.high %v1182_v50, %v1186_v54 }
  0xa8   :  { %2530 = vmatprep.subr.bf16.mxu1 %v4334_v58  ;;  %v4509_v58 = vcombine.low %v1182_v50, %v1186_v54  ;;  %v1214_v54 = vld [vmem:[%s6889_s2 + $0x700] sm:$0xff] }
  0xa9   :  { %2570 = vmatpush1.bf16.msra.mxu0 %v4453_v53  ;;  %v4382_v53 = vcombine.high %v1054_v48, %v1058_v49 }
  0xaa   :  { %2571 = vmatprep.subr.bf16.mxu0 %v4462_v62 }
  0xab   :  { %2531 = vmatpush1.bf16.msra.mxu1 %v4333_v60 }
  0xac   :  { %2532 = vmatprep.subr.bf16.mxu1 %v4342_v6 }
  0xad   :  { %2572 = vmatpush1.bf16.msra.mxu0 %v4461_v61 }
  0xae   :  { %2573 = vmatprep.subr.bf16.mxu0 %v4470_v11  ;;  %v4389_v11 = vcombine.low %v1062_v2, %v1066_v3  ;;  %v1094_v3 = vld [vmem:[%s6889_s2 + $0x340] sm:$0xff] }
  0xaf   :  { %2533 = vmatpush1.bf16.msra.mxu1 %v4341_v9 }
  0xb0   :  { %2534 = vmatprep.subr.bf16.mxu1 %v4350_v15 }
  0xb1   :  { %2574 = vmatpush1.bf16.msra.mxu0 %v4469_v10 }
  0xb2   :  { %2575 = vmatprep.subr.bf16.mxu0 %v4478_v19  ;;  %v1074_v19 = vld [vmem:[%s6889_s2 + $0x2a0] sm:$0xff] }
  0xb3   :  { %2535 = vmatpush1.bf16.msra.mxu1 %v4349_v17 }
  0xb4   :  { %2536 = vmatprep.subr.bf16.mxu1 %v4358_v23  ;;  %v1202_v23 = vld [vmem:[%s6889_s2 + $0x6a0] sm:$0xff] }
  0xb5   :  { %2576 = vmatpush1.bf16.msra.mxu0 %v4477_v18  ;;  %v1070_v18 = vld [vmem:[%s6889_s2 + $0x280] sm:$0xff]  ;;  %v4526_v32 = vcombine.high %v1198_v22, %v1202_v23 }
  0xb6   :  { %2577 = vmatprep.subr.bf16.mxu0 %v4486_v27  ;;  %v4397_v28 = vcombine.low %v1070_v18, %v1074_v19  ;;  %v4398_v29 = vcombine.high %v1070_v18, %v1074_v19 }
  0xb7   :  { %2537 = vmatpush1.bf16.msra.mxu1 %v4357_v25 }
  0xb8   :  { %2538 = vmatprep.subr.bf16.mxu1 %v4366_v31  ;;  %v4525_v31 = vcombine.low %v1198_v22, %v1202_v23  ;;  %v1114_v22 = vld [vmem:[%s6889_s2 + $0x3e0] sm:$0xff] }
  0xb9   :  { %2578 = vmatpush1.bf16.msra.mxu0 %v4485_v26  ;;  %v1238_v23 = vld [vmem:[%s6889_s2 + $0x7c0] sm:$0xff] }
  0xba   :  { %2579 = vmatprep.subr.bf16.mxu0 %v4494_v35  ;;  %v1206_v35 = vld [vmem:[%s6889_s2 + $0x6c0] sm:$0xff] }
  0xbb   :  { %2539 = vmatpush1.bf16.msra.mxu1 %v4365_v33  ;;  %v1078_v33 = vld [vmem:[%s6889_s2 + $0x2c0] sm:$0xff] }
  0xbc   :  { %2540 = vmatprep.subr.bf16.mxu1 %v4374_v40  ;;  %v1210_v40 = vld [vmem:[%s6889_s2 + $0x6e0] sm:$0xff] }
  0xbd   :  { %2580 = vmatpush1.bf16.msra.mxu0 %v4493_v34  ;;  %v1082_v34 = vld [vmem:[%s6889_s2 + $0x2e0] sm:$0xff]  ;;  %v4534_v48 = vcombine.high %v1206_v35, %v1210_v40 }
  0xbe   :  { %2581 = vmatprep.subr.bf16.mxu0 %v4502_v45  ;;  %v4406_v39 = vcombine.high %v1078_v33, %v1082_v34 }
  0xbf   :  { %2541 = vmatpush1.bf16.msra.mxu1 %v4373_v42 }
  0xc0   :  { %2542 = vmatprep.subr.bf16.mxu1 %v4382_v53  ;;  %v1090_v53 = vld [vmem:[%s6889_s2 + $0x320] sm:$0xff] }
  0xc1   :  { %2582 = vmatpush1.bf16.msra.mxu0 %v4501_v44  ;;  %v4405_v44 = vcombine.low %v1078_v33, %v1082_v34  ;;  %v5681_v33 = vld [vmem:[%s6889_s2 + $0x30] sm:$0xff] }
  0xc2   :  { %2583 = vmatprep.subr.bf16.mxu0 %v4510_v59 }
  0xc3   :  { %2543 = vmatpush1.bf16.msra.mxu1 %v4381_v57 }
  0xc4   :  { %2544 = vmatprep.subr.bf16.mxu1 %v4390_v7 }
  0xc5   :  { %2584 = vmatpush1.bf16.msra.mxu0 %v4509_v58  ;;  %v1218_v58 = vld [vmem:[%s6889_s2 + $0x720] sm:$0xff] }
  0xc7   :  { %2545 = vmatpush1.bf16.msra.mxu1 %v4389_v11 }
  0xc8   :  { %2546 = vmatprep.subr.bf16.mxu1 %v4398_v29  ;;  %v5662_v29 = vld [vmem:[%s6889_s2 + $0x8] sm:$0xff] }
  0xcb   :  { %2547 = vmatpush1.bf16.msra.mxu1 %v4397_v28 }
  0xcc   :  { %2548 = vmatprep.subr.bf16.mxu1 %v4406_v39 }
  0xcf   :  { %2549 = vmatpush1.bf16.msra.mxu1 %v4405_v44 }
  0xfa   :  { %v5476_v63 = vpop.f32.mrb[0].mxu0 }
  0xfb   :  { %v5478_v0 = vpop.f32.mrb[1].mxu0 }
  0xfc   :  { %v689_v5 = vpop.f32.mrb[2].mxu0 }
  0xfd   :  { %v690_v8 = vpop.f32.mrb[3].mxu0 }
  0xfe   :  { %v1194_v8 = vld [vmem:[%s6889_s2 + $0x660] sm:$0xff] }
  0xff   :  { %v4517_v12 = vcombine.low %v1190_v4, %v1194_v8  ;;  %v4518_v15 = vcombine.high %v1190_v4, %v1194_v8  ;;  %v1098_v4 = vld [vmem:[%s6889_s2 + $0x360] sm:$0xff] }
 0x100   :  { %v4422_v7 = vcombine.high %v1094_v3, %v1098_v4  ;;  %v1226_v8 = vld [vmem:[%s6889_s2 + $0x760] sm:$0xff] }
 0x101   :  { %2585 = vmatprep.subr.bf16.mxu0 %v4518_v15  ;;  %v1230_v15 = vld [vmem:[%s6889_s2 + $0x780] sm:$0xff] }
 0x102   :  { %2586 = vmatpush1.bf16.msra.mxu0 %v4517_v12 }
 0x103   :  { %2587 = vmatprep.subr.bf16.mxu0 %v4526_v32 }
 0x106   :  { %2588 = vmatpush1.bf16.msra.mxu0 %v4525_v31 }
 0x107   :  { %2589 = vmatprep.subr.bf16.mxu0 %v4534_v48 }
 0x115   :  { %v644_v46 = vpop.f32.mrb[0].mxu1 }
 0x116   :  { %v5544_v43 = vadd.f32 %v5476_v63, %v644_v46  ;;  %v646_v47 = vpop.f32.mrb[1].mxu1 }
 0x117   :  { %v5556_v51 = vadd.f32 %v5478_v0, %v646_v47  ;;  %v648_v52 = vpop.f32.mrb[2].mxu1  ;;  %v4533_v47 = vcombine.low %v1206_v35, %v1210_v40 }
 0x118   :  { %v776_v55 = vsel %vm23_vm0, %v5544_v43, 0.0  ;;  %v649_v56 = vpop.f32.mrb[3].mxu1  ;;  %v1086_v52 = vld [vmem:[%s6889_s2 + $0x300] sm:$0xff] }
 0x119   :  { %v780_v60 = vrot.slane %v776_v55, 4  ;;  %v809_v61 = vmul.f32 %v776_v55, %v776_v55  ;;  %v777_v62 = vsel %vm23_vm0, %v5556_v51, 0.0  ;;  %v4414_v57 = vcombine.high %v1086_v52, %v1090_v53  ;;  %2590 = vmatpush1.bf16.msra.mxu0 %v4533_v47 }
 0x11a   :  { %v786_v63 = vrot.slane %v777_v62, 4  ;;  %v810_v0 = vmul.f32 %v777_v62, %v777_v62 }
 0x11b   :  { %v781_v5 = vadd.f32 %v780_v60, %v776_v55  ;;  %v813_v6 = vrot.slane %v809_v61, 4  ;;  %2550 = vmatprep.subr.bf16.mxu1 %v4414_v57 }
 0x11c   :  { %v787_v9 = vadd.f32 %v786_v63, %v777_v62  ;;  %v819_v10 = vrot.slane %v810_v0, 4  ;;  %v4541_v63 = vcombine.low %v1214_v54, %v1218_v58 }
 0x11d   :  { %v782_v13 = vrot.slane %v781_v5, 2  ;;  %v814_v14 = vadd.f32 %v813_v6, %v809_v61  ;;  %v4413_v61 = vcombine.low %v1086_v52, %v1090_v53 }
 0x11e   :  { %v788_v16 = vrot.slane %v787_v9, 2  ;;  %v820_v17 = vadd.f32 %v819_v10, %v810_v0  ;;  %v4542_v0 = vcombine.high %v1214_v54, %v1218_v58  ;;  %v4421_v10 = vcombine.low %v1094_v3, %v1098_v4 }
 0x11f   :  { %v783_v20 = vadd.f32 %v782_v13, %v781_v5  ;;  %v815_v21 = vrot.slane %v814_v14, 2  ;;  %v1222_v5 = vld [vmem:[%s6889_s2 + $0x740] sm:$0xff]  ;;  %2551 = vmatpush1.bf16.msra.mxu1 %v4413_v61 }
 0x120   :  { %v789_v24 = vadd.f32 %v788_v16, %v787_v9  ;;  %v821_v25 = vrot.slane %v820_v17, 2  ;;  %2591 = vmatprep.subr.bf16.mxu0 %v4542_v0  ;;  %v4550_v11 = vcombine.high %v1222_v5, %v1226_v8  ;;  %2552 = vmatprep.subr.bf16.mxu1 %v4422_v7  ;;  %v4549_v12 = vcombine.low %v1222_v5, %v1226_v8  ;;  %v1102_v13 = vld [vmem:[%s6889_s2 + $0x380] sm:$0xff] }
 0x121   :  { %v784_v26 = vrot.slane %v783_v20, 1  ;;  %v816_v27 = vadd.f32 %v815_v21, %v814_v14  ;;  %2592 = vmatpush1.bf16.msra.mxu0 %v4541_v63  ;;  %v1106_v14 = vld [vmem:[%s6889_s2 + $0x3a0] sm:$0xff] }
 0x122   :  { %v790_v30 = vrot.slane %v789_v24, 1  ;;  %v822_v1 = vadd.f32 %v821_v25, %v820_v17  ;;  %2593 = vmatprep.subr.bf16.mxu0 %v4550_v11  ;;  %v4430_v16 = vcombine.high %v1102_v13, %v1106_v14  ;;  %v1234_v17 = vld [vmem:[%s6889_s2 + $0x7a0] sm:$0xff]  ;;  %v4429_v18 = vcombine.low %v1102_v13, %v1106_v14 }
 0x123   :  { %v785_v37 = vadd.f32 %v784_v26, %v783_v20  ;;  %v817_v38 = vrot.slane %v816_v27, 1  ;;  %2553 = vmatpush1.bf16.msra.mxu1 %v4421_v10  ;;  %v4558_v19 = vcombine.high %v1230_v15, %v1234_v17  ;;  %v4557_v20 = vcombine.low %v1230_v15, %v1234_v17  ;;  %v1110_v21 = vld [vmem:[%s6889_s2 + $0x3c0] sm:$0xff] }
 0x124   :  { %v791_v41 = vadd.f32 %v790_v30, %v789_v24  ;;  %v823_v42 = vrot.slane %v822_v1, 1  ;;  %2554 = vmatprep.subr.bf16.mxu1 %v4430_v16  ;;  %v4438_v24 = vcombine.high %v1110_v21, %v1114_v22  ;;  %v1242_v25 = vld [vmem:[%s6889_s2 + $0x7e0] sm:$0xff]  ;;  %v4437_v26 = vcombine.low %v1110_v21, %v1114_v22  ;;  %v5667_v30 = vld [vmem:[%s6889_s2 + $0x28] sm:$0xff] }
 0x125   :  { %v5603_v45 = vmul.f32 0.5, %v785_v37  ;;  %v818_v46 = vadd.f32 %v817_v38, %v816_v27  ;;  %2594 = vmatpush1.bf16.msra.mxu0 %v4549_v12  ;;  %v4566_v27 = vcombine.high %v1238_v23, %v1242_v25  ;;  %v4565_v28 = vcombine.low %v1238_v23, %v1242_v25 }
 0x126   :  { %v5605_v49 = vmul.f32 0.5, %v791_v41  ;;  %v824_v50 = vadd.f32 %v823_v42, %v822_v1  ;;  %2595 = vmatprep.subr.bf16.mxu0 %v4558_v19  ;;  %v5672_v1 = vld [vmem:[%s6889_s2 + $0x10] sm:$0xff]  ;;  %v4320_v32 = vcombine.high %v5662_v29, %v5667_v30  ;;  %v4319_v35 = vcombine.low %v5662_v29, %v5667_v30  ;;  %v1019_v29 = vld [vmem:[%s6889_s2 + $0xe8] sm:$0xff] }
 0x127   :  { %v837_v55 = vmul.f32 0.5, %v818_v46  ;;  %v841_v56 = vmul.f32 %v5603_v45, %v5603_v45  ;;  %2555 = vmatpush1.bf16.msra.mxu1 %v4429_v18  ;;  %v4321_v37 = vcombine.low %v5672_v1, %v5681_v33  ;;  %v4322_v38 = vcombine.high %v5672_v1, %v5681_v33  ;;  %v1016_v30 = vld [vmem:[%s6889_s2 + $0xd0] sm:$0xff] }
 0x128   :  { %v838_v59 = vmul.f32 0.5, %v824_v50  ;;  %v842_v60 = vmul.f32 %v5605_v49, %v5605_v49  ;;  %2556 = vmatprep.subr.bf16.mxu1 %v4438_v24  ;;  %v5102_v23 = vmov 1966171168   ;;  %v1020_v1 = vld [vmem:[%s6889_s2 + $0xf0] sm:$0xff] }
 0x129   :  { %v845_v62 = vsub.f32 %v837_v55, %v841_v56  ;;  %2596 = vmatpush1.bf16.msra.mxu0 %v4557_v20  ;;  %v864_v24 = vunpack.c.l.s4 %v5102_v23 }
 0x12a   :  { %v846_v2 = vsub.f32 %v838_v59, %v842_v60  ;;  %2597 = vmatprep.subr.bf16.mxu0 %v4566_v27 }
 0x12b   :  { %v849_v6 = vadd.f32 0.8, %v845_v62  ;;  %2557 = vmatpush1.bf16.msra.mxu1 %v4437_v26  ;;  %v865_v25 = vunpack.c.0.s8 %v864_v24 }
 0x12c   :  { %v850_v9 = vadd.f32 0.8, %v846_v2  ;;  %2608 = vmatprep.subr.bf16.mxu1 %v4320_v32 }
 0x12d   :  { %5073 = vrsqrt.f32 %v849_v6  ;;  %2598 = vmatpush1.bf16.msra.mxu0 %v4565_v28  ;;  %v5701_v27 = vsub.s32 %v865_v25, %v5528_v36 }
 0x12e   :  { %5075 = vrsqrt.f32 %v850_v9  ;;  %2690 = vmatprep.subr.bf16.mxu0 %v4322_v38 }
 0x137   :  { %v5674_v31 = vpop.eup %5073 }
 0x138   :  { %v5076_v34 = vpop.eup %5075 }
 0x139   :  { %v861_v39 = vcombine.low %v5674_v31, %v5076_v34 }
 0x13b   :  { %v869_v32 = vrot.slane %v861_v39, %v5701_v27  ;;  %v5719_v39 = vsub.s32 3, %v5528_v36 }
 0x175   :  { %v5690_v40 = vpop.f32.mrb[4].mxu1 }
 0x176   :  { %v778_v41 = vsel %vm23_vm0, %v5690_v40, 0.0  ;;  %v5695_v42 = vpop.f32.mrb[5].mxu1 }
 0x177   :  { %v792_v44 = vrot.slane %v778_v41, 4  ;;  %v811_v46 = vmul.f32 %v778_v41, %v778_v41  ;;  %v779_v47 = vsel %vm23_vm0, %v5695_v42, 0.0  ;;  %v771_v48 = vpop.f32.mrb[6].mxu1 }
 0x178   :  { %v798_v50 = vrot.slane %v779_v47, 4  ;;  %v812_v52 = vmul.f32 %v779_v47, %v779_v47  ;;  %v772_v53 = vpop.f32.mrb[7].mxu1  ;;  %v5716_v48 = vsub.s32 2, %v5528_v36 }
 0x179   :  { %v793_v54 = vadd.f32 %v792_v44, %v778_v41  ;;  %v825_v55 = vrot.slane %v811_v46, 4  ;;  %v24_v41 = vld [vmem:[%s6890_s4] sm:$0xff]  ;;  %v5709_v44 = vsub.s32 0, %v5528_v36 }
 0x17a   :  { %v799_v56 = vadd.f32 %v798_v50, %v779_v47  ;;  %v831_v57 = vrot.slane %v812_v52, 4  ;;  %v5713_v47 = vsub.s32 1, %v5528_v36 }
 0x17b   :  { %v794_v58 = vrot.slane %v793_v54, 2  ;;  %v826_v59 = vadd.f32 %v825_v55, %v811_v46 }
 0x17c   :  { %v800_v60 = vrot.slane %v799_v56, 2  ;;  %v832_v61 = vadd.f32 %v831_v57, %v812_v52 }
 0x17d   :  { %v795_v62 = vadd.f32 %v794_v58, %v793_v54  ;;  %v827_v63 = vrot.slane %v826_v59, 2 }
 0x17e   :  { %v801_v0 = vadd.f32 %v800_v60, %v799_v56  ;;  %v833_v2 = vrot.slane %v832_v61, 2 }
 0x17f   :  { %v796_v3 = vrot.slane %v795_v62, 1  ;;  %v828_v4 = vadd.f32 %v827_v63, %v826_v59 }
 0x180   :  { %v802_v5 = vrot.slane %v801_v0, 1  ;;  %v834_v6 = vadd.f32 %v833_v2, %v832_v61 }
 0x181   :  { %v797_v7 = vadd.f32 %v796_v3, %v795_v62  ;;  %v829_v8 = vrot.slane %v828_v4, 1 }
 0x182   :  { %v803_v9 = vadd.f32 %v802_v5, %v801_v0  ;;  %v835_v10 = vrot.slane %v834_v6, 1  ;;  %v917_v5 = vrot.slane %v24_v41, 4 }
 0x183   :  { %v807_v11 = vmul.f32 0.5, %v797_v7  ;;  %v830_v12 = vadd.f32 %v829_v8, %v828_v4 }
 0x184   :  { %v808_v13 = vmul.f32 0.5, %v803_v9  ;;  %v836_v14 = vadd.f32 %v835_v10, %v834_v6 }
 0x185   :  { %v839_v15 = vmul.f32 0.5, %v830_v12  ;;  %v843_v16 = vmul.f32 %v807_v11, %v807_v11 }
 0x186   :  { %v840_v17 = vmul.f32 0.5, %v836_v14  ;;  %v844_v18 = vmul.f32 %v808_v13, %v808_v13 }
 0x187   :  { %v847_v19 = vsub.f32 %v839_v15, %v843_v16 }
 0x188   :  { %v848_v20 = vsub.f32 %v840_v17, %v844_v18  ;;  %v1003_v18 = vld [vmem:[%s6889_s2 + $0x68] sm:$0xff] }
 0x189   :  { %v851_v21 = vadd.f32 0.8, %v847_v19  ;;  %v1000_v19 = vld [vmem:[%s6889_s2 + $0x50] sm:$0xff] }
 0x18a   :  { %v852_v22 = vadd.f32 0.8, %v848_v20  ;;  %v1004_v20 = vld [vmem:[%s6889_s2 + $0x70] sm:$0xff] }
 0x18b   :  { %5077 = vrsqrt.f32 %v851_v21 }
 0x18c   :  { %5079 = vrsqrt.f32 %v852_v22 }
 0x195   :  { %v5078_v26 = vpop.eup %5077 }
 0x196   :  { %v5080_v28 = vpop.eup %5079 }
 0x197   :  { %v862_v31 = vcombine.low %v5078_v26, %v5080_v28  ;;  %v1007_v28 = vld [vmem:[%s6889_s2 + $0x88] sm:$0xff] }
 0x199   :  { %v876_v34 = vrot.slane %v862_v31, %v5701_v27 }
 0x19b   :  { %v877_v38 = vcombine.low %v869_v32, %v876_v34  ;;  %v4330_v32 = vcombine.high %v1000_v19, %v1004_v20  ;;  %v1011_v34 = vld [vmem:[%s6889_s2 + $0xa8] sm:$0xff] }
 0x19c   :  { %v4335_v33 = vcombine.low %v1007_v28, %v1011_v34 }
 0x19d   :  { %v884_v46 = vrot.slane %v877_v38, %v5701_v27  ;;  %v1008_v38 = vld [vmem:[%s6889_s2 + $0x90] sm:$0xff] }
 0x19f   :  { %v886_v50 = vmul.f32 %v884_v46, %v24_v41  ;;  %v1012_v41 = vld [vmem:[%s6889_s2 + $0xb0] sm:$0xff] }
 0x1a1   :  { %v891_v52 = vrot.slane %v886_v50, %v5709_v44  ;;  %v895_v53 = vrot.slane %v886_v50, %v5713_v47  ;;  %v899_v54 = vrot.slane %v886_v50, %v5716_v48  ;;  %v903_v55 = vrot.slane %v886_v50, %v5719_v39 }
 0x1a2   :  { %v4329_v50 = vcombine.low %v1000_v19, %v1004_v20  ;;  %v1055_v19 = vld [vmem:[%s6889_s2 + $0x208] sm:$0xff] }
 0x1a3   :  { %v910_v56 = vmul.f32 %v899_v54, %v5690_v40  ;;  %v911_v57 = vmul.f32 %v903_v55, %v5695_v42  ;;  %v912_v58 = vmul.f32 %v891_v52, %v5603_v45  ;;  %v913_v59 = vmul.f32 %v895_v53, %v5605_v49  ;;  %v1059_v20 = vld [vmem:[%s6889_s2 + $0x228] sm:$0xff] }
 0x1a4   :  { %v914_v60 = vmul.f32 %v899_v54, %v807_v11  ;;  %v915_v61 = vmul.f32 %v903_v55, %v808_v13  ;;  %v909_v62 = vmul.f32 %v895_v53, %v5556_v51  ;;  %v908_v63 = vmul.f32 %v891_v52, %v5544_v43  ;;  %v999_v13 = vld [vmem:[%s6889_s2 + $0x48] sm:$0xff] }
 0x1a5   :  { %v923_v0 = vcombine.low %v912_v58, %v913_v59  ;;  %v4328_v31 = vcombine.high %v999_v13, %v1003_v18  ;;  %v4327_v46 = vcombine.low %v999_v13, %v1003_v18  ;;  %v4336_v52 = vcombine.high %v1007_v28, %v1011_v34  ;;  %v1015_v54 = vld [vmem:[%s6889_s2 + $0xc8] sm:$0xff]  ;;  %v1024_v58 = vld [vmem:[%s6889_s2 + $0x110] sm:$0xff] }
 0x1a6   :  { %v924_v2 = vcombine.low %v914_v60, %v915_v61  ;;  %v4338_v53 = vcombine.high %v1008_v38, %v1012_v41  ;;  %v4346_v55 = vcombine.high %v1016_v30, %v1020_v1  ;;  %v1028_v59 = vld [vmem:[%s6889_s2 + $0x130] sm:$0xff]  ;;  %v4343_v60 = vcombine.low %v1015_v54, %v1019_v29 }
 0x1a7   :  { %v931_v3 = vrot.slane %v923_v0, %v5701_v27  ;;  %v4345_v61 = vcombine.low %v1016_v30, %v1020_v1  ;;  %v1031_v0 = vld [vmem:[%s6889_s2 + $0x148] sm:$0xff]  ;;  %v1048_v13 = vld [vmem:[%s6889_s2 + $0x1d0] sm:$0xff] }
 0x1a8   :  { %v938_v4 = vrot.slane %v924_v2, %v5701_v27  ;;  %v1035_v2 = vld [vmem:[%s6889_s2 + $0x168] sm:$0xff] }
 0x1a9   :  { %v1071_v30 = vld [vmem:[%s6889_s2 + $0x288] sm:$0xff] }
 0x1aa   :  { %v939_v40 = vcombine.low %v931_v3, %v938_v4  ;;  %v1032_v3 = vld [vmem:[%s6889_s2 + $0x150] sm:$0xff]  ;;  %v1075_v1 = vld [vmem:[%s6889_s2 + $0x2a8] sm:$0xff] }
 0x1ab   :  { %v1036_v4 = vld [vmem:[%s6889_s2 + $0x170] sm:$0xff] }
 0x1ac   :  { %v946_v42 = vrot.slane %v939_v40, %v5701_v27  ;;  %v4353_v40 = vcombine.low %v1024_v58, %v1028_v59 }
 0x1ae   :  { %v948_v6 = vsub.f32 %v917_v5, %v946_v42  ;;  %v4360_v42 = vcombine.high %v1031_v0, %v1035_v2 }
 0x1b0   :  { %v965_v45 = vrot.slane %v948_v6, %v5719_v39  ;;  %v957_v49 = vrot.slane %v948_v6, %v5713_v47  ;;  %v953_v7 = vrot.slane %v948_v6, %v5709_v44  ;;  %v961_v51 = vrot.slane %v948_v6, %v5716_v48 }
 0x1b1   :  { %v4362_v6 = vcombine.high %v1032_v3, %v1036_v4 }
 0x1b2   :  { %v973_v43 = vadd.f32 %v965_v45, %v911_v57  ;;  %v971_v8 = vadd.f32 %v957_v49, %v909_v62  ;;  %v970_v9 = vadd.f32 %v953_v7, %v908_v63  ;;  %v972_v10 = vadd.f32 %v961_v51, %v910_v56  ;;  %v1023_v56 = vld [vmem:[%s6889_s2 + $0x108] sm:$0xff]  ;;  %v1040_v7 = vld [vmem:[%s6889_s2 + $0x190] sm:$0xff] }
 0x1b3   :  { %v1027_v57 = vld [vmem:[%s6889_s2 + $0x128] sm:$0xff]  ;;  %v4354_v63 = vcombine.high %v1024_v58, %v1028_v59  ;;  %v1044_v51 = vld [vmem:[%s6889_s2 + $0x1b0] sm:$0xff] }
 0x1b4   :  { %vm977_vm1 = vcmp.ge.f32.partialorder %v973_v43, 0.0  ;;  %v981_v11 = vmul.f32 0.2, %v973_v43  ;;  %vm975_vm2 = vcmp.ge.f32.partialorder %v971_v8, 0.0  ;;  %v979_v12 = vmul.f32 0.2, %v971_v8 }
 0x1b5   :  { %vm974_vm3 = vcmp.ge.f32.partialorder %v970_v9, 0.0  ;;  %v978_v14 = vmul.f32 0.2, %v970_v9  ;;  %vm976_vm4 = vcmp.ge.f32.partialorder %v972_v10, 0.0  ;;  %v980_v15 = vmul.f32 0.2, %v972_v10 }
 0x1b6   :  { %v983_v16 = vsel %vm975_vm2, %v971_v8, %v979_v12  ;;  %v985_v17 = vsel %vm977_vm1, %v973_v43, %v981_v11  ;;  %v4352_v62 = vcombine.high %v1023_v56, %v1027_v57  ;;  %v4351_v5 = vcombine.low %v1023_v56, %v1027_v57  ;;  %v1039_v45 = vld [vmem:[%s6889_s2 + $0x188] sm:$0xff] }
 0x1b7   :  { %v5750_v21 = vpack.c.bf16 %v983_v16, %v983_v16  ;;  %v5752_v22 = vpack.c.bf16 %v985_v17, %v985_v17  ;;  %v982_v23 = vsel %vm974_vm3, %v970_v9, %v978_v14  ;;  %v984_v24 = vsel %vm976_vm4, %v972_v10, %v980_v15  ;;  %v1043_v49 = vld [vmem:[%s6889_s2 + $0x1a8] sm:$0xff]  ;;  %v1052_v14 = vld [vmem:[%s6889_s2 + $0x1f0] sm:$0xff] }
 0x1b8   :  { %v5754_v25 = vpack.c.bf16 %v982_v23, %v982_v23  ;;  %v5756_v26 = vpack.c.bf16 %v984_v24, %v984_v24  ;;  %v4359_v43 = vcombine.low %v1031_v0, %v1035_v2  ;;  %v4361_v8 = vcombine.low %v1032_v3, %v1036_v4  ;;  %v1047_v11 = vld [vmem:[%s6889_s2 + $0x1c8] sm:$0xff]  ;;  %v1056_v23 = vld [vmem:[%s6889_s2 + $0x210] sm:$0xff] }
 0x1b9   :  { %2558 = vmatprep.mubr.bf16.mxu1 %v5750_v21  ;;  %2599 = vmatprep.mubr.bf16.mxu0 %v5752_v22  ;;  %v4368_v9 = vcombine.high %v1039_v45, %v1043_v49  ;;  %v4370_v10 = vcombine.high %v1040_v7, %v1044_v51  ;;  %v1051_v12 = vld [vmem:[%s6889_s2 + $0x1e8] sm:$0xff]  ;;  %v4367_v15 = vcombine.low %v1039_v45, %v1043_v49  ;;  %v1060_v24 = vld [vmem:[%s6889_s2 + $0x230] sm:$0xff] }
 0x1ba   :  { %2559 = vmatmul.mubr.bf16.vlgmr.msra.gmra.mrb[8].mxu1 %v5754_v25  ;;  %2600 = vmatmul.mubr.bf16.vlgmr.msra.gmra.mrb[4].mxu0 %v5756_v26  ;;  %v4369_v16 = vcombine.low %v1040_v7, %v1044_v51  ;;  %v4376_v17 = vcombine.high %v1047_v11, %v1051_v12  ;;  %v4378_v18 = vcombine.high %v1048_v13, %v1052_v14  ;;  %v1079_v58 = vld [vmem:[%s6889_s2 + $0x2c8] sm:$0xff] }
 0x1bb   :  { %2609 = vmatpush1.bf16.msra.mxu1 %v4319_v35  ;;  %2691 = vmatpush1.bf16.msra.mxu0 %v4321_v37  ;;  %v4337_v35 = vcombine.low %v1008_v38, %v1012_v41  ;;  %v4344_v37 = vcombine.high %v1015_v54, %v1019_v29  ;;  %v4375_v28 = vcombine.low %v1047_v11, %v1051_v12  ;;  %v1063_v38 = vld [vmem:[%s6889_s2 + $0x248] sm:$0xff] }
 0x1bc   :  { %2640 = vmatprep.mubr.bf16.mxu1 %v5750_v21  ;;  %2722 = vmatprep.mubr.bf16.mxu0 %v5750_v21  ;;  %v4386_v34 = vcombine.high %v1056_v23, %v1060_v24  ;;  %v1067_v41 = vld [vmem:[%s6889_s2 + $0x268] sm:$0xff]  ;;  %v4400_v56 = vcombine.high %v1071_v30, %v1075_v1 }
 0x1bd   :  { %2610 = vmatprep.subr.bf16.mxu1 %v4328_v31  ;;  %2692 = vmatprep.subr.bf16.mxu0 %v4330_v32  ;;  %v4377_v31 = vcombine.low %v1048_v13, %v1052_v14  ;;  %v4384_v32 = vcombine.high %v1055_v19, %v1059_v20  ;;  %v4392_v54 = vcombine.high %v1063_v38, %v1067_v41  ;;  %v1083_v59 = vld [vmem:[%s6889_s2 + $0x2e8] sm:$0xff] }
 0x1be   :  { %v4408_v0 = vcombine.high %v1079_v58, %v1083_v59  ;;  %v1087_v3 = vld [vmem:[%s6889_s2 + $0x308] sm:$0xff] }
 0x1bf   :  { %2611 = vmatpush1.bf16.msra.mxu1 %v4327_v46  ;;  %2693 = vmatpush1.bf16.msra.mxu0 %v4329_v50  ;;  %v1064_v46 = vld [vmem:[%s6889_s2 + $0x250] sm:$0xff]  ;;  %v1091_v4 = vld [vmem:[%s6889_s2 + $0x328] sm:$0xff] }
 0x1c0   :  { %2612 = vmatprep.subr.bf16.mxu1 %v4336_v52  ;;  %2694 = vmatprep.subr.bf16.mxu0 %v4338_v53  ;;  %v1068_v50 = vld [vmem:[%s6889_s2 + $0x270] sm:$0xff]  ;;  %v4383_v52 = vcombine.low %v1055_v19, %v1059_v20  ;;  %v4385_v53 = vcombine.low %v1056_v23, %v1060_v24  ;;  %v4416_v45 = vcombine.high %v1087_v3, %v1091_v4  ;;  %v1095_v7 = vld [vmem:[%s6889_s2 + $0x348] sm:$0xff] }
 0x1c1   :  { %v4394_v29 = vcombine.high %v1064_v46, %v1068_v50  ;;  %v1099_v51 = vld [vmem:[%s6889_s2 + $0x368] sm:$0xff] }
 0x1c2   :  { %v4424_v11 = vcombine.high %v1095_v7, %v1099_v51  ;;  %v1103_v13 = vld [vmem:[%s6889_s2 + $0x388] sm:$0xff] }
 0x1c3   :  { %2613 = vmatpush1.bf16.msra.mxu1 %v4335_v33  ;;  %2695 = vmatpush1.bf16.msra.mxu0 %v4337_v35  ;;  %v1072_v33 = vld [vmem:[%s6889_s2 + $0x290] sm:$0xff]  ;;  %v1107_v14 = vld [vmem:[%s6889_s2 + $0x3a8] sm:$0xff] }
 0x1c4   :  { %2614 = vmatprep.subr.bf16.mxu1 %v4344_v37  ;;  %2696 = vmatprep.subr.bf16.mxu0 %v4346_v55  ;;  %v1076_v35 = vld [vmem:[%s6889_s2 + $0x2b0] sm:$0xff]  ;;  %v4391_v37 = vcombine.low %v1063_v38, %v1067_v41  ;;  %v4393_v55 = vcombine.low %v1064_v46, %v1068_v50  ;;  %v4432_v19 = vcombine.high %v1103_v13, %v1107_v14  ;;  %v1111_v23 = vld [vmem:[%s6889_s2 + $0x3c8] sm:$0xff] }
 0x1c5   :  { %v4402_v57 = vcombine.high %v1072_v33, %v1076_v35  ;;  %v1115_v24 = vld [vmem:[%s6889_s2 + $0x3e8] sm:$0xff] }
 0x1c6   :  { %v4440_v38 = vcombine.high %v1111_v23, %v1115_v24  ;;  %v1119_v46 = vld [vmem:[%s6889_s2 + $0x408] sm:$0xff] }
 0x1c7   :  { %2615 = vmatpush1.bf16.msra.mxu1 %v4343_v60  ;;  %2697 = vmatpush1.bf16.msra.mxu0 %v4345_v61  ;;  %v1080_v60 = vld [vmem:[%s6889_s2 + $0x2d0] sm:$0xff]  ;;  %v1123_v50 = vld [vmem:[%s6889_s2 + $0x428] sm:$0xff] }
 0x1c8   :  { %2616 = vmatprep.subr.bf16.mxu1 %v4352_v62  ;;  %2698 = vmatprep.subr.bf16.mxu0 %v4354_v63  ;;  %v1084_v61 = vld [vmem:[%s6889_s2 + $0x2f0] sm:$0xff]  ;;  %v4399_v62 = vcombine.low %v1071_v30, %v1075_v1  ;;  %v4401_v63 = vcombine.low %v1072_v33, %v1076_v35  ;;  %v4448_v30 = vcombine.high %v1119_v46, %v1123_v50  ;;  %v1127_v33 = vld [vmem:[%s6889_s2 + $0x448] sm:$0xff] }
 0x1c9   :  { %v4410_v2 = vcombine.high %v1080_v60, %v1084_v61  ;;  %v1131_v35 = vld [vmem:[%s6889_s2 + $0x468] sm:$0xff] }
 0x1cb   :  { %2617 = vmatpush1.bf16.msra.mxu1 %v4351_v5  ;;  %2699 = vmatpush1.bf16.msra.mxu0 %v4353_v40  ;;  %v1088_v5 = vld [vmem:[%s6889_s2 + $0x310] sm:$0xff] }
 0x1cc   :  { %2618 = vmatprep.subr.bf16.mxu1 %v4360_v42  ;;  %2700 = vmatprep.subr.bf16.mxu0 %v4362_v6  ;;  %v1092_v40 = vld [vmem:[%s6889_s2 + $0x330] sm:$0xff]  ;;  %v4407_v42 = vcombine.low %v1079_v58, %v1083_v59  ;;  %v4409_v6 = vcombine.low %v1080_v60, %v1084_v61  ;;  %v4456_v58 = vcombine.high %v1127_v33, %v1131_v35  ;;  %v1135_v60 = vld [vmem:[%s6889_s2 + $0x488] sm:$0xff] }
 0x1cd   :  { %v4418_v49 = vcombine.high %v1088_v5, %v1092_v40  ;;  %v1139_v61 = vld [vmem:[%s6889_s2 + $0x4a8] sm:$0xff] }
 0x1cf   :  { %2619 = vmatpush1.bf16.msra.mxu1 %v4359_v43  ;;  %2701 = vmatpush1.bf16.msra.mxu0 %v4361_v8  ;;  %v1096_v43 = vld [vmem:[%s6889_s2 + $0x350] sm:$0xff] }
 0x1d0   :  { %2620 = vmatprep.subr.bf16.mxu1 %v4368_v9  ;;  %2702 = vmatprep.subr.bf16.mxu0 %v4370_v10  ;;  %v1100_v8 = vld [vmem:[%s6889_s2 + $0x370] sm:$0xff]  ;;  %v4415_v9 = vcombine.low %v1087_v3, %v1091_v4  ;;  %v4417_v10 = vcombine.low %v1088_v5, %v1092_v40  ;;  %v4464_v3 = vcombine.high %v1135_v60, %v1139_v61  ;;  %v1143_v5 = vld [vmem:[%s6889_s2 + $0x4c8] sm:$0xff] }
 0x1d1   :  { %v4426_v12 = vcombine.high %v1096_v43, %v1100_v8  ;;  %v1147_v40 = vld [vmem:[%s6889_s2 + $0x4e8] sm:$0xff] }
 0x1d3   :  { %2621 = vmatpush1.bf16.msra.mxu1 %v4367_v15  ;;  %2703 = vmatpush1.bf16.msra.mxu0 %v4369_v16  ;;  %v1104_v15 = vld [vmem:[%s6889_s2 + $0x390] sm:$0xff] }
 0x1d4   :  { %2622 = vmatprep.subr.bf16.mxu1 %v4376_v17  ;;  %2704 = vmatprep.subr.bf16.mxu0 %v4378_v18  ;;  %v1108_v16 = vld [vmem:[%s6889_s2 + $0x3b0] sm:$0xff]  ;;  %v4423_v17 = vcombine.low %v1095_v7, %v1099_v51  ;;  %v4425_v18 = vcombine.low %v1096_v43, %v1100_v8  ;;  %v4472_v7 = vcombine.high %v1143_v5, %v1147_v40  ;;  %v1151_v43 = vld [vmem:[%s6889_s2 + $0x508] sm:$0xff] }
 0x1d5   :  { %v4434_v20 = vcombine.high %v1104_v15, %v1108_v16  ;;  %v1155_v8 = vld [vmem:[%s6889_s2 + $0x528] sm:$0xff] }
 0x1d7   :  { %2623 = vmatpush1.bf16.msra.mxu1 %v4375_v28  ;;  %2705 = vmatpush1.bf16.msra.mxu0 %v4377_v31  ;;  %v1112_v28 = vld [vmem:[%s6889_s2 + $0x3d0] sm:$0xff] }
 0x1d8   :  { %2624 = vmatprep.subr.bf16.mxu1 %v4384_v32  ;;  %2706 = vmatprep.subr.bf16.mxu0 %v4386_v34  ;;  %v1116_v31 = vld [vmem:[%s6889_s2 + $0x3f0] sm:$0xff]  ;;  %v4431_v32 = vcombine.low %v1103_v13, %v1107_v14  ;;  %v4433_v34 = vcombine.low %v1104_v15, %v1108_v16  ;;  %v4480_v13 = vcombine.high %v1151_v43, %v1155_v8  ;;  %v1159_v15 = vld [vmem:[%s6889_s2 + $0x548] sm:$0xff] }
 0x1d9   :  { %v4442_v41 = vcombine.high %v1112_v28, %v1116_v31  ;;  %v1163_v16 = vld [vmem:[%s6889_s2 + $0x568] sm:$0xff] }
 0x1db   :  { %2625 = vmatpush1.bf16.msra.mxu1 %v4383_v52  ;;  %2707 = vmatpush1.bf16.msra.mxu0 %v4385_v53  ;;  %v1120_v52 = vld [vmem:[%s6889_s2 + $0x410] sm:$0xff] }
 0x1dc   :  { %2626 = vmatprep.subr.bf16.mxu1 %v4392_v54  ;;  %2708 = vmatprep.subr.bf16.mxu0 %v4394_v29  ;;  %v1124_v53 = vld [vmem:[%s6889_s2 + $0x430] sm:$0xff]  ;;  %v4439_v54 = vcombine.low %v1111_v23, %v1115_v24  ;;  %v4441_v29 = vcombine.low %v1112_v28, %v1116_v31  ;;  %v4488_v23 = vcombine.high %v1159_v15, %v1163_v16  ;;  %v1167_v28 = vld [vmem:[%s6889_s2 + $0x588] sm:$0xff] }
 0x1dd   :  { %v4450_v1 = vcombine.high %v1120_v52, %v1124_v53  ;;  %v1171_v31 = vld [vmem:[%s6889_s2 + $0x5a8] sm:$0xff] }
 0x1df   :  { %2627 = vmatpush1.bf16.msra.mxu1 %v4391_v37  ;;  %2709 = vmatpush1.bf16.msra.mxu0 %v4393_v55  ;;  %v1128_v37 = vld [vmem:[%s6889_s2 + $0x450] sm:$0xff] }
 0x1e0   :  { %2628 = vmatprep.subr.bf16.mxu1 %v4400_v56  ;;  %2710 = vmatprep.subr.bf16.mxu0 %v4402_v57  ;;  %v1132_v55 = vld [vmem:[%s6889_s2 + $0x470] sm:$0xff]  ;;  %v4447_v56 = vcombine.low %v1119_v46, %v1123_v50  ;;  %v4449_v57 = vcombine.low %v1120_v52, %v1124_v53  ;;  %v4496_v46 = vcombine.high %v1167_v28, %v1171_v31  ;;  %v1175_v52 = vld [vmem:[%s6889_s2 + $0x5c8] sm:$0xff] }
 0x1e1   :  { %v4458_v59 = vcombine.high %v1128_v37, %v1132_v55  ;;  %v1179_v53 = vld [vmem:[%s6889_s2 + $0x5e8] sm:$0xff] }
 0x1e3   :  { %2629 = vmatpush1.bf16.msra.mxu1 %v4399_v62  ;;  %2711 = vmatpush1.bf16.msra.mxu0 %v4401_v63  ;;  %v1136_v62 = vld [vmem:[%s6889_s2 + $0x490] sm:$0xff] }
 0x1e4   :  { %2630 = vmatprep.subr.bf16.mxu1 %v4408_v0  ;;  %2712 = vmatprep.subr.bf16.mxu0 %v4410_v2  ;;  %v1140_v63 = vld [vmem:[%s6889_s2 + $0x4b0] sm:$0xff]  ;;  %v4455_v0 = vcombine.low %v1127_v33, %v1131_v35  ;;  %v4457_v2 = vcombine.low %v1128_v37, %v1132_v55  ;;  %v4504_v33 = vcombine.high %v1175_v52, %v1179_v53  ;;  %v1183_v37 = vld [vmem:[%s6889_s2 + $0x608] sm:$0xff] }
 0x1e5   :  { %v4466_v4 = vcombine.high %v1136_v62, %v1140_v63  ;;  %v1187_v55 = vld [vmem:[%s6889_s2 + $0x628] sm:$0xff] }
 0x1e7   :  { %2631 = vmatpush1.bf16.msra.mxu1 %v4407_v42  ;;  %2713 = vmatpush1.bf16.msra.mxu0 %v4409_v6  ;;  %v1144_v42 = vld [vmem:[%s6889_s2 + $0x4d0] sm:$0xff] }
 0x1e8   :  { %2632 = vmatprep.subr.bf16.mxu1 %v4416_v45  ;;  %2714 = vmatprep.subr.bf16.mxu0 %v4418_v49  ;;  %v1148_v6 = vld [vmem:[%s6889_s2 + $0x4f0] sm:$0xff]  ;;  %v4463_v45 = vcombine.low %v1135_v60, %v1139_v61  ;;  %v4465_v49 = vcombine.low %v1136_v62, %v1140_v63  ;;  %v4512_v60 = vcombine.high %v1183_v37, %v1187_v55  ;;  %v1191_v62 = vld [vmem:[%s6889_s2 + $0x648] sm:$0xff] }
 0x1e9   :  { %v4474_v51 = vcombine.high %v1144_v42, %v1148_v6  ;;  %v1195_v63 = vld [vmem:[%s6889_s2 + $0x668] sm:$0xff] }
 0x1eb   :  { %2633 = vmatpush1.bf16.msra.mxu1 %v4415_v9  ;;  %2715 = vmatpush1.bf16.msra.mxu0 %v4417_v10  ;;  %v1152_v9 = vld [vmem:[%s6889_s2 + $0x510] sm:$0xff] }
 0x1ec   :  { %2634 = vmatprep.subr.bf16.mxu1 %v4424_v11  ;;  %2716 = vmatprep.subr.bf16.mxu0 %v4426_v12  ;;  %v1156_v10 = vld [vmem:[%s6889_s2 + $0x530] sm:$0xff]  ;;  %v4471_v11 = vcombine.low %v1143_v5, %v1147_v40  ;;  %v4473_v12 = vcombine.low %v1144_v42, %v1148_v6  ;;  %v4520_v5 = vcombine.high %v1191_v62, %v1195_v63  ;;  %v1199_v42 = vld [vmem:[%s6889_s2 + $0x688] sm:$0xff] }
 0x1ed   :  { %v4482_v14 = vcombine.high %v1152_v9, %v1156_v10  ;;  %v1203_v6 = vld [vmem:[%s6889_s2 + $0x6a8] sm:$0xff] }
 0x1ef   :  { %2635 = vmatpush1.bf16.msra.mxu1 %v4423_v17  ;;  %2717 = vmatpush1.bf16.msra.mxu0 %v4425_v18  ;;  %v1160_v17 = vld [vmem:[%s6889_s2 + $0x550] sm:$0xff] }
 0x1f0   :  { %2636 = vmatprep.subr.bf16.mxu1 %v4432_v19  ;;  %2718 = vmatprep.subr.bf16.mxu0 %v4434_v20  ;;  %v1164_v18 = vld [vmem:[%s6889_s2 + $0x570] sm:$0xff]  ;;  %v4479_v19 = vcombine.low %v1151_v43, %v1155_v8  ;;  %v4481_v20 = vcombine.low %v1152_v9, %v1156_v10  ;;  %v4528_v43 = vcombine.high %v1199_v42, %v1203_v6  ;;  %v1207_v9 = vld [vmem:[%s6889_s2 + $0x6c8] sm:$0xff] }
 0x1f1   :  { %v4490_v24 = vcombine.high %v1160_v17, %v1164_v18  ;;  %v1211_v10 = vld [vmem:[%s6889_s2 + $0x6e8] sm:$0xff] }
 0x1f3   :  { %2637 = vmatpush1.bf16.msra.mxu1 %v4431_v32  ;;  %2719 = vmatpush1.bf16.msra.mxu0 %v4433_v34  ;;  %v1168_v32 = vld [vmem:[%s6889_s2 + $0x590] sm:$0xff] }
 0x1f4   :  { %2638 = vmatprep.subr.bf16.mxu1 %v4440_v38  ;;  %2720 = vmatprep.subr.bf16.mxu0 %v4442_v41  ;;  %v1172_v34 = vld [vmem:[%s6889_s2 + $0x5b0] sm:$0xff]  ;;  %v4487_v38 = vcombine.low %v1159_v15, %v1163_v16  ;;  %v4489_v41 = vcombine.low %v1160_v17, %v1164_v18  ;;  %v4536_v15 = vcombine.high %v1207_v9, %v1211_v10  ;;  %v1215_v17 = vld [vmem:[%s6889_s2 + $0x708] sm:$0xff] }
 0x1f5   :  { %v4498_v50 = vcombine.high %v1168_v32, %v1172_v34  ;;  %v1219_v18 = vld [vmem:[%s6889_s2 + $0x728] sm:$0xff] }
 0x1f7   :  { %2639 = vmatpush1.bf16.msra.mxu1 %v4439_v54  ;;  %2721 = vmatpush1.bf16.msra.mxu0 %v4441_v29  ;;  %v1176_v54 = vld [vmem:[%s6889_s2 + $0x5d0] sm:$0xff] }
 0x1f8   :  { %2649 = vmatprep.subr.bf16.mxu1 %v4448_v30  ;;  %2731 = vmatprep.subr.bf16.mxu0 %v4450_v1  ;;  %v1180_v29 = vld [vmem:[%s6889_s2 + $0x5f0] sm:$0xff]  ;;  %v4495_v30 = vcombine.low %v1167_v28, %v1171_v31  ;;  %v4497_v1 = vcombine.low %v1168_v32, %v1172_v34  ;;  %v4544_v28 = vcombine.high %v1215_v17, %v1219_v18  ;;  %v1223_v32 = vld [vmem:[%s6889_s2 + $0x748] sm:$0xff] }
 0x1f9   :  { %v4506_v35 = vcombine.high %v1176_v54, %v1180_v29  ;;  %v1227_v34 = vld [vmem:[%s6889_s2 + $0x768] sm:$0xff] }
 0x1fa   :  { %2641 = vmatmul.mubr.bf16.vlgmr.msra.gmra.mrb[12].mxu1 %v5754_v25  ;;  %2723 = vmatmul.mubr.bf16.vlgmr.msra.gmra.mrb[8].mxu0 %v5754_v25 }
 0x1fb   :  { %2650 = vmatpush1.bf16.msra.mxu1 %v4447_v56  ;;  %2681 = vmatprep.mubr.bf16.mxu1 %v5752_v22  ;;  %v1184_v56 = vld [vmem:[%s6889_s2 + $0x610] sm:$0xff] }
 0x1fc   :  { %2732 = vmatpush1.bf16.msra.mxu0 %v4449_v57  ;;  %2763 = vmatprep.mubr.bf16.mxu0 %v5752_v22  ;;  %v1188_v57 = vld [vmem:[%s6889_s2 + $0x630] sm:$0xff] }
 0x1fd   :  { %2651 = vmatprep.subr.bf16.mxu1 %v4456_v58  ;;  %2733 = vmatprep.subr.bf16.mxu0 %v4458_v59  ;;  %v4503_v58 = vcombine.low %v1175_v52, %v1179_v53  ;;  %v4505_v59 = vcombine.low %v1176_v54, %v1180_v29  ;;  %v4514_v61 = vcombine.high %v1184_v56, %v1188_v57  ;;  %v1231_v54 = vld [vmem:[%s6889_s2 + $0x788] sm:$0xff] }
 0x1fe   :  { %v4552_v52 = vcombine.high %v1223_v32, %v1227_v34  ;;  %v1235_v29 = vld [vmem:[%s6889_s2 + $0x7a8] sm:$0xff] }
 0x1ff   :  { %2652 = vmatpush1.bf16.msra.mxu1 %v4455_v0  ;;  %v1192_v0 = vld [vmem:[%s6889_s2 + $0x650] sm:$0xff] }
 0x200   :  { %2734 = vmatpush1.bf16.msra.mxu0 %v4457_v2  ;;  %2653 = vmatprep.subr.bf16.mxu1 %v4464_v3  ;;  %v1196_v2 = vld [vmem:[%s6889_s2 + $0x670] sm:$0xff]  ;;  %v4511_v3 = vcombine.low %v1183_v37, %v1187_v55  ;;  %v4560_v37 = vcombine.high %v1231_v54, %v1235_v29 }
 0x201   :  { %2735 = vmatprep.subr.bf16.mxu0 %v4466_v4  ;;  %v4513_v4 = vcombine.low %v1184_v56, %v1188_v57  ;;  %v4522_v40 = vcombine.high %v1192_v0, %v1196_v2  ;;  %v1239_v56 = vld [vmem:[%s6889_s2 + $0x7c8] sm:$0xff] }
 0x202   :  { %v1243_v57 = vld [vmem:[%s6889_s2 + $0x7e8] sm:$0xff] }
 0x203   :  { %2654 = vmatpush1.bf16.msra.mxu1 %v4463_v45  ;;  %v1200_v45 = vld [vmem:[%s6889_s2 + $0x690] sm:$0xff] }
 0x204   :  { %2736 = vmatpush1.bf16.msra.mxu0 %v4465_v49  ;;  %2655 = vmatprep.subr.bf16.mxu1 %v4472_v7  ;;  %v1204_v49 = vld [vmem:[%s6889_s2 + $0x6b0] sm:$0xff]  ;;  %v4519_v7 = vcombine.low %v1191_v62, %v1195_v63  ;;  %v4568_v62 = vcombine.high %v1239_v56, %v1243_v57 }
 0x205   :  { %2737 = vmatprep.subr.bf16.mxu0 %v4474_v51  ;;  %v4521_v51 = vcombine.low %v1192_v0, %v1196_v2  ;;  %v4530_v8 = vcombine.high %v1200_v45, %v1204_v49  ;;  %v993_v0 = vld [vmem:[%s6889_s2 + $0x18] sm:$0xff] }
 0x206   :  { %v997_v2 = vld [vmem:[%s6889_s2 + $0x38] sm:$0xff] }
 0x207   :  { %2656 = vmatpush1.bf16.msra.mxu1 %v4471_v11  ;;  %v1208_v11 = vld [vmem:[%s6889_s2 + $0x6d0] sm:$0xff] }
 0x208   :  { %2738 = vmatpush1.bf16.msra.mxu0 %v4473_v12  ;;  %2657 = vmatprep.subr.bf16.mxu1 %v4480_v13  ;;  %v1212_v12 = vld [vmem:[%s6889_s2 + $0x6f0] sm:$0xff]  ;;  %v4527_v13 = vcombine.low %v1199_v42, %v1203_v6  ;;  %v1005_v42 = vld [vmem:[%s6889_s2 + $0x78] sm:$0xff]  ;;  %v4323_v6 = vcombine.low %v993_v0, %v997_v2 }
 0x209   :  { %2739 = vmatprep.subr.bf16.mxu0 %v4482_v14  ;;  %v4529_v14 = vcombine.low %v1200_v45, %v1204_v49  ;;  %v4538_v16 = vcombine.high %v1208_v11, %v1212_v12  ;;  %v1009_v49 = vld [vmem:[%s6889_s2 + $0x98] sm:$0xff] }
 0x20b   :  { %2658 = vmatpush1.bf16.msra.mxu1 %v4479_v19  ;;  %v1216_v19 = vld [vmem:[%s6889_s2 + $0x710] sm:$0xff] }
 0x20c   :  { %2740 = vmatpush1.bf16.msra.mxu0 %v4481_v20  ;;  %2659 = vmatprep.subr.bf16.mxu1 %v4488_v23  ;;  %v1220_v20 = vld [vmem:[%s6889_s2 + $0x730] sm:$0xff]  ;;  %v4535_v23 = vcombine.low %v1207_v9, %v1211_v10  ;;  %v1021_v9 = vld [vmem:[%s6889_s2 + $0xf8] sm:$0xff] }
 0x20d   :  { %2741 = vmatprep.subr.bf16.mxu0 %v4490_v24  ;;  %v4537_v24 = vcombine.low %v1208_v11, %v1212_v12  ;;  %v4546_v31 = vcombine.high %v1216_v19, %v1220_v20  ;;  %v1025_v12 = vld [vmem:[%s6889_s2 + $0x118] sm:$0xff] }
 0x20f   :  { %2660 = vmatpush1.bf16.msra.mxu1 %v4487_v38  ;;  %v1224_v38 = vld [vmem:[%s6889_s2 + $0x750] sm:$0xff] }
 0x210   :  { %2742 = vmatpush1.bf16.msra.mxu0 %v4489_v41  ;;  %2661 = vmatprep.subr.bf16.mxu1 %v4496_v46  ;;  %v1228_v41 = vld [vmem:[%s6889_s2 + $0x770] sm:$0xff]  ;;  %v4543_v46 = vcombine.low %v1215_v17, %v1219_v18 }
 0x211   :  { %2743 = vmatprep.subr.bf16.mxu0 %v4498_v50  ;;  %v4545_v50 = vcombine.low %v1216_v19, %v1220_v20  ;;  %v4554_v53 = vcombine.high %v1224_v38, %v1228_v41  ;;  %v1041_v19 = vld [vmem:[%s6889_s2 + $0x198] sm:$0xff] }
 0x212   :  { %v1045_v20 = vld [vmem:[%s6889_s2 + $0x1b8] sm:$0xff] }
 0x213   :  { %2662 = vmatpush1.bf16.msra.mxu1 %v4495_v30  ;;  %v1232_v30 = vld [vmem:[%s6889_s2 + $0x790] sm:$0xff] }
 0x214   :  { %2744 = vmatpush1.bf16.msra.mxu0 %v4497_v1  ;;  %2663 = vmatprep.subr.bf16.mxu1 %v4504_v33  ;;  %v1236_v1 = vld [vmem:[%s6889_s2 + $0x7b0] sm:$0xff]  ;;  %v4551_v33 = vcombine.low %v1223_v32, %v1227_v34  ;;  %v4371_v32 = vcombine.low %v1041_v19, %v1045_v20 }
 0x215   :  { %2745 = vmatprep.subr.bf16.mxu0 %v4506_v35  ;;  %v4553_v35 = vcombine.low %v1224_v38, %v1228_v41  ;;  %v4562_v55 = vcombine.high %v1232_v30, %v1236_v1  ;;  %v1057_v38 = vld [vmem:[%s6889_s2 + $0x218] sm:$0xff] }
 0x216   :  { %v1061_v41 = vld [vmem:[%s6889_s2 + $0x238] sm:$0xff] }
 0x217   :  { %2664 = vmatpush1.bf16.msra.mxu1 %v4503_v58  ;;  %v1240_v58 = vld [vmem:[%s6889_s2 + $0x7d0] sm:$0xff] }
 0x218   :  { %2746 = vmatpush1.bf16.msra.mxu0 %v4505_v59  ;;  %2665 = vmatprep.subr.bf16.mxu1 %v4512_v60  ;;  %v1244_v59 = vld [vmem:[%s6889_s2 + $0x7f0] sm:$0xff]  ;;  %v4559_v60 = vcombine.low %v1231_v54, %v1235_v29  ;;  %v4387_v54 = vcombine.low %v1057_v38, %v1061_v41 }
 0x219   :  { %2747 = vmatprep.subr.bf16.mxu0 %v4514_v61  ;;  %v4561_v61 = vcombine.low %v1232_v30, %v1236_v1  ;;  %v4570_v63 = vcombine.high %v1240_v58, %v1244_v59  ;;  %v1073_v30 = vld [vmem:[%s6889_s2 + $0x298] sm:$0xff] }
 0x21a   :  { %v1077_v1 = vld [vmem:[%s6889_s2 + $0x2b8] sm:$0xff] }
 0x21b   :  { %2666 = vmatpush1.bf16.msra.mxu1 %v4511_v3  ;;  %v4567_v3 = vcombine.low %v1239_v56, %v1243_v57  ;;  %v4403_v56 = vcombine.low %v1073_v30, %v1077_v1 }
 0x21c   :  { %2748 = vmatpush1.bf16.msra.mxu0 %v4513_v4  ;;  %2667 = vmatprep.subr.bf16.mxu1 %v4520_v5  ;;  %v4569_v4 = vcombine.low %v1240_v58, %v1244_v59  ;;  %v4324_v5 = vcombine.high %v993_v0, %v997_v2  ;;  %v1089_v58 = vld [vmem:[%s6889_s2 + $0x318] sm:$0xff] }
 0x21d   :  { %2749 = vmatprep.subr.bf16.mxu0 %v4522_v40  ;;  %v1001_v40 = vld [vmem:[%s6889_s2 + $0x58] sm:$0xff] }
 0x21e   :  { %v4332_v45 = vcombine.high %v1001_v40, %v1005_v42  ;;  %v1093_v59 = vld [vmem:[%s6889_s2 + $0x338] sm:$0xff] }
 0x21f   :  { %2668 = vmatpush1.bf16.msra.mxu1 %v4519_v7  ;;  %v1013_v7 = vld [vmem:[%s6889_s2 + $0xb8] sm:$0xff]  ;;  %v4419_v0 = vcombine.low %v1089_v58, %v1093_v59 }
 0x220   :  { %2750 = vmatpush1.bf16.msra.mxu0 %v4521_v51  ;;  %2669 = vmatprep.subr.bf16.mxu1 %v4528_v43  ;;  %v4331_v51 = vcombine.low %v1001_v40, %v1005_v42  ;;  %v4340_v43 = vcombine.high %v1009_v49, %v1013_v7  ;;  %v4339_v10 = vcombine.low %v1009_v49, %v1013_v7  ;;  %v1113_v42 = vld [vmem:[%s6889_s2 + $0x3d8] sm:$0xff] }
 0x221   :  { %2751 = vmatprep.subr.bf16.mxu0 %v4530_v8  ;;  %v1017_v8 = vld [vmem:[%s6889_s2 + $0xd8] sm:$0xff] }
 0x222   :  { %v4348_v11 = vcombine.high %v1017_v8, %v1021_v9  ;;  %v1121_v7 = vld [vmem:[%s6889_s2 + $0x418] sm:$0xff] }
 0x223   :  { %2670 = vmatpush1.bf16.msra.mxu1 %v4527_v13  ;;  %v4347_v13 = vcombine.low %v1017_v8, %v1021_v9  ;;  %v1129_v9 = vld [vmem:[%s6889_s2 + $0x458] sm:$0xff] }
 0x224   :  { %2752 = vmatpush1.bf16.msra.mxu0 %v4529_v14  ;;  %2671 = vmatprep.subr.bf16.mxu1 %v4536_v15  ;;  %v1033_v15 = vld [vmem:[%s6889_s2 + $0x158] sm:$0xff] }
 0x225   :  { %2753 = vmatprep.subr.bf16.mxu0 %v4538_v16  ;;  %v1037_v16 = vld [vmem:[%s6889_s2 + $0x178] sm:$0xff] }
 0x226   :  { %v4364_v18 = vcombine.high %v1033_v15, %v1037_v16 }
 0x227   :  { %2672 = vmatpush1.bf16.msra.mxu1 %v4535_v23  ;;  %v4363_v23 = vcombine.low %v1033_v15, %v1037_v16  ;;  %v1145_v16 = vld [vmem:[%s6889_s2 + $0x4d8] sm:$0xff] }
 0x228   :  { %2754 = vmatpush1.bf16.msra.mxu0 %v4537_v24  ;;  %2673 = vmatprep.subr.bf16.mxu1 %v4544_v28  ;;  %v4372_v24 = vcombine.high %v1041_v19, %v1045_v20  ;;  %v1049_v28 = vld [vmem:[%s6889_s2 + $0x1d8] sm:$0xff] }
 0x229   :  { %2755 = vmatprep.subr.bf16.mxu0 %v4546_v31  ;;  %v1053_v31 = vld [vmem:[%s6889_s2 + $0x1f8] sm:$0xff] }
 0x22a   :  { %v4380_v34 = vcombine.high %v1049_v28, %v1053_v31 }
 0x22b   :  { %2674 = vmatpush1.bf16.msra.mxu1 %v4543_v46  ;;  %v4379_v46 = vcombine.low %v1049_v28, %v1053_v31  ;;  %v1165_v28 = vld [vmem:[%s6889_s2 + $0x578] sm:$0xff] }
 0x22c   :  { %2756 = vmatpush1.bf16.msra.mxu0 %v4545_v50  ;;  %2675 = vmatprep.subr.bf16.mxu1 %v4552_v52  ;;  %v4388_v50 = vcombine.high %v1057_v38, %v1061_v41  ;;  %v1065_v52 = vld [vmem:[%s6889_s2 + $0x258] sm:$0xff] }
 0x22d   :  { %2757 = vmatprep.subr.bf16.mxu0 %v4554_v53  ;;  %v1069_v53 = vld [vmem:[%s6889_s2 + $0x278] sm:$0xff] }
 0x22e   :  { %v4396_v29 = vcombine.high %v1065_v52, %v1069_v53  ;;  %v1173_v38 = vld [vmem:[%s6889_s2 + $0x5b8] sm:$0xff] }
 0x22f   :  { %2676 = vmatpush1.bf16.msra.mxu1 %v4551_v33  ;;  %v4395_v33 = vcombine.low %v1065_v52, %v1069_v53  ;;  %v1177_v53 = vld [vmem:[%s6889_s2 + $0x5d8] sm:$0xff] }
 0x230   :  { %2758 = vmatpush1.bf16.msra.mxu0 %v4553_v35  ;;  %2677 = vmatprep.subr.bf16.mxu1 %v4560_v37  ;;  %v4404_v35 = vcombine.high %v1073_v30, %v1077_v1  ;;  %v1081_v37 = vld [vmem:[%s6889_s2 + $0x2d8] sm:$0xff] }
 0x231   :  { %2759 = vmatprep.subr.bf16.mxu0 %v4562_v55  ;;  %v1085_v55 = vld [vmem:[%s6889_s2 + $0x2f8] sm:$0xff] }
 0x232   :  { %v4412_v57 = vcombine.high %v1081_v37, %v1085_v55 }
 0x233   :  { %2678 = vmatpush1.bf16.msra.mxu1 %v4559_v60  ;;  %v4411_v60 = vcombine.low %v1081_v37, %v1085_v55 }
 0x234   :  { %2760 = vmatpush1.bf16.msra.mxu0 %v4561_v61  ;;  %2679 = vmatprep.subr.bf16.mxu1 %v4568_v62  ;;  %v4420_v61 = vcombine.high %v1089_v58, %v1093_v59  ;;  %v1097_v62 = vld [vmem:[%s6889_s2 + $0x358] sm:$0xff] }
 0x235   :  { %2761 = vmatprep.subr.bf16.mxu0 %v4570_v63  ;;  %v1101_v63 = vld [vmem:[%s6889_s2 + $0x378] sm:$0xff] }
 0x236   :  { %v4428_v2 = vcombine.high %v1097_v62, %v1101_v63 }
 0x237   :  { %2680 = vmatpush1.bf16.msra.mxu1 %v4567_v3  ;;  %v1105_v3 = vld [vmem:[%s6889_s2 + $0x398] sm:$0xff] }
 0x238   :  { %2762 = vmatpush1.bf16.msra.mxu0 %v4569_v4  ;;  %2772 = vmatprep.subr.bf16.mxu1 %v4324_v5  ;;  %v1109_v4 = vld [vmem:[%s6889_s2 + $0x3b8] sm:$0xff]  ;;  %v4427_v5 = vcombine.low %v1097_v62, %v1101_v63 }
 0x239   :  { %v4436_v40 = vcombine.high %v1105_v3, %v1109_v4  ;;  %v1185_v63 = vld [vmem:[%s6889_s2 + $0x618] sm:$0xff] }
 0x23a   :  { %2682 = vmatmul.mubr.bf16.vlgmr.msra.gmra.mrb[12].mxu1 %v5756_v26 }
 0x23b   :  { %2764 = vmatmul.mubr.bf16.vlgmr.msra.gmra.mrb[8].mxu0 %v5756_v26  ;;  %2773 = vmatpush1.bf16.msra.mxu1 %v4323_v6  ;;  %v1117_v6 = vld [vmem:[%s6889_s2 + $0x3f8] sm:$0xff] }
 0x23c   :  { %2804 = vmatprep.mubr.bf16.mxu1 %v5750_v21  ;;  %2774 = vmatprep.subr.bf16.mxu1 %v4332_v45  ;;  %v1029_v21 = vld [vmem:[%s6889_s2 + $0x138] sm:$0xff]  ;;  %v4435_v45 = vcombine.low %v1105_v3, %v1109_v4  ;;  %v4444_v49 = vcombine.high %v1113_v42, %v1117_v6 }
 0x23d   :  { %v4356_v14 = vcombine.high %v1025_v12, %v1029_v21  ;;  %v4355_v17 = vcombine.low %v1025_v12, %v1029_v21  ;;  %v1137_v21 = vld [vmem:[%s6889_s2 + $0x498] sm:$0xff] }
 0x23f   :  { %2775 = vmatpush1.bf16.msra.mxu1 %v4331_v51  ;;  %v1125_v51 = vld [vmem:[%s6889_s2 + $0x438] sm:$0xff] }
 0x240   :  { %2776 = vmatprep.subr.bf16.mxu1 %v4340_v43  ;;  %v4443_v43 = vcombine.low %v1113_v42, %v1117_v6  ;;  %v4452_v8 = vcombine.high %v1121_v7, %v1125_v51 }
 0x243   :  { %2777 = vmatpush1.bf16.msra.mxu1 %v4339_v10  ;;  %v1133_v10 = vld [vmem:[%s6889_s2 + $0x478] sm:$0xff] }
 0x244   :  { %2778 = vmatprep.subr.bf16.mxu1 %v4348_v11  ;;  %v4451_v11 = vcombine.low %v1121_v7, %v1125_v51  ;;  %v4460_v12 = vcombine.high %v1129_v9, %v1133_v10  ;;  %v1193_v51 = vld [vmem:[%s6889_s2 + $0x658] sm:$0xff] }
 0x247   :  { %2779 = vmatpush1.bf16.msra.mxu1 %v4347_v13  ;;  %v1141_v13 = vld [vmem:[%s6889_s2 + $0x4b8] sm:$0xff] }
 0x248   :  { %2780 = vmatprep.subr.bf16.mxu1 %v4356_v14  ;;  %v4459_v14 = vcombine.low %v1129_v9, %v1133_v10  ;;  %v4468_v15 = vcombine.high %v1137_v21, %v1141_v13 }
 0x24b   :  { %2781 = vmatpush1.bf16.msra.mxu1 %v4355_v17  ;;  %v1149_v17 = vld [vmem:[%s6889_s2 + $0x4f8] sm:$0xff] }
 0x24c   :  { %2782 = vmatprep.subr.bf16.mxu1 %v4364_v18  ;;  %v4467_v18 = vcombine.low %v1137_v21, %v1141_v13  ;;  %v4476_v19 = vcombine.high %v1145_v16, %v1149_v17  ;;  %v4475_v20 = vcombine.low %v1145_v16, %v1149_v17  ;;  %v1201_v17 = vld [vmem:[%s6889_s2 + $0x698] sm:$0xff] }
 0x24f   :  { %2783 = vmatpush1.bf16.msra.mxu1 %v4363_v23 }
 0x250   :  { %2784 = vmatprep.subr.bf16.mxu1 %v4372_v24  ;;  %v1161_v24 = vld [vmem:[%s6889_s2 + $0x558] sm:$0xff] }
 0x251   :  { %v4491_v41 = vcombine.low %v1161_v24, %v1165_v28 }
 0x253   :  { %2785 = vmatpush1.bf16.msra.mxu1 %v4371_v32  ;;  %v4492_v32 = vcombine.high %v1161_v24, %v1165_v28 }
 0x254   :  { %2786 = vmatprep.subr.bf16.mxu1 %v4380_v34  ;;  %v1169_v34 = vld [vmem:[%s6889_s2 + $0x598] sm:$0xff] }
 0x255   :  { %v4499_v55 = vcombine.low %v1169_v34, %v1173_v38 }
 0x257   :  { %2787 = vmatpush1.bf16.msra.mxu1 %v4379_v46  ;;  %v4500_v46 = vcombine.high %v1169_v34, %v1173_v38  ;;  %v1209_v38 = vld [vmem:[%s6889_s2 + $0x6d8] sm:$0xff] }
 0x258   :  { %2788 = vmatprep.subr.bf16.mxu1 %v4388_v50 }
 0x25b   :  { %2789 = vmatpush1.bf16.msra.mxu1 %v4387_v54  ;;  %v1181_v54 = vld [vmem:[%s6889_s2 + $0x5f8] sm:$0xff] }
 0x25c   :  { %2790 = vmatprep.subr.bf16.mxu1 %v4396_v29  ;;  %v4508_v59 = vcombine.high %v1177_v53, %v1181_v54 }
 0x25f   :  { %2791 = vmatpush1.bf16.msra.mxu1 %v4395_v33 }
 0x260   :  { %2792 = vmatprep.subr.bf16.mxu1 %v4404_v35 }
 0x263   :  { %2793 = vmatpush1.bf16.msra.mxu1 %v4403_v56 }
 0x264   :  { %2794 = vmatprep.subr.bf16.mxu1 %v4412_v57 }
 0x267   :  { %2795 = vmatpush1.bf16.msra.mxu1 %v4411_v60 }
 0x268   :  { %2796 = vmatprep.subr.bf16.mxu1 %v4420_v61 }
 0x26b   :  { %2797 = vmatpush1.bf16.msra.mxu1 %v4419_v0  ;;  %v1189_v0 = vld [vmem:[%s6889_s2 + $0x638] sm:$0xff] }
 0x26c   :  { %2798 = vmatprep.subr.bf16.mxu1 %v4428_v2 }
 0x26f   :  { %2799 = vmatpush1.bf16.msra.mxu1 %v4427_v5 }
 0x270   :  { %2800 = vmatprep.subr.bf16.mxu1 %v4436_v40  ;;  %v4507_v40 = vcombine.low %v1177_v53, %v1181_v54 }
 0x273   :  { %2801 = vmatpush1.bf16.msra.mxu1 %v4435_v45  ;;  %v4516_v45 = vcombine.high %v1185_v63, %v1189_v0 }
 0x274   :  { %2802 = vmatprep.subr.bf16.mxu1 %v4444_v49 }
 0x277   :  { %2803 = vmatpush1.bf16.msra.mxu1 %v4443_v43  ;;  %v1197_v43 = vld [vmem:[%s6889_s2 + $0x678] sm:$0xff] }
 0x278   :  { %2813 = vmatprep.subr.bf16.mxu1 %v4452_v8 }
 0x27a   :  { %2805 = vmatmul.mubr.bf16.vlgmr.msra.gmra.mrb[16].mxu1 %v5754_v25  ;;  %v1153_v25 = vld [vmem:[%s6889_s2 + $0x518] sm:$0xff] }
 0x27b   :  { %2814 = vmatpush1.bf16.msra.mxu1 %v4451_v11  ;;  %2845 = vmatprep.mubr.bf16.mxu1 %v5752_v22  ;;  %v1157_v22 = vld [vmem:[%s6889_s2 + $0x538] sm:$0xff] }
 0x27c   :  { %2815 = vmatprep.subr.bf16.mxu1 %v4460_v12  ;;  %v4484_v23 = vcombine.high %v1153_v25, %v1157_v22  ;;  %v4483_v31 = vcombine.low %v1153_v25, %v1157_v22  ;;  %v4515_v12 = vcombine.low %v1185_v63, %v1189_v0  ;;  %v1229_v63 = vld [vmem:[%s6889_s2 + $0x778] sm:$0xff] }
 0x27f   :  { %2816 = vmatpush1.bf16.msra.mxu1 %v4459_v14  ;;  %v4524_v14 = vcombine.high %v1193_v51, %v1197_v43 }
 0x280   :  { %2817 = vmatprep.subr.bf16.mxu1 %v4468_v15 }
 0x283   :  { %2818 = vmatpush1.bf16.msra.mxu1 %v4467_v18  ;;  %v1205_v18 = vld [vmem:[%s6889_s2 + $0x6b8] sm:$0xff] }
 0x284   :  { %2819 = vmatprep.subr.bf16.mxu1 %v4476_v19  ;;  %v4531_v54 = vcombine.low %v1201_v17, %v1205_v18 }
 0x287   :  { %2820 = vmatpush1.bf16.msra.mxu1 %v4475_v20 }
 0x288   :  { %2821 = vmatprep.subr.bf16.mxu1 %v4484_v23  ;;  %v4523_v23 = vcombine.low %v1193_v51, %v1197_v43 }
 0x28b   :  { %2822 = vmatpush1.bf16.msra.mxu1 %v4483_v31  ;;  %v4532_v31 = vcombine.high %v1201_v17, %v1205_v18 }
 0x28c   :  { %2823 = vmatprep.subr.bf16.mxu1 %v4492_v32 }
 0x28d   :  { %v2560_v50 = vpop.f32.mrb[8].mxu1  ;;  %v2601_v52 = vpop.f32.mrb[4].mxu0 }
 0x28e   :  { %v6283_v29 = vadd.f32 %v2601_v52, %v2560_v50  ;;  %v2562_v30 = vpop.f32.mrb[9].mxu1  ;;  %v2603_v1 = vpop.f32.mrb[5].mxu0 }
 0x28f   :  { %v6285_v33 = vadd.f32 %v2603_v1, %v2562_v30  ;;  %2824 = vmatpush1.bf16.msra.mxu1 %v4491_v41  ;;  %v2564_v35 = vpop.f32.mrb[10].mxu1  ;;  %v2605_v37 = vpop.f32.mrb[6].mxu0  ;;  %v1213_v41 = vld [vmem:[%s6889_s2 + $0x6f8] sm:$0xff] }
 0x290   :  { %v2854_v56 = vsel %vm23_vm0, %v6283_v29, 0.0  ;;  %v2565_v57 = vpop.f32.mrb[11].mxu1  ;;  %v2606_v58 = vpop.f32.mrb[7].mxu0  ;;  %2825 = vmatprep.subr.bf16.mxu1 %v4500_v46  ;;  %v4540_v35 = vcombine.high %v1209_v38, %v1213_v41 }
 0x291   :  { %v2862_v60 = vrot.slane %v2854_v56, 4  ;;  %v2918_v61 = vmul.f32 %v2854_v56, %v2854_v56  ;;  %v2855_v62 = vsel %vm23_vm0, %v6285_v33, 0.0 }
 0x292   :  { %v2868_v2 = vrot.slane %v2855_v62, 4  ;;  %v2919_v3 = vmul.f32 %v2855_v62, %v2855_v62 }
 0x293   :  { %v2863_v4 = vadd.f32 %v2862_v60, %v2854_v56  ;;  %v2926_v5 = vrot.slane %v2918_v61, 4  ;;  %2826 = vmatpush1.bf16.msra.mxu1 %v4499_v55  ;;  %v1217_v55 = vld [vmem:[%s6889_s2 + $0x718] sm:$0xff] }
 0x294   :  { %v2869_v42 = vadd.f32 %v2868_v2, %v2855_v62  ;;  %v2932_v6 = vrot.slane %v2919_v3, 4  ;;  %2827 = vmatprep.subr.bf16.mxu1 %v4508_v59  ;;  %v1221_v56 = vld [vmem:[%s6889_s2 + $0x738] sm:$0xff]  ;;  %v4539_v59 = vcombine.low %v1209_v38, %v1213_v41 }
 0x295   :  { %v2864_v49 = vrot.slane %v2863_v4, 2  ;;  %v2927_v7 = vadd.f32 %v2926_v5, %v2918_v61  ;;  %v4548_v61 = vcombine.high %v1217_v55, %v1221_v56  ;;  %v1225_v62 = vld [vmem:[%s6889_s2 + $0x758] sm:$0xff]  ;;  %v4547_v0 = vcombine.low %v1217_v55, %v1221_v56 }
 0x296   :  { %v2870_v8 = vrot.slane %v2869_v42, 2  ;;  %v2933_v9 = vadd.f32 %v2932_v6, %v2919_v3  ;;  %v4556_v2 = vcombine.high %v1225_v62, %v1229_v63  ;;  %v1233_v3 = vld [vmem:[%s6889_s2 + $0x798] sm:$0xff]  ;;  %v4555_v5 = vcombine.low %v1225_v62, %v1229_v63 }
 0x297   :  { %v2865_v10 = vadd.f32 %v2864_v49, %v2863_v4  ;;  %v2928_v11 = vrot.slane %v2927_v7, 2  ;;  %2828 = vmatpush1.bf16.msra.mxu1 %v4507_v40  ;;  %v1237_v4 = vld [vmem:[%s6889_s2 + $0x7b8] sm:$0xff] }
 0x298   :  { %v2871_v21 = vadd.f32 %v2870_v8, %v2869_v42  ;;  %v2934_v13 = vrot.slane %v2933_v9, 2  ;;  %2829 = vmatprep.subr.bf16.mxu1 %v4516_v45  ;;  %v4564_v40 = vcombine.high %v1233_v3, %v1237_v4  ;;  %v1241_v42 = vld [vmem:[%s6889_s2 + $0x7d8] sm:$0xff]  ;;  %v4563_v49 = vcombine.low %v1233_v3, %v1237_v4 }
 0x299   :  { %v2866_v15 = vrot.slane %v2865_v10, 1  ;;  %v2929_v16 = vadd.f32 %v2928_v11, %v2927_v7  ;;  %v1245_v6 = vld [vmem:[%s6889_s2 + $0x7f8] sm:$0xff] }
 0x29a   :  { %v2872_v19 = vrot.slane %v2871_v21, 1  ;;  %v2935_v25 = vadd.f32 %v2934_v13, %v2933_v9  ;;  %v4572_v51 = vcombine.high %v1241_v42, %v1245_v6  ;;  %v4571_v8 = vcombine.low %v1241_v42, %v1245_v6 }
 0x29b   :  { %v2867_v22 = vadd.f32 %v2866_v15, %v2865_v10  ;;  %v2930_v20 = vrot.slane %v2929_v16, 1  ;;  %2830 = vmatpush1.bf16.msra.mxu1 %v4515_v12 }
 0x29c   :  { %v2873_v24 = vadd.f32 %v2872_v19, %v2871_v21  ;;  %v2936_v28 = vrot.slane %v2935_v25, 1  ;;  %2831 = vmatprep.subr.bf16.mxu1 %v4524_v14 }
 0x29d   :  { %v6311_v32 = vmul.f32 0.5, %v2867_v22  ;;  %v2931_v34 = vadd.f32 %v2930_v20, %v2929_v16 }
 0x29e   :  { %v6319_v46 = vmul.f32 0.5, %v2873_v24  ;;  %v2937_v50 = vadd.f32 %v2936_v28, %v2935_v25 }
 0x29f   :  { %v2974_v52 = vmul.f32 0.5, %v2931_v34  ;;  %v2982_v53 = vmul.f32 %v6311_v32, %v6311_v32  ;;  %2832 = vmatpush1.bf16.msra.mxu1 %v4523_v23 }
 0x2a0   :  { %v2975_v30 = vmul.f32 0.5, %v2937_v50  ;;  %v2983_v1 = vmul.f32 %v6319_v46, %v6319_v46  ;;  %2833 = vmatprep.subr.bf16.mxu1 %v4532_v31 }
 0x2a1   :  { %v2990_v37 = vsub.f32 %v2974_v52, %v2982_v53 }
 0x2a2   :  { %v2991_v57 = vsub.f32 %v2975_v30, %v2983_v1 }
 0x2a3   :  { %v2998_v58 = vadd.f32 0.8, %v2990_v37  ;;  %2834 = vmatpush1.bf16.msra.mxu1 %v4531_v54 }
 0x2a4   :  { %v2999_v60 = vadd.f32 0.8, %v2991_v57  ;;  %2835 = vmatprep.subr.bf16.mxu1 %v4540_v35 }
 0x2a5   :  { %5081 = vrsqrt.f32 %v2998_v58 }
 0x2a6   :  { %5083 = vrsqrt.f32 %v2999_v60  ;;  %v4883_v60 = vld [vmem:[%s6891_s3 + $0x4] ss:$8 sps:$4 sm:$0xff]  }
 0x2a7   :  { %2836 = vmatpush1.bf16.msra.mxu1 %v4539_v59  ;;  %4049 = vmatprep.subr.bf16.mxu0 %v4883_v60 }
 0x2a8   :  { %2837 = vmatprep.subr.bf16.mxu1 %v4548_v61 }
 0x2ab   :  { %2838 = vmatpush1.bf16.msra.mxu1 %v4547_v0 }
 0x2ac   :  { %2839 = vmatprep.subr.bf16.mxu1 %v4556_v2  ;;  %v4881_v2 = vld [vmem:[%s6891_s3] ss:$8 sps:$4 sm:$0xff]  }
 0x2ad   :  { %4050 = vmatpush1.bf16.msra.mxu0 %v4881_v2 }
 0x2af   :  { %v6349_v45 = vpop.eup %5081  ;;  %2840 = vmatpush1.bf16.msra.mxu1 %v4555_v5 }
 0x2b0   :  { %v6351_v7 = vpop.eup %5083  ;;  %2841 = vmatprep.subr.bf16.mxu1 %v4564_v40 }
 0x2b1   :  { %v3022_v43 = vcombine.low %v6349_v45, %v6351_v7  ;;  %v4907_v45 = vld [vmem:[%s6891_s3 + $0x84] ss:$8 sps:$4 sm:$0xff]   ;;  %v4905_v7 = vld [vmem:[%s6891_s3 + $0x80] ss:$8 sps:$4 sm:$0xff]  }
 0x2b3   :  { %2842 = vmatpush1.bf16.msra.mxu1 %v4563_v49 }
 0x2b4   :  { %2843 = vmatprep.subr.bf16.mxu1 %v4572_v51 }
 0x2b7   :  { %2844 = vmatpush1.bf16.msra.mxu1 %v4571_v8 }
 0x2ba   :  { %2846 = vmatmul.mubr.bf16.vlgmr.msra.gmra.mrb[16].mxu1 %v5756_v26 }
 0x30d   :  { %v6356_v9 = vpop.f32.mrb[12].mxu1 }
 0x30e   :  { %v2856_v10 = vsel %vm23_vm0, %v6356_v9, 0.0  ;;  %v6361_v11 = vpop.f32.mrb[8].mxu0  ;;  %v6363_v12 = vpop.f32.mrb[13].mxu1 }
 0x30f   :  { %v2874_v21 = vrot.slane %v2856_v10, 4  ;;  %v2920_v13 = vmul.f32 %v2856_v10, %v2856_v10  ;;  %v2858_v14 = vsel %vm23_vm0, %v6361_v11, 0.0  ;;  %v2857_v26 = vsel %vm23_vm0, %v6363_v12, 0.0  ;;  %v6371_v15 = vpop.f32.mrb[9].mxu0  ;;  %v2687_v16 = vpop.f32.mrb[14].mxu1 }
 0x310   :  { %v2886_v17 = vrot.slane %v2858_v14, 4  ;;  %v2922_v18 = vmul.f32 %v2858_v14, %v2858_v14  ;;  %v2880_v19 = vrot.slane %v2857_v26, 4  ;;  %v2921_v25 = vmul.f32 %v2857_v26, %v2857_v26  ;;  %v2769_v22 = vpop.f32.mrb[10].mxu0  ;;  %v2688_v20 = vpop.f32.mrb[15].mxu1 }
 0x311   :  { %v2875_v23 = vadd.f32 %v2874_v21, %v2856_v10  ;;  %v2938_v24 = vrot.slane %v2920_v13, 4  ;;  %v2859_v28 = vsel %vm23_vm0, %v6371_v15, 0.0  ;;  %v2770_v31 = vpop.f32.mrb[11].mxu0 }
 0x312   :  { %v2887_v34 = vadd.f32 %v2886_v17, %v2858_v14  ;;  %v2950_v38 = vrot.slane %v2922_v18, 4  ;;  %v2881_v41 = vadd.f32 %v2880_v19, %v2857_v26  ;;  %v2944_v50 = vrot.slane %v2921_v25, 4  ;;  %v4886_v14 = vld [vmem:[%s6891_s3 + $0x14] ss:$8 sps:$4 sm:$0xff]   ;;  %v4884_v19 = vld [vmem:[%s6891_s3 + $0x10] ss:$8 sps:$4 sm:$0xff]  }
 0x313   :  { %v2876_v52 = vrot.slane %v2875_v23, 2  ;;  %v2939_v53 = vadd.f32 %v2938_v24, %v2920_v13  ;;  %v2892_v54 = vrot.slane %v2859_v28, 4  ;;  %v2923_v30 = vmul.f32 %v2859_v28, %v2859_v28  ;;  %4051 = vmatprep.subr.bf16.mxu0 %v4886_v14 }
 0x314   :  { %v2888_v1 = vrot.slane %v2887_v34, 2  ;;  %v2951_v35 = vadd.f32 %v2950_v38, %v2922_v18  ;;  %v2882_v37 = vrot.slane %v2881_v41, 2  ;;  %v2945_v55 = vadd.f32 %v2944_v50, %v2921_v25  ;;  %4052 = vmatpush1.bf16.msra.mxu0 %v4884_v19 }
 0x315   :  { %v2877_v56 = vadd.f32 %v2876_v52, %v2875_v23  ;;  %v2940_v57 = vrot.slane %v2939_v53, 2  ;;  %v2893_v58 = vadd.f32 %v2892_v54, %v2859_v28  ;;  %v2956_v59 = vrot.slane %v2923_v30, 4 }
 0x316   :  { %v2889_v61 = vadd.f32 %v2888_v1, %v2887_v34  ;;  %v2952_v62 = vrot.slane %v2951_v35, 2  ;;  %v2883_v63 = vadd.f32 %v2882_v37, %v2881_v41  ;;  %v2946_v0 = vrot.slane %v2945_v55, 2  ;;  %v4887_v37 = vld [vmem:[%s6891_s3 + $0x20] ss:$8 sps:$4 sm:$0xff]  }
 0x317   :  { %v2878_v3 = vrot.slane %v2877_v56, 1  ;;  %v2941_v4 = vadd.f32 %v2940_v57, %v2939_v53  ;;  %v2894_v5 = vrot.slane %v2893_v58, 2  ;;  %v2957_v40 = vadd.f32 %v2956_v59, %v2923_v30  ;;  %v4889_v53 = vld [vmem:[%s6891_s3 + $0x24] ss:$8 sps:$4 sm:$0xff]  }
 0x318   :  { %v2890_v42 = vrot.slane %v2889_v61, 1  ;;  %v2953_v6 = vadd.f32 %v2952_v62, %v2951_v35  ;;  %v2884_v49 = vrot.slane %v2883_v63, 1  ;;  %v2947_v51 = vadd.f32 %v2946_v0, %v2945_v55  ;;  %4053 = vmatprep.subr.bf16.mxu0 %v4889_v53  ;;  %v4922_v53 = vld [vmem:[%s6891_s3 + $0xd4] ss:$8 sps:$4 sm:$0xff]  }
 0x319   :  { %v2879_v8 = vadd.f32 %v2878_v3, %v2877_v56  ;;  %v2942_v10 = vrot.slane %v2941_v4, 1  ;;  %v2895_v21 = vadd.f32 %v2894_v5, %v2893_v58  ;;  %v2958_v13 = vrot.slane %v2957_v40, 2  ;;  %4054 = vmatpush1.bf16.msra.mxu0 %v4887_v37  ;;  %v4890_v3 = vld [vmem:[%s6891_s3 + $0x30] ss:$8 sps:$4 sm:$0xff]   ;;  %v4928_v37 = vld [vmem:[%s6891_s3 + $0xf4] ss:$8 sps:$4 sm:$0xff]  }
 0x31a   :  { %v2891_v26 = vadd.f32 %v2890_v42, %v2889_v61  ;;  %v2954_v16 = vrot.slane %v2953_v6, 1  ;;  %v2885_v17 = vadd.f32 %v2884_v49, %v2883_v63  ;;  %v2948_v18 = vrot.slane %v2947_v51, 1  ;;  %v4892_v63 = vld [vmem:[%s6891_s3 + $0x34] ss:$8 sps:$4 sm:$0xff]   ;;  %v4893_v42 = vld [vmem:[%s6891_s3 + $0x40] ss:$8 sps:$4 sm:$0xff]  }
 0x31b   :  { %v6388_v25 = vmul.f32 0.5, %v2879_v8  ;;  %v2943_v22 = vadd.f32 %v2942_v10, %v2941_v4  ;;  %v2896_v20 = vrot.slane %v2895_v21, 1  ;;  %v2959_v23 = vadd.f32 %v2958_v13, %v2957_v40  ;;  %4055 = vmatprep.subr.bf16.mxu0 %v4892_v63  ;;  %v4895_v40 = vld [vmem:[%s6891_s3 + $0x44] ss:$8 sps:$4 sm:$0xff]   ;;  %v4896_v49 = vld [vmem:[%s6891_s3 + $0x50] ss:$8 sps:$4 sm:$0xff]  }
 0x31c   :  { %v6390_v24 = vmul.f32 0.5, %v2891_v26  ;;  %v2955_v28 = vadd.f32 %v2954_v16, %v2953_v6  ;;  %v6392_v31 = vmul.f32 0.5, %v2885_v17  ;;  %v2949_v34 = vadd.f32 %v2948_v18, %v2947_v51  ;;  %v4898_v6 = vld [vmem:[%s6891_s3 + $0x54] ss:$8 sps:$4 sm:$0xff]   ;;  %v4901_v8 = vld [vmem:[%s6891_s3 + $0x64] ss:$8 sps:$4 sm:$0xff]  }
 0x31d   :  { %v2976_v38 = vmul.f32 0.5, %v2943_v22  ;;  %v2984_v41 = vmul.f32 %v6388_v25, %v6388_v25  ;;  %v2897_v50 = vadd.f32 %v2896_v20, %v2895_v21  ;;  %v2960_v52 = vrot.slane %v2959_v23, 1  ;;  %4056 = vmatpush1.bf16.msra.mxu0 %v4890_v3  ;;  %v4899_v21 = vld [vmem:[%s6891_s3 + $0x60] ss:$8 sps:$4 sm:$0xff]   ;;  %v4904_v16 = vld [vmem:[%s6891_s3 + $0x74] ss:$8 sps:$4 sm:$0xff]  }
 0x31e   :  { %v2978_v54 = vmul.f32 0.5, %v2955_v28  ;;  %v2986_v30 = vmul.f32 %v6390_v24, %v6390_v24  ;;  %v2977_v1 = vmul.f32 0.5, %v2949_v34  ;;  %v2985_v35 = vmul.f32 %v6392_v31, %v6392_v31  ;;  %4057 = vmatprep.subr.bf16.mxu0 %v4895_v40  ;;  %v4902_v22 = vld [vmem:[%s6891_s3 + $0x70] ss:$8 sps:$4 sm:$0xff]   ;;  %v4913_v28 = vld [vmem:[%s6891_s3 + $0xa4] ss:$8 sps:$4 sm:$0xff]  }
 0x31f   :  { %v2992_v55 = vsub.f32 %v2976_v38, %v2984_v41  ;;  %v6406_v56 = vmul.f32 0.5, %v2897_v50  ;;  %v2961_v57 = vadd.f32 %v2960_v52, %v2959_v23  ;;  %v6445_v17 = vrot.slane %v3022_v43, %v5701_v27  ;;  %v4910_v43 = vld [vmem:[%s6891_s3 + $0x94] ss:$8 sps:$4 sm:$0xff]   ;;  %v4908_v23 = vld [vmem:[%s6891_s3 + $0x90] ss:$8 sps:$4 sm:$0xff]  }
 0x320   :  { %v2994_v58 = vsub.f32 %v2978_v54, %v2986_v30  ;;  %v2993_v59 = vsub.f32 %v2977_v1, %v2985_v35  ;;  %v4911_v34 = vld [vmem:[%s6891_s3 + $0xa0] ss:$8 sps:$4 sm:$0xff]   ;;  %v4916_v38 = vld [vmem:[%s6891_s3 + $0xb4] ss:$8 sps:$4 sm:$0xff]   ;;  %v4914_v41 = vld [vmem:[%s6891_s3 + $0xb0] ss:$8 sps:$4 sm:$0xff]  }
 0x321   :  { %v3000_v60 = vadd.f32 0.8, %v2992_v55  ;;  %v2979_v61 = vmul.f32 0.5, %v2961_v57  ;;  %v2987_v62 = vmul.f32 %v6406_v56, %v6406_v56  ;;  %4058 = vmatpush1.bf16.msra.mxu0 %v4893_v42  ;;  %v4919_v50 = vld [vmem:[%s6891_s3 + $0xc4] ss:$8 sps:$4 sm:$0xff]  }
 0x322   :  { %v3002_v0 = vadd.f32 0.8, %v2994_v58  ;;  %v3001_v2 = vadd.f32 0.8, %v2993_v59  ;;  %4059 = vmatprep.subr.bf16.mxu0 %v4898_v6  ;;  %v4917_v52 = vld [vmem:[%s6891_s3 + $0xc0] ss:$8 sps:$4 sm:$0xff]  }
 0x323   :  { %5085 = vrsqrt.f32 %v3000_v60  ;;  %v2995_v4 = vsub.f32 %v2979_v61, %v2987_v62  ;;  %v4920_v54 = vld [vmem:[%s6891_s3 + $0xd0] ss:$8 sps:$4 sm:$0xff]   ;;  %v4925_v30 = vld [vmem:[%s6891_s3 + $0xe4] ss:$8 sps:$4 sm:$0xff]   ;;  %v4923_v1 = vld [vmem:[%s6891_s3 + $0xe0] ss:$8 sps:$4 sm:$0xff]  }
 0x324   :  { %5087 = vrsqrt.f32 %v3002_v0  ;;  %v4926_v35 = vld [vmem:[%s6891_s3 + $0xf0] ss:$8 sps:$4 sm:$0xff]   ;;  %v4931_v55 = vld [vmem:[%s6891_s3 + $0x104] ss:$8 sps:$4 sm:$0xff]  }
 0x325   :  { %5089 = vrsqrt.f32 %v3001_v2  ;;  %v3003_v5 = vadd.f32 0.8, %v2995_v4  ;;  %4060 = vmatpush1.bf16.msra.mxu0 %v4896_v49 }
 0x326   :  { %4061 = vmatprep.subr.bf16.mxu0 %v4901_v8 }
 0x327   :  { %5091 = vrsqrt.f32 %v3003_v5 }
 0x329   :  { %4062 = vmatpush1.bf16.msra.mxu0 %v4899_v21 }
 0x32a   :  { %4063 = vmatprep.subr.bf16.mxu0 %v4904_v16 }
 0x32d   :  { %v5086_v51 = vpop.eup %5085  ;;  %4064 = vmatpush1.bf16.msra.mxu0 %v4902_v22 }
 0x32e   :  { %v6431_v10 = vpop.eup %5087  ;;  %4065 = vmatprep.subr.bf16.mxu0 %v4907_v45 }
 0x32f   :  { %v5090_v13 = vpop.eup %5089 }
 0x330   :  { %v3023_v14 = vcombine.low %v5086_v51, %v5090_v13 }
 0x331   :  { %v6436_v26 = vpop.eup %5091  ;;  %4066 = vmatpush1.bf16.msra.mxu0 %v4905_v7 }
 0x332   :  { %v6448_v18 = vrot.slane %v3023_v14, %v5701_v27  ;;  %v3024_v19 = vcombine.low %v6431_v10, %v6436_v26  ;;  %4067 = vmatprep.subr.bf16.mxu0 %v4910_v43  ;;  %v3096_v10 = vsub.s32 5, %v5528_v36  ;;  %v3100_v26 = vsub.s32 6, %v5528_v36 }
 0x334   :  { %v3054_v20 = vcombine.low %v6445_v17, %v6448_v18 }
 0x335   :  { %4068 = vmatpush1.bf16.msra.mxu0 %v4908_v23 }
 0x336   :  { %4069 = vmatprep.subr.bf16.mxu0 %v4913_v28 }
 0x339   :  { %4070 = vmatpush1.bf16.msra.mxu0 %v4911_v34 }
 0x33a   :  { %4071 = vmatprep.subr.bf16.mxu0 %v4916_v38 }
 0x33d   :  { %4072 = vmatpush1.bf16.msra.mxu0 %v4914_v41 }
 0x33e   :  { %4073 = vmatprep.subr.bf16.mxu0 %v4919_v50 }
 0x341   :  { %4074 = vmatpush1.bf16.msra.mxu0 %v4917_v52 }
 0x342   :  { %4075 = vmatprep.subr.bf16.mxu0 %v4922_v53 }
 0x345   :  { %4076 = vmatpush1.bf16.msra.mxu0 %v4920_v54 }
 0x346   :  { %4077 = vmatprep.subr.bf16.mxu0 %v4925_v30 }
 0x349   :  { %4078 = vmatpush1.bf16.msra.mxu0 %v4923_v1 }
 0x34a   :  { %4079 = vmatprep.subr.bf16.mxu0 %v4928_v37 }
 0x34d   :  { %4080 = vmatpush1.bf16.msra.mxu0 %v4926_v35 }
 0x34e   :  { %4090 = vmatprep.subr.bf16.mxu0 %v4931_v55 }
 0x38d   :  { %v6508_v57 = vpop.f32.mrb[16].mxu1 }
 0x38e   :  { %v2860_v58 = vsel %vm23_vm0, %v6508_v57, 0.0  ;;  %v6513_v59 = vpop.f32.mrb[17].mxu1 }
 0x38f   :  { %v2898_v60 = vrot.slane %v2860_v58, 4  ;;  %v2924_v61 = vmul.f32 %v2860_v58, %v2860_v58  ;;  %v2861_v62 = vsel %vm23_vm0, %v6513_v59, 0.0  ;;  %v2851_v63 = vpop.f32.mrb[18].mxu1 }
 0x390   :  { %v2904_v0 = vrot.slane %v2861_v62, 4  ;;  %v2925_v2 = vmul.f32 %v2861_v62, %v2861_v62  ;;  %v2852_v3 = vpop.f32.mrb[19].mxu1 }
 0x391   :  { %v2899_v4 = vadd.f32 %v2898_v60, %v2860_v58  ;;  %v2962_v5 = vrot.slane %v2924_v61, 4 }
 0x392   :  { %v2905_v40 = vadd.f32 %v2904_v0, %v2861_v62  ;;  %v2968_v42 = vrot.slane %v2925_v2, 4  ;;  %v3046_v0 = vrot.slane %v3024_v19, %v5701_v27  ;;  %v3104_v19 = vsub.s32 7, %v5528_v36 }
 0x393   :  { %v2900_v6 = vrot.slane %v2899_v4, 2  ;;  %v2963_v49 = vadd.f32 %v2962_v5, %v2924_v61 }
 0x394   :  { %v2906_v51 = vrot.slane %v2905_v40, 2  ;;  %v2969_v8 = vadd.f32 %v2968_v42, %v2925_v2 }
 0x395   :  { %v2901_v21 = vadd.f32 %v2900_v6, %v2899_v4  ;;  %v2964_v13 = vrot.slane %v2963_v49, 2  ;;  %v3062_v4 = vrot.slane %v3054_v20, %v5701_v27  ;;  %v3092_v6 = vsub.s32 4, %v5528_v36 }
 0x396   :  { %v2907_v14 = vadd.f32 %v2906_v51, %v2905_v40  ;;  %v2970_v16 = vrot.slane %v2969_v8, 2  ;;  %v25_v40 = vld [vmem:[%s6890_s4 + $0x8] sm:$0xff] }
 0x397   :  { %v2902_v22 = vrot.slane %v2901_v21, 1  ;;  %v2965_v45 = vadd.f32 %v2964_v13, %v2963_v49 }
 0x398   :  { %v2908_v7 = vrot.slane %v2907_v14, 1  ;;  %v2971_v43 = vadd.f32 %v2970_v16, %v2969_v8 }
 0x399   :  { %v2903_v23 = vadd.f32 %v2902_v22, %v2901_v21  ;;  %v2966_v28 = vrot.slane %v2965_v45, 1 }
 0x39a   :  { %v2909_v34 = vadd.f32 %v2908_v7, %v2907_v14  ;;  %v2972_v38 = vrot.slane %v2971_v43, 1 }
 0x39b   :  { %v2916_v41 = vmul.f32 0.5, %v2903_v23  ;;  %v2967_v50 = vadd.f32 %v2966_v28, %v2965_v45 }
 0x39c   :  { %v2917_v52 = vmul.f32 0.5, %v2909_v34  ;;  %v2973_v53 = vadd.f32 %v2972_v38, %v2971_v43 }
 0x39d   :  { %v2980_v54 = vmul.f32 0.5, %v2967_v50  ;;  %v2988_v30 = vmul.f32 %v2916_v41, %v2916_v41 }
 0x39e   :  { %v2981_v1 = vmul.f32 0.5, %v2973_v53  ;;  %v2989_v35 = vmul.f32 %v2917_v52, %v2917_v52 }
 0x39f   :  { %v2996_v37 = vsub.f32 %v2980_v54, %v2988_v30 }
 0x3a0   :  { %v2997_v55 = vsub.f32 %v2981_v1, %v2989_v35  ;;  %v26_v35 = vld [vmem:[%s6890_s4 + $0x10] sm:$0xff] }
 0x3a1   :  { %v3004_v58 = vadd.f32 0.8, %v2996_v37 }
 0x3a2   :  { %v3005_v60 = vadd.f32 0.8, %v2997_v55 }
 0x3a3   :  { %5093 = vrsqrt.f32 %v3004_v58 }
 0x3a4   :  { %5095 = vrsqrt.f32 %v3005_v60 }
 0x3ad   :  { %v5094_v61 = vpop.eup %5093 }
 0x3ae   :  { %v5096_v62 = vpop.eup %5095 }
 0x3af   :  { %v3025_v63 = vcombine.low %v5094_v61, %v5096_v62 }
 0x3b1   :  { %v3053_v2 = vrot.slane %v3025_v63, %v5701_v27 }
 0x3b3   :  { %v3055_v3 = vcombine.low %v3046_v0, %v3053_v2 }
 0x3b5   :  { %v3069_v5 = vrot.slane %v3055_v3, %v5701_v27 }
 0x3b7   :  { %v3070_v42 = vcombine.low %v3062_v4, %v3069_v5 }
 0x3b9   :  { %v3072_v49 = vmul.f32 %v3070_v42, %v25_v40 }
 0x3bb   :  { %v3077_v51 = vrot.slane %v3072_v49, %v5709_v44  ;;  %v3081_v17 = vrot.slane %v3072_v49, %v5713_v47  ;;  %v3085_v18 = vrot.slane %v3072_v49, %v5716_v48  ;;  %v3089_v20 = vrot.slane %v3072_v49, %v5719_v39 }
 0x3bc   :  { %v3093_v8 = vrot.slane %v3072_v49, %v3092_v6  ;;  %v3097_v21 = vrot.slane %v3072_v49, %v3096_v10  ;;  %v3101_v13 = vrot.slane %v3072_v49, %v3100_v26  ;;  %v3105_v14 = vrot.slane %v3072_v49, %v3104_v19 }
 0x3bd   :  { %v3122_v16 = vmul.f32 %v3077_v51, %v6311_v32  ;;  %v3123_v22 = vmul.f32 %v3081_v17, %v6319_v46  ;;  %v3124_v45 = vmul.f32 %v3085_v18, %v6388_v25  ;;  %v3125_v36 = vmul.f32 %v3089_v20, %v6392_v31 }
 0x3be   :  { %v3120_v7 = vmul.f32 %v3101_v13, %v6508_v57  ;;  %v3121_v43 = vmul.f32 %v3105_v14, %v6513_v59  ;;  %v3126_v23 = vmul.f32 %v3093_v8, %v6390_v24  ;;  %v3127_v28 = vmul.f32 %v3097_v21, %v6406_v56 }
 0x3bf   :  { %v3128_v34 = vmul.f32 %v3101_v13, %v2916_v41  ;;  %v3129_v38 = vmul.f32 %v3105_v14, %v2917_v52  ;;  %v3138_v50 = vcombine.low %v3122_v16, %v3123_v22  ;;  %v3139_v53 = vcombine.low %v3124_v45, %v3125_v36  ;;  %v4935_v13 = vld [vmem:[%s6891_s3 + $0x120] ss:$8 sps:$4 sm:$0xff]   ;;  %v4940_v14 = vld [vmem:[%s6891_s3 + $0x134] ss:$8 sps:$4 sm:$0xff]   ;;  %v4938_v16 = vld [vmem:[%s6891_s3 + $0x130] ss:$8 sps:$4 sm:$0xff]  }
 0x3c0   :  { %v3140_v54 = vcombine.low %v3126_v23, %v3127_v28  ;;  %v3115_v32 = vmul.f32 %v3081_v17, %v6285_v33  ;;  %v3114_v46 = vmul.f32 %v3077_v51, %v6283_v29  ;;  %v3117_v25 = vmul.f32 %v3089_v20, %v6363_v12  ;;  %v4943_v22 = vld [vmem:[%s6891_s3 + $0x144] ss:$8 sps:$4 sm:$0xff]   ;;  %v4941_v45 = vld [vmem:[%s6891_s3 + $0x140] ss:$8 sps:$4 sm:$0xff]   ;;  %v4946_v36 = vld [vmem:[%s6891_s3 + $0x154] ss:$8 sps:$4 sm:$0xff]  }
 0x3c1   :  { %v3141_v31 = vcombine.low %v3128_v34, %v3129_v38  ;;  %v3148_v57 = vrot.slane %v3138_v50, %v5701_v27  ;;  %v3155_v59 = vrot.slane %v3139_v53, %v5701_v27  ;;  %v3116_v24 = vmul.f32 %v3085_v18, %v6356_v9  ;;  %v4934_v18 = vld [vmem:[%s6891_s3 + $0x114] ss:$8 sps:$4 sm:$0xff]   ;;  %v4947_v23 = vld [vmem:[%s6891_s3 + $0x160] ss:$8 sps:$4 sm:$0xff]   ;;  %v4950_v34 = vld [vmem:[%s6891_s3 + $0x170] ss:$8 sps:$4 sm:$0xff]  }
 0x3c2   :  { %v3162_v56 = vrot.slane %v3140_v54, %v5701_v27  ;;  %v3119_v41 = vmul.f32 %v3097_v21, %v6371_v15  ;;  %v3118_v52 = vmul.f32 %v3093_v8, %v6361_v11  ;;  %v4932_v8 = vld [vmem:[%s6891_s3 + $0x110] ss:$8 sps:$4 sm:$0xff]   ;;  %v4937_v21 = vld [vmem:[%s6891_s3 + $0x124] ss:$8 sps:$4 sm:$0xff]   ;;  %v4952_v28 = vld [vmem:[%s6891_s3 + $0x174] ss:$8 sps:$4 sm:$0xff]  }
 0x3c3   :  { %v3169_v30 = vrot.slane %v3141_v31, %v5701_v27  ;;  %v3170_v33 = vcombine.low %v3148_v57, %v3155_v59  ;;  %v4955_v38 = vld [vmem:[%s6891_s3 + $0x184] ss:$8 sps:$4 sm:$0xff]   ;;  %v4953_v50 = vld [vmem:[%s6891_s3 + $0x180] ss:$8 sps:$4 sm:$0xff]   ;;  %v4958_v53 = vld [vmem:[%s6891_s3 + $0x194] ss:$8 sps:$4 sm:$0xff]  }
 0x3c4   :  { %v4956_v54 = vld [vmem:[%s6891_s3 + $0x190] ss:$8 sps:$4 sm:$0xff]   ;;  %v4967_v57 = vld [vmem:[%s6891_s3 + $0x1c4] ss:$8 sps:$4 sm:$0xff]   ;;  %v4965_v59 = vld [vmem:[%s6891_s3 + $0x1c0] ss:$8 sps:$4 sm:$0xff]  }
 0x3c5   :  { %v3171_v1 = vcombine.low %v3162_v56, %v3169_v30  ;;  %v3178_v29 = vrot.slane %v3170_v33, %v5701_v27  ;;  %v4962_v31 = vld [vmem:[%s6891_s3 + $0x1b0] ss:$8 sps:$4 sm:$0xff]   ;;  %v4976_v30 = vld [vmem:[%s6891_s3 + $0x1f4] ss:$8 sps:$4 sm:$0xff]  }
 0x3c6   :  { %v4968_v56 = vld [vmem:[%s6891_s3 + $0x1d0] ss:$8 sps:$4 sm:$0xff]  }
 0x3c7   :  { %v3185_v12 = vrot.slane %v3171_v1, %v5701_v27 }
 0x3c9   :  { %v3186_v37 = vcombine.low %v3178_v29, %v3185_v12  ;;  %v4974_v29 = vld [vmem:[%s6891_s3 + $0x1f0] ss:$8 sps:$4 sm:$0xff]   ;;  %v4979_v12 = vld [vmem:[%s6891_s3 + $0x204] ss:$8 sps:$4 sm:$0xff]  }
 0x3cb   :  { %v3188_v9 = vsub.f32 %v26_v35, %v3186_v37 }
 0x3cd   :  { %v3221_v55 = vrot.slane %v3188_v9, %v3104_v19  ;;  %v3197_v58 = vrot.slane %v3188_v9, %v5713_v47  ;;  %v3193_v15 = vrot.slane %v3188_v9, %v5709_v44  ;;  %v3205_v11 = vrot.slane %v3188_v9, %v5719_v39  ;;  %v4929_v19 = vld [vmem:[%s6891_s3 + $0x100] ss:$8 sps:$4 sm:$0xff]  }
 0x3ce   :  { %v3201_v60 = vrot.slane %v3188_v9, %v5716_v48  ;;  %v3213_v61 = vrot.slane %v3188_v9, %v3096_v10  ;;  %v3209_v62 = vrot.slane %v3188_v9, %v3092_v6  ;;  %v3217_v63 = vrot.slane %v3188_v9, %v3100_v26  ;;  %v4977_v9 = vld [vmem:[%s6891_s3 + $0x200] ss:$8 sps:$4 sm:$0xff]  }
 0x3cf   :  { %v6566_v0 = vadd.f32 %v3221_v55, %v3121_v43  ;;  %v3231_v27 = vadd.f32 %v3197_v58, %v3115_v32  ;;  %v3230_v2 = vadd.f32 %v3193_v15, %v3114_v46  ;;  %v3233_v3 = vadd.f32 %v3205_v11, %v3117_v25  ;;  %v4949_v43 = vld [vmem:[%s6891_s3 + $0x164] ss:$8 sps:$4 sm:$0xff]   ;;  %v4959_v46 = vld [vmem:[%s6891_s3 + $0x1a0] ss:$8 sps:$4 sm:$0xff]   ;;  %v4964_v25 = vld [vmem:[%s6891_s3 + $0x1b4] ss:$8 sps:$4 sm:$0xff]  }
 0x3d0   :  { %v6568_v4 = vadd.f32 %v3201_v60, %v3116_v24  ;;  %v6570_v5 = vadd.f32 %v3213_v61, %v3119_v41  ;;  %v6572_v40 = vadd.f32 %v3209_v62, %v3118_v52  ;;  %v6574_v42 = vadd.f32 %v3217_v63, %v3120_v7  ;;  %v4944_v7 = vld [vmem:[%s6891_s3 + $0x150] ss:$8 sps:$4 sm:$0xff]   ;;  %v4961_v32 = vld [vmem:[%s6891_s3 + $0x1a4] ss:$8 sps:$4 sm:$0xff]   ;;  %v4970_v24 = vld [vmem:[%s6891_s3 + $0x1d4] ss:$8 sps:$4 sm:$0xff]  }
 0x3d1   :  { %vm3239_vm5 = vcmp.ge.f32.partialorder %v3231_v27, 0.0  ;;  %v3247_v39 = vmul.f32 0.2, %v3231_v27  ;;  %vm3238_vm6 = vcmp.ge.f32.partialorder %v3230_v2, 0.0  ;;  %v3246_v48 = vmul.f32 0.2, %v3230_v2 }
 0x3d2   :  { %vm3241_vm7 = vcmp.ge.f32.partialorder %v3233_v3, 0.0  ;;  %v3249_v6 = vmul.f32 0.2, %v3233_v3  ;;  %v4973_v41 = vld [vmem:[%s6891_s3 + $0x1e4] ss:$8 sps:$4 sm:$0xff]   ;;  %vm3240_vm8 = vcmp.ge.f32.partialorder %v6568_v4, 0.0 }
 0x3d3   :  { %v3255_v10 = vsel %vm3239_vm5, %v3231_v27, %v3247_v39  ;;  %v3254_v49 = vsel %vm3238_vm6, %v3230_v2, %v3246_v48  ;;  %v4971_v52 = vld [vmem:[%s6891_s3 + $0x1e0] ss:$8 sps:$4 sm:$0xff]   ;;  %v3248_v33 = vmul.f32 0.2, %v6568_v4  ;;  %v3251_v1 = vmul.f32 0.2, %v6570_v5 }
 0x3d4   :  { %v3263_v26 = vpack.c.bf16 %v3255_v10, %v3255_v10  ;;  %v3257_v51 = vsel %vm3241_vm7, %v3233_v3, %v3249_v6  ;;  %v3262_v17 = vpack.c.bf16 %v3254_v49, %v3254_v49  ;;  %vm3243_vm9 = vcmp.ge.f32.partialorder %v6570_v5, 0.0  ;;  %v4982_v58 = vld [vmem:[%s6891_s3 + $0x214] ss:$8 sps:$4 sm:$0xff]   ;;  %v4980_v11 = vld [vmem:[%s6891_s3 + $0x210] ss:$8 sps:$4 sm:$0xff]  }
 0x3d5   :  { %v3265_v20 = vpack.c.bf16 %v3257_v51, %v3257_v51  ;;  %v3256_v35 = vsel %vm3240_vm8, %v6568_v4, %v3248_v33  ;;  %v3259_v37 = vsel %vm3243_vm9, %v6570_v5, %v3251_v1  ;;  %v4985_v60 = vld [vmem:[%s6891_s3 + $0x224] ss:$8 sps:$4 sm:$0xff]   ;;  %v4983_v61 = vld [vmem:[%s6891_s3 + $0x220] ss:$8 sps:$4 sm:$0xff]   ;;  %v4988_v62 = vld [vmem:[%s6891_s3 + $0x234] ss:$8 sps:$4 sm:$0xff]  }
 0x3d6   :  { %4081 = vmatprep.mubr.bf16.mxu0 %v3263_v26  ;;  %v3264_v55 = vpack.c.bf16 %v3256_v35, %v3256_v35  ;;  %v3267_v15 = vpack.c.bf16 %v3259_v37, %v3259_v37  ;;  %v4986_v63 = vld [vmem:[%s6891_s3 + $0x230] ss:$8 sps:$4 sm:$0xff]   ;;  %v4991_v27 = vld [vmem:[%s6891_s3 + $0x244] ss:$8 sps:$4 sm:$0xff]   ;;  %v4989_v2 = vld [vmem:[%s6891_s3 + $0x240] ss:$8 sps:$4 sm:$0xff]  }
 0x3d7   :  { %4082 = vmatmul.mubr.bf16.vlgmr.msra.gmra.mrb[12].mxu0 %v3262_v17  ;;  %v4994_v3 = vld [vmem:[%s6891_s3 + $0x254] ss:$8 sps:$4 sm:$0xff]   ;;  %v4992_v4 = vld [vmem:[%s6891_s3 + $0x250] ss:$8 sps:$4 sm:$0xff]   ;;  %v4997_v5 = vld [vmem:[%s6891_s3 + $0x264] ss:$8 sps:$4 sm:$0xff]  }
 0x3d8   :  { %4091 = vmatpush1.bf16.msra.mxu0 %v4929_v19  ;;  %4122 = vmatprep.mubr.bf16.mxu0 %v3265_v20  ;;  %v4995_v39 = vld [vmem:[%s6891_s3 + $0x260] ss:$8 sps:$4 sm:$0xff]   ;;  %v5000_v48 = vld [vmem:[%s6891_s3 + $0x274] ss:$8 sps:$4 sm:$0xff]   ;;  %v4998_v6 = vld [vmem:[%s6891_s3 + $0x270] ss:$8 sps:$4 sm:$0xff]  }
 0x3d9   :  { %4092 = vmatprep.subr.bf16.mxu0 %v4934_v18  ;;  %v5003_v10 = vld [vmem:[%s6891_s3 + $0x284] ss:$8 sps:$4 sm:$0xff]   ;;  %v5001_v26 = vld [vmem:[%s6891_s3 + $0x280] ss:$8 sps:$4 sm:$0xff]   ;;  %v5006_v19 = vld [vmem:[%s6891_s3 + $0x294] ss:$8 sps:$4 sm:$0xff]  }
 0x3da   :  { %v5004_v49 = vld [vmem:[%s6891_s3 + $0x290] ss:$8 sps:$4 sm:$0xff]   ;;  %v5009_v51 = vld [vmem:[%s6891_s3 + $0x2a4] ss:$8 sps:$4 sm:$0xff]   ;;  %v5007_v17 = vld [vmem:[%s6891_s3 + $0x2a0] ss:$8 sps:$4 sm:$0xff]  }
 0x3db   :  { %v5012_v18 = vld [vmem:[%s6891_s3 + $0x2b4] ss:$8 sps:$4 sm:$0xff]   ;;  %v5010_v20 = vld [vmem:[%s6891_s3 + $0x2b0] ss:$8 sps:$4 sm:$0xff]   ;;  %vm3242_vm10 = vcmp.ge.f32.partialorder %v6572_v40, 0.0  ;;  %vm3245_vm11 = vcmp.ge.f32.partialorder %v6566_v0, 0.0 }
 0x3dc   :  { %4093 = vmatpush1.bf16.msra.mxu0 %v4932_v8  ;;  %v5015_v8 = vld [vmem:[%s6891_s3 + $0x2c4] ss:$8 sps:$4 sm:$0xff]   ;;  %v5049_v1 = vld [vmem:[%s6891_s3 + $0x380] ss:$8 sps:$4 sm:$0xff]   ;;  %vm3244_vm12 = vcmp.ge.f32.partialorder %v6574_v42, 0.0 }
 0x3dd   :  { %4094 = vmatprep.subr.bf16.mxu0 %v4937_v21  ;;  %v5013_v21 = vld [vmem:[%s6891_s3 + $0x2c0] ss:$8 sps:$4 sm:$0xff]   ;;  %v5051_v33 = vld [vmem:[%s6891_s3 + $0x384] ss:$8 sps:$4 sm:$0xff]  }
 0x3de   :  { %v5057_v35 = vld [vmem:[%s6891_s3 + $0x3a4] ss:$8 sps:$4 sm:$0xff]   ;;  %v5055_v37 = vld [vmem:[%s6891_s3 + $0x3a0] ss:$8 sps:$4 sm:$0xff]  }
 0x3e0   :  { %4095 = vmatpush1.bf16.msra.mxu0 %v4935_v13  ;;  %v5018_v13 = vld [vmem:[%s6891_s3 + $0x2d4] ss:$8 sps:$4 sm:$0xff]  }
 0x3e1   :  { %4096 = vmatprep.subr.bf16.mxu0 %v4940_v14  ;;  %v5016_v14 = vld [vmem:[%s6891_s3 + $0x2d0] ss:$8 sps:$4 sm:$0xff]  }
 0x3e4   :  { %4097 = vmatpush1.bf16.msra.mxu0 %v4938_v16  ;;  %v5021_v16 = vld [vmem:[%s6891_s3 + $0x2e4] ss:$8 sps:$4 sm:$0xff]  }
 0x3e5   :  { %4098 = vmatprep.subr.bf16.mxu0 %v4943_v22  ;;  %v5019_v22 = vld [vmem:[%s6891_s3 + $0x2e0] ss:$8 sps:$4 sm:$0xff]  }
 0x3e8   :  { %4099 = vmatpush1.bf16.msra.mxu0 %v4941_v45  ;;  %v5024_v45 = vld [vmem:[%s6891_s3 + $0x2f4] ss:$8 sps:$4 sm:$0xff]  }
 0x3e9   :  { %4100 = vmatprep.subr.bf16.mxu0 %v4946_v36  ;;  %v3250_v36 = vmul.f32 0.2, %v6572_v40 }
 0x3ec   :  { %4101 = vmatpush1.bf16.msra.mxu0 %v4944_v7  ;;  %v3253_v7 = vmul.f32 0.2, %v6566_v0 }
 0x3ed   :  { %4102 = vmatprep.subr.bf16.mxu0 %v4949_v43  ;;  %v5022_v43 = vld [vmem:[%s6891_s3 + $0x2f0] ss:$8 sps:$4 sm:$0xff]  }
 0x3f0   :  { %4103 = vmatpush1.bf16.msra.mxu0 %v4947_v23  ;;  %v5027_v23 = vld [vmem:[%s6891_s3 + $0x304] ss:$8 sps:$4 sm:$0xff]  }
 0x3f1   :  { %4104 = vmatprep.subr.bf16.mxu0 %v4952_v28  ;;  %v3258_v28 = vsel %vm3242_vm10, %v6572_v40, %v3250_v36  ;;  %v5028_v40 = vld [vmem:[%s6891_s3 + $0x310] ss:$8 sps:$4 sm:$0xff]  }
 0x3f4   :  { %4105 = vmatpush1.bf16.msra.mxu0 %v4950_v34  ;;  %v3261_v34 = vsel %vm3245_vm11, %v6566_v0, %v3253_v7  ;;  %v5033_v0 = vld [vmem:[%s6891_s3 + $0x324] ss:$8 sps:$4 sm:$0xff]  }
 0x3f5   :  { %4106 = vmatprep.subr.bf16.mxu0 %v4955_v38  ;;  %v5025_v38 = vld [vmem:[%s6891_s3 + $0x300] ss:$8 sps:$4 sm:$0xff]  }
 0x3f8   :  { %4107 = vmatpush1.bf16.msra.mxu0 %v4953_v50  ;;  %v3266_v50 = vpack.c.bf16 %v3258_v28, %v3258_v28 }
 0x3f9   :  { %4108 = vmatprep.subr.bf16.mxu0 %v4958_v53  ;;  %v5030_v53 = vld [vmem:[%s6891_s3 + $0x314] ss:$8 sps:$4 sm:$0xff]  }
 0x3fc   :  { %4109 = vmatpush1.bf16.msra.mxu0 %v4956_v54  ;;  %v3269_v54 = vpack.c.bf16 %v3261_v34, %v3261_v34 }
 0x3fd   :  { %4110 = vmatprep.subr.bf16.mxu0 %v4961_v32  ;;  %v5031_v32 = vld [vmem:[%s6891_s3 + $0x320] ss:$8 sps:$4 sm:$0xff]  }
 0x400   :  { %4111 = vmatpush1.bf16.msra.mxu0 %v4959_v46  ;;  %v5036_v46 = vld [vmem:[%s6891_s3 + $0x334] ss:$8 sps:$4 sm:$0xff]  }
 0x401   :  { %4112 = vmatprep.subr.bf16.mxu0 %v4964_v25  ;;  %v5034_v25 = vld [vmem:[%s6891_s3 + $0x330] ss:$8 sps:$4 sm:$0xff]  }
 0x404   :  { %4113 = vmatpush1.bf16.msra.mxu0 %v4962_v31  ;;  %v5039_v31 = vld [vmem:[%s6891_s3 + $0x344] ss:$8 sps:$4 sm:$0xff]  }
 0x405   :  { %4114 = vmatprep.subr.bf16.mxu0 %v4967_v57  ;;  %v5037_v57 = vld [vmem:[%s6891_s3 + $0x340] ss:$8 sps:$4 sm:$0xff]  }
 0x408   :  { %4115 = vmatpush1.bf16.msra.mxu0 %v4965_v59  ;;  %v5042_v59 = vld [vmem:[%s6891_s3 + $0x354] ss:$8 sps:$4 sm:$0xff]  }
 0x409   :  { %4116 = vmatprep.subr.bf16.mxu0 %v4970_v24  ;;  %v5040_v24 = vld [vmem:[%s6891_s3 + $0x350] ss:$8 sps:$4 sm:$0xff]  }
 0x40c   :  { %4117 = vmatpush1.bf16.msra.mxu0 %v4968_v56  ;;  %v5045_v56 = vld [vmem:[%s6891_s3 + $0x364] ss:$8 sps:$4 sm:$0xff]  }
 0x40d   :  { %4118 = vmatprep.subr.bf16.mxu0 %v4973_v41  ;;  %v5043_v41 = vld [vmem:[%s6891_s3 + $0x360] ss:$8 sps:$4 sm:$0xff]  }
 0x410   :  { %4119 = vmatpush1.bf16.msra.mxu0 %v4971_v52  ;;  %v5048_v52 = vld [vmem:[%s6891_s3 + $0x374] ss:$8 sps:$4 sm:$0xff]  }
 0x411   :  { %4120 = vmatprep.subr.bf16.mxu0 %v4976_v30  ;;  %v5046_v30 = vld [vmem:[%s6891_s3 + $0x370] ss:$8 sps:$4 sm:$0xff]  }
 0x414   :  { %4121 = vmatpush1.bf16.msra.mxu0 %v4974_v29  ;;  %v5054_v29 = vld [vmem:[%s6891_s3 + $0x394] ss:$8 sps:$4 sm:$0xff]  }
 0x415   :  { %4131 = vmatprep.subr.bf16.mxu0 %v4979_v12  ;;  %v5052_v12 = vld [vmem:[%s6891_s3 + $0x390] ss:$8 sps:$4 sm:$0xff]  }
 0x417   :  { %4123 = vmatmul.mubr.bf16.vlgmr.msra.gmra.mrb[12].mxu0 %v3264_v55  ;;  %v5058_v55 = vld [vmem:[%s6891_s3 + $0x3b0] ss:$8 sps:$4 sm:$0xff]  }
 0x418   :  { %4132 = vmatpush1.bf16.msra.mxu0 %v4977_v9  ;;  %4163 = vmatprep.mubr.bf16.mxu0 %v3267_v15  ;;  %v5060_v9 = vld [vmem:[%s6891_s3 + $0x3b4] ss:$8 sps:$4 sm:$0xff]   ;;  %v5061_v15 = vld [vmem:[%s6891_s3 + $0x3c0] ss:$8 sps:$4 sm:$0xff]  }
 0x419   :  { %4133 = vmatprep.subr.bf16.mxu0 %v4982_v58  ;;  %v5063_v58 = vld [vmem:[%s6891_s3 + $0x3c4] ss:$8 sps:$4 sm:$0xff]  }
 0x41c   :  { %4134 = vmatpush1.bf16.msra.mxu0 %v4980_v11  ;;  %v5066_v11 = vld [vmem:[%s6891_s3 + $0x3d4] ss:$8 sps:$4 sm:$0xff]  }
 0x41d   :  { %4135 = vmatprep.subr.bf16.mxu0 %v4985_v60  ;;  %v5064_v60 = vld [vmem:[%s6891_s3 + $0x3d0] ss:$8 sps:$4 sm:$0xff]  }
 0x420   :  { %4136 = vmatpush1.bf16.msra.mxu0 %v4983_v61  ;;  %v5069_v61 = vld [vmem:[%s6891_s3 + $0x3e4] ss:$8 sps:$4 sm:$0xff]  }
 0x421   :  { %4137 = vmatprep.subr.bf16.mxu0 %v4988_v62  ;;  %v5067_v62 = vld [vmem:[%s6891_s3 + $0x3e0] ss:$8 sps:$4 sm:$0xff]  }
 0x424   :  { %4138 = vmatpush1.bf16.msra.mxu0 %v4986_v63  ;;  %v5072_v63 = vld [vmem:[%s6891_s3 + $0x3f4] ss:$8 sps:$4 sm:$0xff]  }
 0x425   :  { %4139 = vmatprep.subr.bf16.mxu0 %v4991_v27  ;;  %v3252_v27 = vmul.f32 0.2, %v6574_v42 }
 0x428   :  { %4140 = vmatpush1.bf16.msra.mxu0 %v4989_v2  ;;  %v5070_v2 = vld [vmem:[%s6891_s3 + $0x3f0] ss:$8 sps:$4 sm:$0xff]  }
 0x429   :  { %4141 = vmatprep.subr.bf16.mxu0 %v4994_v3  ;;  %v3260_v3 = vsel %vm3244_vm12, %v6574_v42, %v3252_v27 }
 0x42c   :  { %4142 = vmatpush1.bf16.msra.mxu0 %v4992_v4  ;;  %v3268_v4 = vpack.c.bf16 %v3260_v3, %v3260_v3 }
 0x42d   :  { %4143 = vmatprep.subr.bf16.mxu0 %v4997_v5  ;;  %v27_v5 = vld [vmem:[%s6890_s4 + $0x18] sm:$0x3] }
 0x430   :  { %4144 = vmatpush1.bf16.msra.mxu0 %v4995_v39  ;;  %v3402_v39 = vrot.slane %v27_v5, %v5709_v44 }
 0x431   :  { %4145 = vmatprep.subr.bf16.mxu0 %v5000_v48  ;;  %v3406_v48 = vrot.slane %v27_v5, %v5713_v47 }
 0x434   :  { %4146 = vmatpush1.bf16.msra.mxu0 %v4998_v6 }
 0x435   :  { %4147 = vmatprep.subr.bf16.mxu0 %v5003_v10 }
 0x438   :  { %4148 = vmatpush1.bf16.msra.mxu0 %v5001_v26 }
 0x439   :  { %4149 = vmatprep.subr.bf16.mxu0 %v5006_v19 }
 0x43c   :  { %4150 = vmatpush1.bf16.msra.mxu0 %v5004_v49 }
 0x43d   :  { %4151 = vmatprep.subr.bf16.mxu0 %v5009_v51 }
 0x440   :  { %4152 = vmatpush1.bf16.msra.mxu0 %v5007_v17 }
 0x441   :  { %4153 = vmatprep.subr.bf16.mxu0 %v5012_v18 }
 0x444   :  { %4154 = vmatpush1.bf16.msra.mxu0 %v5010_v20 }
 0x445   :  { %4155 = vmatprep.subr.bf16.mxu0 %v5015_v8 }
 0x448   :  { %4156 = vmatpush1.bf16.msra.mxu0 %v5013_v21 }
 0x449   :  { %4157 = vmatprep.subr.bf16.mxu0 %v5018_v13 }
 0x44c   :  { %4158 = vmatpush1.bf16.msra.mxu0 %v5016_v14 }
 0x44d   :  { %4159 = vmatprep.subr.bf16.mxu0 %v5021_v16 }
 0x450   :  { %4160 = vmatpush1.bf16.msra.mxu0 %v5019_v22 }
 0x451   :  { %4161 = vmatprep.subr.bf16.mxu0 %v5024_v45 }
 0x454   :  { %4162 = vmatpush1.bf16.msra.mxu0 %v5022_v43 }
 0x455   :  { %4172 = vmatprep.subr.bf16.mxu0 %v5027_v23 }
 0x457   :  { %4164 = vmatmul.mubr.bf16.vlgmr.msra.gmra.mrb[12].mxu0 %v3266_v50 }
 0x458   :  { %4173 = vmatpush1.bf16.msra.mxu0 %v5025_v38  ;;  %4204 = vmatprep.mubr.bf16.mxu0 %v3269_v54 }
 0x459   :  { %4174 = vmatprep.subr.bf16.mxu0 %v5030_v53 }
 0x45c   :  { %4175 = vmatpush1.bf16.msra.mxu0 %v5028_v40 }
 0x45d   :  { %4176 = vmatprep.subr.bf16.mxu0 %v5033_v0 }
 0x460   :  { %4177 = vmatpush1.bf16.msra.mxu0 %v5031_v32 }
 0x461   :  { %4178 = vmatprep.subr.bf16.mxu0 %v5036_v46 }
 0x464   :  { %4179 = vmatpush1.bf16.msra.mxu0 %v5034_v25 }
 0x465   :  { %4180 = vmatprep.subr.bf16.mxu0 %v5039_v31 }
 0x468   :  { %4181 = vmatpush1.bf16.msra.mxu0 %v5037_v57 }
 0x469   :  { %4182 = vmatprep.subr.bf16.mxu0 %v5042_v59 }
 0x46c   :  { %4183 = vmatpush1.bf16.msra.mxu0 %v5040_v24 }
 0x46d   :  { %4184 = vmatprep.subr.bf16.mxu0 %v5045_v56 }
 0x470   :  { %4185 = vmatpush1.bf16.msra.mxu0 %v5043_v41 }
 0x471   :  { %4186 = vmatprep.subr.bf16.mxu0 %v5048_v52 }
 0x474   :  { %4187 = vmatpush1.bf16.msra.mxu0 %v5046_v30 }
 0x475   :  { %4188 = vmatprep.subr.bf16.mxu0 %v5051_v33 }
 0x478   :  { %4189 = vmatpush1.bf16.msra.mxu0 %v5049_v1 }
 0x479   :  { %4190 = vmatprep.subr.bf16.mxu0 %v5054_v29 }
 0x47c   :  { %4191 = vmatpush1.bf16.msra.mxu0 %v5052_v12 }
 0x47d   :  { %4192 = vmatprep.subr.bf16.mxu0 %v5057_v35 }
 0x480   :  { %4193 = vmatpush1.bf16.msra.mxu0 %v5055_v37 }
 0x481   :  { %4194 = vmatprep.subr.bf16.mxu0 %v5060_v9 }
 0x484   :  { %4195 = vmatpush1.bf16.msra.mxu0 %v5058_v55 }
 0x485   :  { %4196 = vmatprep.subr.bf16.mxu0 %v5063_v58 }
 0x488   :  { %4197 = vmatpush1.bf16.msra.mxu0 %v5061_v15 }
 0x489   :  { %4198 = vmatprep.subr.bf16.mxu0 %v5066_v11 }
 0x48c   :  { %4199 = vmatpush1.bf16.msra.mxu0 %v5064_v60 }
 0x48d   :  { %4200 = vmatprep.subr.bf16.mxu0 %v5069_v61 }
 0x490   :  { %4201 = vmatpush1.bf16.msra.mxu0 %v5067_v62 }
 0x491   :  { %4202 = vmatprep.subr.bf16.mxu0 %v5072_v63 }
 0x494   :  { %4203 = vmatpush1.bf16.msra.mxu0 %v5070_v2 }
 0x497   :  { %4205 = vmatmul.mubr.bf16.vlgmr.msra.gmra.mrb[12].mxu0 %v3268_v4 }
 0x56a   :  { %v4206_v6 = vpop.f32.mrb[12].mxu0 }
 0x56b   :  { %v4705_v10 = vadd.f32 %v4206_v6, %v3402_v39  ;;  %v4208_v26 = vpop.f32.mrb[13].mxu0 }
 0x56c   :  { %v4706_v19 = vadd.f32 %v4208_v26, %v3406_v48  ;;  %v4210_v49 = vpop.f32.mrb[14].mxu0 }
 0x56d   :  { %5097 = vtanh.f32 %v4705_v10  ;;  %v4211_v51 = vpop.f32.mrb[15].mxu0 }
 0x56e   :  { %5099 = vtanh.f32 %v4706_v19 }
 0x577   :  { %v5098_v42 = vpop.eup %5097 }
 0x578   :  { %v5100_v17 = vpop.eup %5099  ;;  %4215 = vst [vmem:[%s6892_s5] sm:$0xff] %v5098_v42 }
 0x579   :  { %4216 = vst [vmem:[%s6892_s5 + $0x8] sm:$0xff] %v5100_v17 }

</bundles_post_ra>
